<compile_context>
chip_gen: v7x
topology: tpu7x:2x2x1
jax: 0.10.0
libtpu: 0.0.40
codegen_flags: <defaults>
</compile_context>

<pallas_src>
import functools

import jax
import jax.numpy as jnp
from jax import lax
from jax.experimental import pallas as pl
from jax.experimental.pallas import tpu as pltpu

KK = 9  # 3x3 kernel taps


def _dcn_kernel(xext_ref, xch_ref, hh_ref, ww_ref, rsel_ref,
                woff_ref, boff_ref, wdc_ref, out_ref, *, H, W, C, groups):
    """One batch element per grid step.

    xext_ref : (1, C, HW + 2*(W+1))  x flattened, zero-padded by W+1 each side
    xch_ref  : (1, C*H, W)           x reshaped for the column-gather matmul
    hh_ref   : (1, HW)               row index of each output pixel (float)
    ww_ref   : (1, HW)               col index of each output pixel (float)
    rsel_ref : (C, C*H)              row-block selector (sums H rows per chan)
    woff_ref : (27, C*9)             offset-net weight, column order k*C + c
    boff_ref : (27, 1)               offset-net bias
    wdc_ref  : (groups, og, 9*Cg)    grouped deform-conv weight, col k*Cg + c
    out_ref  : (1, C_out, HW)
    """
    HW = H * W
    PAD = W + 1
    C_out = out_ref.shape[1]
    og = C_out // groups
    Cg = C // groups

    xext = xext_ref[0]                      # (C, HW + 2*PAD)
    xch = xch_ref[0]                        # (C*H, W)
    hh = hh_ref[...]                        # (1, HW)
    ww = ww_ref[...]                        # (1, HW)
    rsel = rsel_ref[...]                    # (C, C*H)

    # ---- offset_net: 3x3 conv (pad=1) as ONE matmul over in-kernel im2col ---
    cols = []
    for k in range(KK):
        ki, kj = k // 3, k % 3
        oy, ox = float(ki - 1), float(kj - 1)
        d = (ki - 1) * W + (kj - 1)
        src = xext[:, PAD + d: PAD + d + HW]            # (C, HW) shifted copy
        vr = (hh + oy >= 0.0) & (hh + oy <= float(H - 1))
        vc = (ww + ox >= 0.0) & (ww + ox <= float(W - 1))
        cols.append(jnp.where(vr & vc, src, 0.0))
    cols = jnp.concatenate(cols, axis=0)                # (9*C, HW), row k*C+c

    offs = jnp.dot(woff_ref[...], cols,
                   preferred_element_type=jnp.float32) + boff_ref[...]  # (27, HW)

    # o1, o2, mask = chunk(offs, 3); offset = cat(o1, o2) == offs[0:18]
    mask = jax.nn.sigmoid(offs[2 * KK:, :])             # (9, HW), EUP

    # iotas for the separable one-hot bilinear weights
    r_iota = lax.broadcasted_iota(jnp.int32, (H, HW), 0)
    c_iota = lax.broadcasted_iota(jnp.int32, (W, HW), 0)

    samples = []                                        # per-tap (C, HW)
    for k in range(KK):                                 # static unrolled taps
        ki, kj = k // 3, k % 3
        dy = offs[2 * k:2 * k + 1, :]                   # (1, HW)
        dx = offs[2 * k + 1:2 * k + 2, :]
        py = hh + float(ki - 1) + dy
        px = ww + float(kj - 1) + dx

        y0f = jnp.floor(py)
        x0f = jnp.floor(px)
        ly = py - y0f
        lx = px - x0f
        y0 = y0f.astype(jnp.int32)
        x0 = x0f.astype(jnp.int32)

        # Separable bilinear weights; out-of-image corners match no iota row,
        # so zero padding outside the image is automatic.
        wy = (jnp.where(r_iota == y0, 1.0 - ly, 0.0)
              + jnp.where(r_iota == y0 + 1, ly, 0.0))   # (H, HW)
        wx = (jnp.where(c_iota == x0, 1.0 - lx, 0.0)
              + jnp.where(c_iota == x0 + 1, lx, 0.0))   # (W, HW)

        # column gather on the MXU, then row reduce as a second small matmul
        g = jnp.dot(xch, wx, preferred_element_type=jnp.float32)   # (C*H, HW)
        gm = g * jnp.concatenate([wy] * C, axis=0)                 # (C*H, HW)
        samp = jnp.dot(rsel, gm, preferred_element_type=jnp.float32)  # (C, HW)
        samples.append(samp * mask[k:k + 1, :])

    # ---- grouped deform conv: one fused matmul per group over all 9 taps ----
    outs = []
    for gi in range(groups):
        stack_g = jnp.concatenate(
            [s[gi * Cg:(gi + 1) * Cg, :] for s in samples], axis=0)  # (9*Cg, HW)
        outs.append(jnp.dot(wdc_ref[gi], stack_g,
                            preferred_element_type=jnp.float32))     # (og, HW)
    out_ref[0] = jnp.concatenate(outs, axis=0)


def deform_conv_mmdet_forward(x, w_off, b_off, w_dc, groups):
    """x: (B, C, H, W) float32; returns (B, C_out, H, W) float32."""
    B, C, H, W = x.shape
    HW = H * W
    C_out = w_dc.shape[0]
    assert C % groups == 0 and C_out % groups == 0
    Cg = C // groups
    og = C_out // groups
    PAD = W + 1

    # ---- glue: flat / padded / reshaped views of x (no 9x im2col blow-up) ---
    xflat = x.reshape(B, C, HW)
    zpad = jnp.zeros((B, C, PAD), x.dtype)
    xext = jnp.concatenate([zpad, xflat, zpad], axis=2)   # (B, C, HW + 2*PAD)
    xch = x.reshape(B, C * H, W)                          # (B, C*H, W)

    # ---- glue: pixel coordinate grids + row-block selector ------------------
    pid = jnp.arange(HW, dtype=jnp.int32)
    hh = (pid // W).astype(jnp.float32).reshape(1, HW)
    ww = (pid % W).astype(jnp.float32).reshape(1, HW)
    rsel = (jnp.arange(C * H, dtype=jnp.int32)[None, :] // H
            == jnp.arange(C, dtype=jnp.int32)[:, None]).astype(jnp.float32)

    # ---- glue: weight reshapes (column orders match in-kernel stacking) -----
    w_off_mat = jnp.transpose(w_off, (0, 2, 3, 1)).reshape(3 * KK, KK * C)
    b_off_col = b_off.reshape(-1, 1)
    w_dc_g = jnp.transpose(w_dc.reshape(groups, og, Cg, 3, 3),
                           (0, 1, 3, 4, 2)).reshape(groups, og, KK * Cg)

    out_flat = pl.pallas_call(
        functools.partial(_dcn_kernel, H=H, W=W, C=C, groups=groups),
        out_shape=jax.ShapeDtypeStruct((B, C_out, HW), jnp.float32),
        grid_spec=pltpu.PrefetchScalarGridSpec(
            num_scalar_prefetch=0,
            grid=(B,),
            in_specs=[
                pl.BlockSpec((1, C, HW + 2 * PAD), lambda b: (b, 0, 0)),
                pl.BlockSpec((1, C * H, W), lambda b: (b, 0, 0)),
                pl.BlockSpec((1, HW), lambda b: (0, 0)),
                pl.BlockSpec((1, HW), lambda b: (0, 0)),
                pl.BlockSpec((C, C * H), lambda b: (0, 0)),
                pl.BlockSpec((3 * KK, KK * C), lambda b: (0, 0)),
                pl.BlockSpec((3 * KK, 1), lambda b: (0, 0)),
                pl.BlockSpec((groups, og, KK * Cg), lambda b: (0, 0, 0)),
            ],
            out_specs=pl.BlockSpec((1, C_out, HW), lambda b: (b, 0, 0)),
        ),
        compiler_params=pltpu.CompilerParams(
            dimension_semantics=("parallel",)),
    )(xext, xch, hh, ww, rsel, w_off_mat, b_off_col, w_dc_g)

    return out_flat.reshape(B, C_out, H, W)


# ------------------------- pure-JAX reference (for checking) -----------------
def ref_forward(x, w_off, b_off, w_dc, groups):
    B, C, H, W = x.shape
    offs = lax.conv_general_dilated(
        x, w_off, window_strides=(1, 1), padding=((1, 1), (1, 1)),
        dimension_numbers=("NCHW", "OIHW", "NCHW")) + b_off[None, :, None, None]
    o1, o2, m = jnp.split(offs, 3, axis=1)
    offset = jnp.concatenate([o1, o2], axis=1)
    mask = jax.nn.sigmoid(m)

    hh = jnp.arange(H, dtype=jnp.float32)
    ww = jnp.arange(W, dtype=jnp.float32)
    cols = []
    for k in range(KK):
        ki, kj = k // 3, k % 3
        dy = offset[:, 2 * k]
        dx = offset[:, 2 * k + 1]
        py = hh[None, :, None] - 1.0 + ki + dy
        px = ww[None, None, :] - 1.0 + kj + dx
        y0 = jnp.floor(py)
        x0 = jnp.floor(px)
        ly = py - y0
        lx = px - x0
        val = jnp.zeros((B, C, H, W), x.dtype)
        for yy, wy in ((y0, 1.0 - ly), (y0 + 1.0, ly)):
            for xx, wx in ((x0, 1.0 - lx), (x0 + 1.0, lx)):
                valid = ((yy >= 0) & (yy < H) & (xx >= 0) & (xx < W)).astype(x.dtype)
                yi = jnp.clip(yy, 0, H - 1).astype(jnp.int32)
                xi = jnp.clip(xx, 0, W - 1).astype(jnp.int32)
                g = jax.vmap(lambda xb, yb, xb_i: xb[:, yb, xb_i])(x, yi, xi)
                val = val + g * (wy * wx * valid)[:, None]
        cols.append(val * mask[:, k][:, None])
    cols = jnp.stack(cols, axis=2)                         # (B, C, 9, H, W)

    Cg = C // groups
    C_out = w_dc.shape[0]
    og = C_out // groups
    outs = []
    for g in range(groups):
        cg = cols[:, g * Cg:(g + 1) * Cg]                  # (B, Cg, 9, H, W)
        wg = w_dc[g * og:(g + 1) * og].reshape(og, Cg, KK)
        outs.append(jnp.einsum("ock,bckhw->bohw", wg, cg))
    return jnp.concatenate(outs, axis=1)


if __name__ == "__main__":
    B, C, H, W = 2, 4, 16, 16
    groups = 2

    key = jax.random.PRNGKey(0)
    k1, k2, k3, k4 = jax.random.split(key, 4)
    x = jax.random.normal(k1, (B, C, H, W), jnp.float32)
    # offset_net: Conv2d(C, 3*3*3=27, k=3, pad=1, bias=True)  (see TODO above)
    w_off = jax.random.normal(k2, (3 * KK, C, 3, 3), jnp.float32) * 0.1
    b_off = jax.random.normal(k3, (3 * KK,), jnp.float32) * 0.1
    # deform_conv: weight (C, C//groups, 3, 3), no bias
    w_dc = jax.random.normal(k4, (C, C // groups, 3, 3), jnp.float32) * 0.1

    out = deform_conv_mmdet_forward(x, w_off, b_off, w_dc, groups)
    out = jax.block_until_ready(out)

    ref = jax.block_until_ready(ref_forward(x, w_off, b_off, w_dc, groups))
    assert out.shape == (B, C, H, W)
    assert jnp.allclose(out, ref, atol=5e-4, rtol=1e-3), (
        float(jnp.max(jnp.abs(out - ref))))

    print("KERNEL_OK")
</pallas_src>

<mosaic_0001>
module attributes {stable_mosaic.version = 11 : i64} {
  func.func @_dcn_kernel(%arg0: i32, %arg1: memref<1x4x290xf32, #tpu.memory_space<vmem>>, %arg2: memref<1x64x16xf32, #tpu.memory_space<vmem>>, %arg3: memref<1x256xf32, #tpu.memory_space<vmem>>, %arg4: memref<1x256xf32, #tpu.memory_space<vmem>>, %arg5: memref<4x64xf32, #tpu.memory_space<vmem>>, %arg6: memref<27x36xf32, #tpu.memory_space<vmem>>, %arg7: memref<27x1xf32, #tpu.memory_space<vmem>>, %arg8: memref<2x2x18xf32, #tpu.memory_space<vmem>>, %arg9: memref<1x4x256xf32, #tpu.memory_space<vmem>>) attributes {dimension_semantics = [#tpu.dimension_semantics<parallel>], iteration_bounds = array<i64: 2>, scalar_prefetch = 0 : i64, scratch_operands = 0 : i64, tpu.core_type = #tpu.core_type<tc>, window_params = [{transform_indices = @transform_0, window_bounds = array<i64: 1, 4, 290>}, {transform_indices = @transform_1, window_bounds = array<i64: 1, 64, 16>}, {pipeline_mode = #tpu.pipeline_mode<synchronous>, transform_indices = @transform_2, window_bounds = array<i64: 1, 256>}, {pipeline_mode = #tpu.pipeline_mode<synchronous>, transform_indices = @transform_3, window_bounds = array<i64: 1, 256>}, {pipeline_mode = #tpu.pipeline_mode<synchronous>, transform_indices = @transform_4, window_bounds = array<i64: 4, 64>}, {pipeline_mode = #tpu.pipeline_mode<synchronous>, transform_indices = @transform_5, window_bounds = array<i64: 27, 36>}, {pipeline_mode = #tpu.pipeline_mode<synchronous>, transform_indices = @transform_6, window_bounds = array<i64: 27, 1>}, {pipeline_mode = #tpu.pipeline_mode<synchronous>, transform_indices = @transform_7, window_bounds = array<i64: 2, 2, 18>}, {transform_indices = @transform_8, window_bounds = array<i64: 1, 4, 256>}]} {
    %c0 = arith.constant 0 : index
    %c0_0 = arith.constant 0 : index
    %c0_1 = arith.constant 0 : index
    %0 = vector.load %arg1[%c0, %c0_0, %c0_1] : memref<1x4x290xf32, #tpu.memory_space<vmem>>, vector<1x4x290xf32>
    %1 = vector.shape_cast %0 : vector<1x4x290xf32> to vector<4x290xf32>
    %c0_2 = arith.constant 0 : index
    %c0_3 = arith.constant 0 : index
    %c0_4 = arith.constant 0 : index
    %2 = vector.load %arg2[%c0_2, %c0_3, %c0_4] : memref<1x64x16xf32, #tpu.memory_space<vmem>>, vector<1x64x16xf32>
    %3 = vector.shape_cast %2 : vector<1x64x16xf32> to vector<64x16xf32>
    %c0_5 = arith.constant 0 : index
    %c0_6 = arith.constant 0 : index
    %4 = vector.load %arg3[%c0_5, %c0_6] : memref<1x256xf32, #tpu.memory_space<vmem>>, vector<1x256xf32>
    %c0_7 = arith.constant 0 : index
    %c0_8 = arith.constant 0 : index
    %5 = vector.load %arg4[%c0_7, %c0_8] : memref<1x256xf32, #tpu.memory_space<vmem>>, vector<1x256xf32>
    %c0_9 = arith.constant 0 : index
    %c0_10 = arith.constant 0 : index
    %6 = vector.load %arg5[%c0_9, %c0_10] : memref<4x64xf32, #tpu.memory_space<vmem>>, vector<4x64xf32>
    %7 = vector.extract_strided_slice %1 {offsets = [0, 0], sizes = [4, 256], strides = [1, 1]} : vector<4x290xf32> to vector<4x256xf32>
    %cst = arith.constant -1.000000e+00 : f32
    %8 = vector.broadcast %cst : f32 to vector<1x256xf32>
    %9 = arith.addf %4, %8 : vector<1x256xf32>
    %cst_11 = arith.constant 0.000000e+00 : f32
    %10 = vector.broadcast %cst_11 : f32 to vector<1x256xf32>
    %11 = arith.cmpf oge, %9, %10 : vector<1x256xf32>
    %cst_12 = arith.constant -1.000000e+00 : f32
    %12 = vector.broadcast %cst_12 : f32 to vector<1x256xf32>
    %13 = arith.addf %4, %12 : vector<1x256xf32>
    %cst_13 = arith.constant 1.500000e+01 : f32
    %14 = vector.broadcast %cst_13 : f32 to vector<1x256xf32>
    %15 = arith.cmpf ole, %13, %14 : vector<1x256xf32>
    %16 = arith.andi %11, %15 : vector<1x256xi1>
    %cst_14 = arith.constant -1.000000e+00 : f32
    %17 = vector.broadcast %cst_14 : f32 to vector<1x256xf32>
    %18 = arith.addf %5, %17 : vector<1x256xf32>
    %cst_15 = arith.constant 0.000000e+00 : f32
    %19 = vector.broadcast %cst_15 : f32 to vector<1x256xf32>
    %20 = arith.cmpf oge, %18, %19 : vector<1x256xf32>
    %cst_16 = arith.constant -1.000000e+00 : f32
    %21 = vector.broadcast %cst_16 : f32 to vector<1x256xf32>
    %22 = arith.addf %5, %21 : vector<1x256xf32>
    %cst_17 = arith.constant 1.500000e+01 : f32
    %23 = vector.broadcast %cst_17 : f32 to vector<1x256xf32>
    %24 = arith.cmpf ole, %22, %23 : vector<1x256xf32>
    %25 = arith.andi %20, %24 : vector<1x256xi1>
    %26 = arith.andi %16, %25 : vector<1x256xi1>
    %cst_18 = arith.constant 0.000000e+00 : f32
    %27 = vector.shape_cast %26 : vector<1x256xi1> to vector<1x256xi1>
    %28 = vector.broadcast %27 : vector<1x256xi1> to vector<4x256xi1>
    %29 = vector.broadcast %cst_18 : f32 to vector<4x256xf32>
    %30 = arith.select %28, %7, %29 : vector<4x256xi1>, vector<4x256xf32>
    %31 = vector.extract_strided_slice %1 {offsets = [0, 1], sizes = [4, 256], strides = [1, 1]} : vector<4x290xf32> to vector<4x256xf32>
    %cst_19 = arith.constant -1.000000e+00 : f32
    %32 = vector.broadcast %cst_19 : f32 to vector<1x256xf32>
    %33 = arith.addf %4, %32 : vector<1x256xf32>
    %cst_20 = arith.constant 0.000000e+00 : f32
    %34 = vector.broadcast %cst_20 : f32 to vector<1x256xf32>
    %35 = arith.cmpf oge, %33, %34 : vector<1x256xf32>
    %cst_21 = arith.constant -1.000000e+00 : f32
    %36 = vector.broadcast %cst_21 : f32 to vector<1x256xf32>
    %37 = arith.addf %4, %36 : vector<1x256xf32>
    %cst_22 = arith.constant 1.500000e+01 : f32
    %38 = vector.broadcast %cst_22 : f32 to vector<1x256xf32>
    %39 = arith.cmpf ole, %37, %38 : vector<1x256xf32>
    %40 = arith.andi %35, %39 : vector<1x256xi1>
    %cst_23 = arith.constant 0.000000e+00 : f32
    %41 = vector.broadcast %cst_23 : f32 to vector<1x256xf32>
    %42 = arith.addf %5, %41 : vector<1x256xf32>
    %cst_24 = arith.constant 0.000000e+00 : f32
    %43 = vector.broadcast %cst_24 : f32 to vector<1x256xf32>
    %44 = arith.cmpf oge, %42, %43 : vector<1x256xf32>
    %cst_25 = arith.constant 0.000000e+00 : f32
    %45 = vector.broadcast %cst_25 : f32 to vector<1x256xf32>
    %46 = arith.addf %5, %45 : vector<1x256xf32>
    %cst_26 = arith.constant 1.500000e+01 : f32
    %47 = vector.broadcast %cst_26 : f32 to vector<1x256xf32>
    %48 = arith.cmpf ole, %46, %47 : vector<1x256xf32>
    %49 = arith.andi %44, %48 : vector<1x256xi1>
    %50 = arith.andi %40, %49 : vector<1x256xi1>
    %cst_27 = arith.constant 0.000000e+00 : f32
    %51 = vector.shape_cast %50 : vector<1x256xi1> to vector<1x256xi1>
    %52 = vector.broadcast %51 : vector<1x256xi1> to vector<4x256xi1>
    %53 = vector.broadcast %cst_27 : f32 to vector<4x256xf32>
    %54 = arith.select %52, %31, %53 : vector<4x256xi1>, vector<4x256xf32>
    %55 = vector.extract_strided_slice %1 {offsets = [0, 2], sizes = [4, 256], strides = [1, 1]} : vector<4x290xf32> to vector<4x256xf32>
    %cst_28 = arith.constant -1.000000e+00 : f32
    %56 = vector.broadcast %cst_28 : f32 to vector<1x256xf32>
    %57 = arith.addf %4, %56 : vector<1x256xf32>
    %cst_29 = arith.constant 0.000000e+00 : f32
    %58 = vector.broadcast %cst_29 : f32 to vector<1x256xf32>
    %59 = arith.cmpf oge, %57, %58 : vector<1x256xf32>
    %cst_30 = arith.constant -1.000000e+00 : f32
    %60 = vector.broadcast %cst_30 : f32 to vector<1x256xf32>
    %61 = arith.addf %4, %60 : vector<1x256xf32>
    %cst_31 = arith.constant 1.500000e+01 : f32
    %62 = vector.broadcast %cst_31 : f32 to vector<1x256xf32>
    %63 = arith.cmpf ole, %61, %62 : vector<1x256xf32>
    %64 = arith.andi %59, %63 : vector<1x256xi1>
    %cst_32 = arith.constant 1.000000e+00 : f32
    %65 = vector.broadcast %cst_32 : f32 to vector<1x256xf32>
    %66 = arith.addf %5, %65 : vector<1x256xf32>
    %cst_33 = arith.constant 0.000000e+00 : f32
    %67 = vector.broadcast %cst_33 : f32 to vector<1x256xf32>
    %68 = arith.cmpf oge, %66, %67 : vector<1x256xf32>
    %cst_34 = arith.constant 1.000000e+00 : f32
    %69 = vector.broadcast %cst_34 : f32 to vector<1x256xf32>
    %70 = arith.addf %5, %69 : vector<1x256xf32>
    %cst_35 = arith.constant 1.500000e+01 : f32
    %71 = vector.broadcast %cst_35 : f32 to vector<1x256xf32>
    %72 = arith.cmpf ole, %70, %71 : vector<1x256xf32>
    %73 = arith.andi %68, %72 : vector<1x256xi1>
    %74 = arith.andi %64, %73 : vector<1x256xi1>
    %cst_36 = arith.constant 0.000000e+00 : f32
    %75 = vector.shape_cast %74 : vector<1x256xi1> to vector<1x256xi1>
    %76 = vector.broadcast %75 : vector<1x256xi1> to vector<4x256xi1>
    %77 = vector.broadcast %cst_36 : f32 to vector<4x256xf32>
    %78 = arith.select %76, %55, %77 : vector<4x256xi1>, vector<4x256xf32>
    %79 = vector.extract_strided_slice %1 {offsets = [0, 16], sizes = [4, 256], strides = [1, 1]} : vector<4x290xf32> to vector<4x256xf32>
    %cst_37 = arith.constant 0.000000e+00 : f32
    %80 = vector.broadcast %cst_37 : f32 to vector<1x256xf32>
    %81 = arith.addf %4, %80 : vector<1x256xf32>
    %cst_38 = arith.constant 0.000000e+00 : f32
    %82 = vector.broadcast %cst_38 : f32 to vector<1x256xf32>
    %83 = arith.cmpf oge, %81, %82 : vector<1x256xf32>
    %cst_39 = arith.constant 0.000000e+00 : f32
    %84 = vector.broadcast %cst_39 : f32 to vector<1x256xf32>
    %85 = arith.addf %4, %84 : vector<1x256xf32>
    %cst_40 = arith.constant 1.500000e+01 : f32
    %86 = vector.broadcast %cst_40 : f32 to vector<1x256xf32>
    %87 = arith.cmpf ole, %85, %86 : vector<1x256xf32>
    %88 = arith.andi %83, %87 : vector<1x256xi1>
    %cst_41 = arith.constant -1.000000e+00 : f32
    %89 = vector.broadcast %cst_41 : f32 to vector<1x256xf32>
    %90 = arith.addf %5, %89 : vector<1x256xf32>
    %cst_42 = arith.constant 0.000000e+00 : f32
    %91 = vector.broadcast %cst_42 : f32 to vector<1x256xf32>
    %92 = arith.cmpf oge, %90, %91 : vector<1x256xf32>
    %cst_43 = arith.constant -1.000000e+00 : f32
    %93 = vector.broadcast %cst_43 : f32 to vector<1x256xf32>
    %94 = arith.addf %5, %93 : vector<1x256xf32>
    %cst_44 = arith.constant 1.500000e+01 : f32
    %95 = vector.broadcast %cst_44 : f32 to vector<1x256xf32>
    %96 = arith.cmpf ole, %94, %95 : vector<1x256xf32>
    %97 = arith.andi %92, %96 : vector<1x256xi1>
    %98 = arith.andi %88, %97 : vector<1x256xi1>
    %cst_45 = arith.constant 0.000000e+00 : f32
    %99 = vector.shape_cast %98 : vector<1x256xi1> to vector<1x256xi1>
    %100 = vector.broadcast %99 : vector<1x256xi1> to vector<4x256xi1>
    %101 = vector.broadcast %cst_45 : f32 to vector<4x256xf32>
    %102 = arith.select %100, %79, %101 : vector<4x256xi1>, vector<4x256xf32>
    %103 = vector.extract_strided_slice %1 {offsets = [0, 17], sizes = [4, 256], strides = [1, 1]} : vector<4x290xf32> to vector<4x256xf32>
    %cst_46 = arith.constant 0.000000e+00 : f32
    %104 = vector.broadcast %cst_46 : f32 to vector<1x256xf32>
    %105 = arith.addf %4, %104 : vector<1x256xf32>
    %cst_47 = arith.constant 0.000000e+00 : f32
    %106 = vector.broadcast %cst_47 : f32 to vector<1x256xf32>
    %107 = arith.cmpf oge, %105, %106 : vector<1x256xf32>
    %cst_48 = arith.constant 0.000000e+00 : f32
    %108 = vector.broadcast %cst_48 : f32 to vector<1x256xf32>
    %109 = arith.addf %4, %108 : vector<1x256xf32>
    %cst_49 = arith.constant 1.500000e+01 : f32
    %110 = vector.broadcast %cst_49 : f32 to vector<1x256xf32>
    %111 = arith.cmpf ole, %109, %110 : vector<1x256xf32>
    %112 = arith.andi %107, %111 : vector<1x256xi1>
    %cst_50 = arith.constant 0.000000e+00 : f32
    %113 = vector.broadcast %cst_50 : f32 to vector<1x256xf32>
    %114 = arith.addf %5, %113 : vector<1x256xf32>
    %cst_51 = arith.constant 0.000000e+00 : f32
    %115 = vector.broadcast %cst_51 : f32 to vector<1x256xf32>
    %116 = arith.cmpf oge, %114, %115 : vector<1x256xf32>
    %cst_52 = arith.constant 0.000000e+00 : f32
    %117 = vector.broadcast %cst_52 : f32 to vector<1x256xf32>
    %118 = arith.addf %5, %117 : vector<1x256xf32>
    %cst_53 = arith.constant 1.500000e+01 : f32
    %119 = vector.broadcast %cst_53 : f32 to vector<1x256xf32>
    %120 = arith.cmpf ole, %118, %119 : vector<1x256xf32>
    %121 = arith.andi %116, %120 : vector<1x256xi1>
    %122 = arith.andi %112, %121 : vector<1x256xi1>
    %cst_54 = arith.constant 0.000000e+00 : f32
    %123 = vector.shape_cast %122 : vector<1x256xi1> to vector<1x256xi1>
    %124 = vector.broadcast %123 : vector<1x256xi1> to vector<4x256xi1>
    %125 = vector.broadcast %cst_54 : f32 to vector<4x256xf32>
    %126 = arith.select %124, %103, %125 : vector<4x256xi1>, vector<4x256xf32>
    %127 = vector.extract_strided_slice %1 {offsets = [0, 18], sizes = [4, 256], strides = [1, 1]} : vector<4x290xf32> to vector<4x256xf32>
    %cst_55 = arith.constant 0.000000e+00 : f32
    %128 = vector.broadcast %cst_55 : f32 to vector<1x256xf32>
    %129 = arith.addf %4, %128 : vector<1x256xf32>
    %cst_56 = arith.constant 0.000000e+00 : f32
    %130 = vector.broadcast %cst_56 : f32 to vector<1x256xf32>
    %131 = arith.cmpf oge, %129, %130 : vector<1x256xf32>
    %cst_57 = arith.constant 0.000000e+00 : f32
    %132 = vector.broadcast %cst_57 : f32 to vector<1x256xf32>
    %133 = arith.addf %4, %132 : vector<1x256xf32>
    %cst_58 = arith.constant 1.500000e+01 : f32
    %134 = vector.broadcast %cst_58 : f32 to vector<1x256xf32>
    %135 = arith.cmpf ole, %133, %134 : vector<1x256xf32>
    %136 = arith.andi %131, %135 : vector<1x256xi1>
    %cst_59 = arith.constant 1.000000e+00 : f32
    %137 = vector.broadcast %cst_59 : f32 to vector<1x256xf32>
    %138 = arith.addf %5, %137 : vector<1x256xf32>
    %cst_60 = arith.constant 0.000000e+00 : f32
    %139 = vector.broadcast %cst_60 : f32 to vector<1x256xf32>
    %140 = arith.cmpf oge, %138, %139 : vector<1x256xf32>
    %cst_61 = arith.constant 1.000000e+00 : f32
    %141 = vector.broadcast %cst_61 : f32 to vector<1x256xf32>
    %142 = arith.addf %5, %141 : vector<1x256xf32>
    %cst_62 = arith.constant 1.500000e+01 : f32
    %143 = vector.broadcast %cst_62 : f32 to vector<1x256xf32>
    %144 = arith.cmpf ole, %142, %143 : vector<1x256xf32>
    %145 = arith.andi %140, %144 : vector<1x256xi1>
    %146 = arith.andi %136, %145 : vector<1x256xi1>
    %cst_63 = arith.constant 0.000000e+00 : f32
    %147 = vector.shape_cast %146 : vector<1x256xi1> to vector<1x256xi1>
    %148 = vector.broadcast %147 : vector<1x256xi1> to vector<4x256xi1>
    %149 = vector.broadcast %cst_63 : f32 to vector<4x256xf32>
    %150 = arith.select %148, %127, %149 : vector<4x256xi1>, vector<4x256xf32>
    %151 = vector.extract_strided_slice %1 {offsets = [0, 32], sizes = [4, 256], strides = [1, 1]} : vector<4x290xf32> to vector<4x256xf32>
    %cst_64 = arith.constant 1.000000e+00 : f32
    %152 = vector.broadcast %cst_64 : f32 to vector<1x256xf32>
    %153 = arith.addf %4, %152 : vector<1x256xf32>
    %cst_65 = arith.constant 0.000000e+00 : f32
    %154 = vector.broadcast %cst_65 : f32 to vector<1x256xf32>
    %155 = arith.cmpf oge, %153, %154 : vector<1x256xf32>
    %cst_66 = arith.constant 1.000000e+00 : f32
    %156 = vector.broadcast %cst_66 : f32 to vector<1x256xf32>
    %157 = arith.addf %4, %156 : vector<1x256xf32>
    %cst_67 = arith.constant 1.500000e+01 : f32
    %158 = vector.broadcast %cst_67 : f32 to vector<1x256xf32>
    %159 = arith.cmpf ole, %157, %158 : vector<1x256xf32>
    %160 = arith.andi %155, %159 : vector<1x256xi1>
    %cst_68 = arith.constant -1.000000e+00 : f32
    %161 = vector.broadcast %cst_68 : f32 to vector<1x256xf32>
    %162 = arith.addf %5, %161 : vector<1x256xf32>
    %cst_69 = arith.constant 0.000000e+00 : f32
    %163 = vector.broadcast %cst_69 : f32 to vector<1x256xf32>
    %164 = arith.cmpf oge, %162, %163 : vector<1x256xf32>
    %cst_70 = arith.constant -1.000000e+00 : f32
    %165 = vector.broadcast %cst_70 : f32 to vector<1x256xf32>
    %166 = arith.addf %5, %165 : vector<1x256xf32>
    %cst_71 = arith.constant 1.500000e+01 : f32
    %167 = vector.broadcast %cst_71 : f32 to vector<1x256xf32>
    %168 = arith.cmpf ole, %166, %167 : vector<1x256xf32>
    %169 = arith.andi %164, %168 : vector<1x256xi1>
    %170 = arith.andi %160, %169 : vector<1x256xi1>
    %cst_72 = arith.constant 0.000000e+00 : f32
    %171 = vector.shape_cast %170 : vector<1x256xi1> to vector<1x256xi1>
    %172 = vector.broadcast %171 : vector<1x256xi1> to vector<4x256xi1>
    %173 = vector.broadcast %cst_72 : f32 to vector<4x256xf32>
    %174 = arith.select %172, %151, %173 : vector<4x256xi1>, vector<4x256xf32>
    %175 = vector.extract_strided_slice %1 {offsets = [0, 33], sizes = [4, 256], strides = [1, 1]} : vector<4x290xf32> to vector<4x256xf32>
    %cst_73 = arith.constant 1.000000e+00 : f32
    %176 = vector.broadcast %cst_73 : f32 to vector<1x256xf32>
    %177 = arith.addf %4, %176 : vector<1x256xf32>
    %cst_74 = arith.constant 0.000000e+00 : f32
    %178 = vector.broadcast %cst_74 : f32 to vector<1x256xf32>
    %179 = arith.cmpf oge, %177, %178 : vector<1x256xf32>
    %cst_75 = arith.constant 1.000000e+00 : f32
    %180 = vector.broadcast %cst_75 : f32 to vector<1x256xf32>
    %181 = arith.addf %4, %180 : vector<1x256xf32>
    %cst_76 = arith.constant 1.500000e+01 : f32
    %182 = vector.broadcast %cst_76 : f32 to vector<1x256xf32>
    %183 = arith.cmpf ole, %181, %182 : vector<1x256xf32>
    %184 = arith.andi %179, %183 : vector<1x256xi1>
    %cst_77 = arith.constant 0.000000e+00 : f32
    %185 = vector.broadcast %cst_77 : f32 to vector<1x256xf32>
    %186 = arith.addf %5, %185 : vector<1x256xf32>
    %cst_78 = arith.constant 0.000000e+00 : f32
    %187 = vector.broadcast %cst_78 : f32 to vector<1x256xf32>
    %188 = arith.cmpf oge, %186, %187 : vector<1x256xf32>
    %cst_79 = arith.constant 0.000000e+00 : f32
    %189 = vector.broadcast %cst_79 : f32 to vector<1x256xf32>
    %190 = arith.addf %5, %189 : vector<1x256xf32>
    %cst_80 = arith.constant 1.500000e+01 : f32
    %191 = vector.broadcast %cst_80 : f32 to vector<1x256xf32>
    %192 = arith.cmpf ole, %190, %191 : vector<1x256xf32>
    %193 = arith.andi %188, %192 : vector<1x256xi1>
    %194 = arith.andi %184, %193 : vector<1x256xi1>
    %cst_81 = arith.constant 0.000000e+00 : f32
    %195 = vector.shape_cast %194 : vector<1x256xi1> to vector<1x256xi1>
    %196 = vector.broadcast %195 : vector<1x256xi1> to vector<4x256xi1>
    %197 = vector.broadcast %cst_81 : f32 to vector<4x256xf32>
    %198 = arith.select %196, %175, %197 : vector<4x256xi1>, vector<4x256xf32>
    %199 = vector.extract_strided_slice %1 {offsets = [0, 34], sizes = [4, 256], strides = [1, 1]} : vector<4x290xf32> to vector<4x256xf32>
    %cst_82 = arith.constant 1.000000e+00 : f32
    %200 = vector.broadcast %cst_82 : f32 to vector<1x256xf32>
    %201 = arith.addf %4, %200 : vector<1x256xf32>
    %cst_83 = arith.constant 0.000000e+00 : f32
    %202 = vector.broadcast %cst_83 : f32 to vector<1x256xf32>
    %203 = arith.cmpf oge, %201, %202 : vector<1x256xf32>
    %cst_84 = arith.constant 1.000000e+00 : f32
    %204 = vector.broadcast %cst_84 : f32 to vector<1x256xf32>
    %205 = arith.addf %4, %204 : vector<1x256xf32>
    %cst_85 = arith.constant 1.500000e+01 : f32
    %206 = vector.broadcast %cst_85 : f32 to vector<1x256xf32>
    %207 = arith.cmpf ole, %205, %206 : vector<1x256xf32>
    %208 = arith.andi %203, %207 : vector<1x256xi1>
    %cst_86 = arith.constant 1.000000e+00 : f32
    %209 = vector.broadcast %cst_86 : f32 to vector<1x256xf32>
    %210 = arith.addf %5, %209 : vector<1x256xf32>
    %cst_87 = arith.constant 0.000000e+00 : f32
    %211 = vector.broadcast %cst_87 : f32 to vector<1x256xf32>
    %212 = arith.cmpf oge, %210, %211 : vector<1x256xf32>
    %cst_88 = arith.constant 1.000000e+00 : f32
    %213 = vector.broadcast %cst_88 : f32 to vector<1x256xf32>
    %214 = arith.addf %5, %213 : vector<1x256xf32>
    %cst_89 = arith.constant 1.500000e+01 : f32
    %215 = vector.broadcast %cst_89 : f32 to vector<1x256xf32>
    %216 = arith.cmpf ole, %214, %215 : vector<1x256xf32>
    %217 = arith.andi %212, %216 : vector<1x256xi1>
    %218 = arith.andi %208, %217 : vector<1x256xi1>
    %cst_90 = arith.constant 0.000000e+00 : f32
    %219 = vector.shape_cast %218 : vector<1x256xi1> to vector<1x256xi1>
    %220 = vector.broadcast %219 : vector<1x256xi1> to vector<4x256xi1>
    %221 = vector.broadcast %cst_90 : f32 to vector<4x256xf32>
    %222 = arith.select %220, %199, %221 : vector<4x256xi1>, vector<4x256xf32>
    %223 = tpu.concatenate %30, %54, %78, %102, %126, %150, %174, %198, %222 in 0 : vector<4x256xf32>, vector<4x256xf32>, vector<4x256xf32>, vector<4x256xf32>, vector<4x256xf32>, vector<4x256xf32>, vector<4x256xf32>, vector<4x256xf32>, vector<4x256xf32> -> vector<36x256xf32>
    %c0_91 = arith.constant 0 : index
    %c0_92 = arith.constant 0 : index
    %224 = vector.load %arg6[%c0_91, %c0_92] : memref<27x36xf32, #tpu.memory_space<vmem>>, vector<27x36xf32>
    %cst_93 = arith.constant dense<0.000000e+00> : vector<27x256xf32>
    %225 = tpu.matmul %224, %223, %cst_93 {dimension_numbers = #tpu.dot_dimension_numbers<[1], [0], [0], [1], [0, 0, 1, 1], [], []>} : vector<27x36xf32>, vector<36x256xf32>, vector<27x256xf32> -> vector<27x256xf32>
    %c0_94 = arith.constant 0 : index
    %c0_95 = arith.constant 0 : index
    %226 = vector.load %arg7[%c0_94, %c0_95] : memref<27x1xf32, #tpu.memory_space<vmem>>, vector<27x1xf32>
    %227 = vector.broadcast %226 : vector<27x1xf32> to vector<27x256xf32>
    %228 = arith.addf %225, %227 : vector<27x256xf32>
    %229 = vector.extract_strided_slice %228 {offsets = [18, 0], sizes = [9, 256], strides = [1, 1]} : vector<27x256xf32> to vector<9x256xf32>
    %230 = arith.negf %229 : vector<9x256xf32>
    %231 = math.exp %230 : vector<9x256xf32>
    %cst_96 = arith.constant 1.000000e+00 : f32
    %232 = vector.broadcast %cst_96 : f32 to vector<9x256xf32>
    %233 = arith.addf %232, %231 : vector<9x256xf32>
    %234 = arith.divf %232, %233 : vector<9x256xf32>
    %235 = tpu.iota {dimensions = array<i32: 0>} : vector<16x256xi32>
    %236 = tpu.iota {dimensions = array<i32: 0>} : vector<16x256xi32>
    %237 = vector.extract_strided_slice %228 {offsets = [0, 0], sizes = [1, 256], strides = [1, 1]} : vector<27x256xf32> to vector<1x256xf32>
    %238 = vector.extract_strided_slice %228 {offsets = [1, 0], sizes = [1, 256], strides = [1, 1]} : vector<27x256xf32> to vector<1x256xf32>
    %cst_97 = arith.constant -1.000000e+00 : f32
    %239 = vector.broadcast %cst_97 : f32 to vector<1x256xf32>
    %240 = arith.addf %4, %239 : vector<1x256xf32>
    %241 = arith.addf %240, %237 : vector<1x256xf32>
    %cst_98 = arith.constant -1.000000e+00 : f32
    %242 = vector.broadcast %cst_98 : f32 to vector<1x256xf32>
    %243 = arith.addf %5, %242 : vector<1x256xf32>
    %244 = arith.addf %243, %238 : vector<1x256xf32>
    %245 = math.floor %241 : vector<1x256xf32>
    %246 = math.floor %244 : vector<1x256xf32>
    %247 = arith.subf %241, %245 : vector<1x256xf32>
    %248 = arith.subf %244, %246 : vector<1x256xf32>
    %249 = arith.fptosi %245 : vector<1x256xf32> to vector<1x256xi32>
    %250 = arith.fptosi %246 : vector<1x256xf32> to vector<1x256xi32>
    %251 = vector.broadcast %249 : vector<1x256xi32> to vector<16x256xi32>
    %252 = arith.cmpi eq, %235, %251 : vector<16x256xi32>
    %cst_99 = arith.constant 1.000000e+00 : f32
    %253 = vector.broadcast %cst_99 : f32 to vector<1x256xf32>
    %254 = arith.subf %253, %247 : vector<1x256xf32>
    %cst_100 = arith.constant 0.000000e+00 : f32
    %255 = vector.shape_cast %254 : vector<1x256xf32> to vector<1x256xf32>
    %256 = vector.broadcast %255 : vector<1x256xf32> to vector<16x256xf32>
    %257 = vector.broadcast %cst_100 : f32 to vector<16x256xf32>
    %258 = arith.select %252, %256, %257 : vector<16x256xi1>, vector<16x256xf32>
    %c1_i32 = arith.constant 1 : i32
    %259 = vector.broadcast %c1_i32 : i32 to vector<1x256xi32>
    %260 = arith.addi %249, %259 : vector<1x256xi32>
    %261 = vector.broadcast %260 : vector<1x256xi32> to vector<16x256xi32>
    %262 = arith.cmpi eq, %235, %261 : vector<16x256xi32>
    %cst_101 = arith.constant 0.000000e+00 : f32
    %263 = vector.shape_cast %247 : vector<1x256xf32> to vector<1x256xf32>
    %264 = vector.broadcast %263 : vector<1x256xf32> to vector<16x256xf32>
    %265 = vector.broadcast %cst_101 : f32 to vector<16x256xf32>
    %266 = arith.select %262, %264, %265 : vector<16x256xi1>, vector<16x256xf32>
    %267 = arith.addf %258, %266 : vector<16x256xf32>
    %268 = vector.broadcast %250 : vector<1x256xi32> to vector<16x256xi32>
    %269 = arith.cmpi eq, %236, %268 : vector<16x256xi32>
    %cst_102 = arith.constant 1.000000e+00 : f32
    %270 = vector.broadcast %cst_102 : f32 to vector<1x256xf32>
    %271 = arith.subf %270, %248 : vector<1x256xf32>
    %cst_103 = arith.constant 0.000000e+00 : f32
    %272 = vector.shape_cast %271 : vector<1x256xf32> to vector<1x256xf32>
    %273 = vector.broadcast %272 : vector<1x256xf32> to vector<16x256xf32>
    %274 = vector.broadcast %cst_103 : f32 to vector<16x256xf32>
    %275 = arith.select %269, %273, %274 : vector<16x256xi1>, vector<16x256xf32>
    %c1_i32_104 = arith.constant 1 : i32
    %276 = vector.broadcast %c1_i32_104 : i32 to vector<1x256xi32>
    %277 = arith.addi %250, %276 : vector<1x256xi32>
    %278 = vector.broadcast %277 : vector<1x256xi32> to vector<16x256xi32>
    %279 = arith.cmpi eq, %236, %278 : vector<16x256xi32>
    %cst_105 = arith.constant 0.000000e+00 : f32
    %280 = vector.shape_cast %248 : vector<1x256xf32> to vector<1x256xf32>
    %281 = vector.broadcast %280 : vector<1x256xf32> to vector<16x256xf32>
    %282 = vector.broadcast %cst_105 : f32 to vector<16x256xf32>
    %283 = arith.select %279, %281, %282 : vector<16x256xi1>, vector<16x256xf32>
    %284 = arith.addf %275, %283 : vector<16x256xf32>
    %cst_106 = arith.constant dense<0.000000e+00> : vector<64x256xf32>
    %285 = tpu.matmul %3, %284, %cst_106 {dimension_numbers = #tpu.dot_dimension_numbers<[1], [0], [0], [1], [0, 0, 1, 1], [], []>} : vector<64x16xf32>, vector<16x256xf32>, vector<64x256xf32> -> vector<64x256xf32>
    %286 = tpu.concatenate %267, %267, %267, %267 in 0 : vector<16x256xf32>, vector<16x256xf32>, vector<16x256xf32>, vector<16x256xf32> -> vector<64x256xf32>
    %287 = arith.mulf %285, %286 : vector<64x256xf32>
    %cst_107 = arith.constant dense<0.000000e+00> : vector<4x256xf32>
    %288 = tpu.matmul %6, %287, %cst_107 {dimension_numbers = #tpu.dot_dimension_numbers<[1], [0], [0], [1], [0, 0, 1, 1], [], []>} : vector<4x64xf32>, vector<64x256xf32>, vector<4x256xf32> -> vector<4x256xf32>
    %289 = vector.extract_strided_slice %234 {offsets = [0, 0], sizes = [1, 256], strides = [1, 1]} : vector<9x256xf32> to vector<1x256xf32>
    %290 = vector.broadcast %289 : vector<1x256xf32> to vector<4x256xf32>
    %291 = arith.mulf %288, %290 : vector<4x256xf32>
    %292 = vector.extract_strided_slice %228 {offsets = [2, 0], sizes = [1, 256], strides = [1, 1]} : vector<27x256xf32> to vector<1x256xf32>
    %293 = vector.extract_strided_slice %228 {offsets = [3, 0], sizes = [1, 256], strides = [1, 1]} : vector<27x256xf32> to vector<1x256xf32>
    %cst_108 = arith.constant -1.000000e+00 : f32
    %294 = vector.broadcast %cst_108 : f32 to vector<1x256xf32>
    %295 = arith.addf %4, %294 : vector<1x256xf32>
    %296 = arith.addf %295, %292 : vector<1x256xf32>
    %cst_109 = arith.constant 0.000000e+00 : f32
    %297 = vector.broadcast %cst_109 : f32 to vector<1x256xf32>
    %298 = arith.addf %5, %297 : vector<1x256xf32>
    %299 = arith.addf %298, %293 : vector<1x256xf32>
    %300 = math.floor %296 : vector<1x256xf32>
    %301 = math.floor %299 : vector<1x256xf32>
    %302 = arith.subf %296, %300 : vector<1x256xf32>
    %303 = arith.subf %299, %301 : vector<1x256xf32>
    %304 = arith.fptosi %300 : vector<1x256xf32> to vector<1x256xi32>
    %305 = arith.fptosi %301 : vector<1x256xf32> to vector<1x256xi32>
    %306 = vector.broadcast %304 : vector<1x256xi32> to vector<16x256xi32>
    %307 = arith.cmpi eq, %235, %306 : vector<16x256xi32>
    %cst_110 = arith.constant 1.000000e+00 : f32
    %308 = vector.broadcast %cst_110 : f32 to vector<1x256xf32>
    %309 = arith.subf %308, %302 : vector<1x256xf32>
    %cst_111 = arith.constant 0.000000e+00 : f32
    %310 = vector.shape_cast %309 : vector<1x256xf32> to vector<1x256xf32>
    %311 = vector.broadcast %310 : vector<1x256xf32> to vector<16x256xf32>
    %312 = vector.broadcast %cst_111 : f32 to vector<16x256xf32>
    %313 = arith.select %307, %311, %312 : vector<16x256xi1>, vector<16x256xf32>
    %c1_i32_112 = arith.constant 1 : i32
    %314 = vector.broadcast %c1_i32_112 : i32 to vector<1x256xi32>
    %315 = arith.addi %304, %314 : vector<1x256xi32>
    %316 = vector.broadcast %315 : vector<1x256xi32> to vector<16x256xi32>
    %317 = arith.cmpi eq, %235, %316 : vector<16x256xi32>
    %cst_113 = arith.constant 0.000000e+00 : f32
    %318 = vector.shape_cast %302 : vector<1x256xf32> to vector<1x256xf32>
    %319 = vector.broadcast %318 : vector<1x256xf32> to vector<16x256xf32>
    %320 = vector.broadcast %cst_113 : f32 to vector<16x256xf32>
    %321 = arith.select %317, %319, %320 : vector<16x256xi1>, vector<16x256xf32>
    %322 = arith.addf %313, %321 : vector<16x256xf32>
    %323 = vector.broadcast %305 : vector<1x256xi32> to vector<16x256xi32>
    %324 = arith.cmpi eq, %236, %323 : vector<16x256xi32>
    %cst_114 = arith.constant 1.000000e+00 : f32
    %325 = vector.broadcast %cst_114 : f32 to vector<1x256xf32>
    %326 = arith.subf %325, %303 : vector<1x256xf32>
    %cst_115 = arith.constant 0.000000e+00 : f32
    %327 = vector.shape_cast %326 : vector<1x256xf32> to vector<1x256xf32>
    %328 = vector.broadcast %327 : vector<1x256xf32> to vector<16x256xf32>
    %329 = vector.broadcast %cst_115 : f32 to vector<16x256xf32>
    %330 = arith.select %324, %328, %329 : vector<16x256xi1>, vector<16x256xf32>
    %c1_i32_116 = arith.constant 1 : i32
    %331 = vector.broadcast %c1_i32_116 : i32 to vector<1x256xi32>
    %332 = arith.addi %305, %331 : vector<1x256xi32>
    %333 = vector.broadcast %332 : vector<1x256xi32> to vector<16x256xi32>
    %334 = arith.cmpi eq, %236, %333 : vector<16x256xi32>
    %cst_117 = arith.constant 0.000000e+00 : f32
    %335 = vector.shape_cast %303 : vector<1x256xf32> to vector<1x256xf32>
    %336 = vector.broadcast %335 : vector<1x256xf32> to vector<16x256xf32>
    %337 = vector.broadcast %cst_117 : f32 to vector<16x256xf32>
    %338 = arith.select %334, %336, %337 : vector<16x256xi1>, vector<16x256xf32>
    %339 = arith.addf %330, %338 : vector<16x256xf32>
    %cst_118 = arith.constant dense<0.000000e+00> : vector<64x256xf32>
    %340 = tpu.matmul %3, %339, %cst_118 {dimension_numbers = #tpu.dot_dimension_numbers<[1], [0], [0], [1], [0, 0, 1, 1], [], []>} : vector<64x16xf32>, vector<16x256xf32>, vector<64x256xf32> -> vector<64x256xf32>
    %341 = tpu.concatenate %322, %322, %322, %322 in 0 : vector<16x256xf32>, vector<16x256xf32>, vector<16x256xf32>, vector<16x256xf32> -> vector<64x256xf32>
    %342 = arith.mulf %340, %341 : vector<64x256xf32>
    %cst_119 = arith.constant dense<0.000000e+00> : vector<4x256xf32>
    %343 = tpu.matmul %6, %342, %cst_119 {dimension_numbers = #tpu.dot_dimension_numbers<[1], [0], [0], [1], [0, 0, 1, 1], [], []>} : vector<4x64xf32>, vector<64x256xf32>, vector<4x256xf32> -> vector<4x256xf32>
    %344 = vector.extract_strided_slice %234 {offsets = [1, 0], sizes = [1, 256], strides = [1, 1]} : vector<9x256xf32> to vector<1x256xf32>
    %345 = vector.broadcast %344 : vector<1x256xf32> to vector<4x256xf32>
    %346 = arith.mulf %343, %345 : vector<4x256xf32>
    %347 = vector.extract_strided_slice %228 {offsets = [4, 0], sizes = [1, 256], strides = [1, 1]} : vector<27x256xf32> to vector<1x256xf32>
    %348 = vector.extract_strided_slice %228 {offsets = [5, 0], sizes = [1, 256], strides = [1, 1]} : vector<27x256xf32> to vector<1x256xf32>
    %cst_120 = arith.constant -1.000000e+00 : f32
    %349 = vector.broadcast %cst_120 : f32 to vector<1x256xf32>
    %350 = arith.addf %4, %349 : vector<1x256xf32>
    %351 = arith.addf %350, %347 : vector<1x256xf32>
    %cst_121 = arith.constant 1.000000e+00 : f32
    %352 = vector.broadcast %cst_121 : f32 to vector<1x256xf32>
    %353 = arith.addf %5, %352 : vector<1x256xf32>
    %354 = arith.addf %353, %348 : vector<1x256xf32>
    %355 = math.floor %351 : vector<1x256xf32>
    %356 = math.floor %354 : vector<1x256xf32>
    %357 = arith.subf %351, %355 : vector<1x256xf32>
    %358 = arith.subf %354, %356 : vector<1x256xf32>
    %359 = arith.fptosi %355 : vector<1x256xf32> to vector<1x256xi32>
    %360 = arith.fptosi %356 : vector<1x256xf32> to vector<1x256xi32>
    %361 = vector.broadcast %359 : vector<1x256xi32> to vector<16x256xi32>
    %362 = arith.cmpi eq, %235, %361 : vector<16x256xi32>
    %cst_122 = arith.constant 1.000000e+00 : f32
    %363 = vector.broadcast %cst_122 : f32 to vector<1x256xf32>
    %364 = arith.subf %363, %357 : vector<1x256xf32>
    %cst_123 = arith.constant 0.000000e+00 : f32
    %365 = vector.shape_cast %364 : vector<1x256xf32> to vector<1x256xf32>
    %366 = vector.broadcast %365 : vector<1x256xf32> to vector<16x256xf32>
    %367 = vector.broadcast %cst_123 : f32 to vector<16x256xf32>
    %368 = arith.select %362, %366, %367 : vector<16x256xi1>, vector<16x256xf32>
    %c1_i32_124 = arith.constant 1 : i32
    %369 = vector.broadcast %c1_i32_124 : i32 to vector<1x256xi32>
    %370 = arith.addi %359, %369 : vector<1x256xi32>
    %371 = vector.broadcast %370 : vector<1x256xi32> to vector<16x256xi32>
    %372 = arith.cmpi eq, %235, %371 : vector<16x256xi32>
    %cst_125 = arith.constant 0.000000e+00 : f32
    %373 = vector.shape_cast %357 : vector<1x256xf32> to vector<1x256xf32>
    %374 = vector.broadcast %373 : vector<1x256xf32> to vector<16x256xf32>
    %375 = vector.broadcast %cst_125 : f32 to vector<16x256xf32>
    %376 = arith.select %372, %374, %375 : vector<16x256xi1>, vector<16x256xf32>
    %377 = arith.addf %368, %376 : vector<16x256xf32>
    %378 = vector.broadcast %360 : vector<1x256xi32> to vector<16x256xi32>
    %379 = arith.cmpi eq, %236, %378 : vector<16x256xi32>
    %cst_126 = arith.constant 1.000000e+00 : f32
    %380 = vector.broadcast %cst_126 : f32 to vector<1x256xf32>
    %381 = arith.subf %380, %358 : vector<1x256xf32>
    %cst_127 = arith.constant 0.000000e+00 : f32
    %382 = vector.shape_cast %381 : vector<1x256xf32> to vector<1x256xf32>
    %383 = vector.broadcast %382 : vector<1x256xf32> to vector<16x256xf32>
    %384 = vector.broadcast %cst_127 : f32 to vector<16x256xf32>
    %385 = arith.select %379, %383, %384 : vector<16x256xi1>, vector<16x256xf32>
    %c1_i32_128 = arith.constant 1 : i32
    %386 = vector.broadcast %c1_i32_128 : i32 to vector<1x256xi32>
    %387 = arith.addi %360, %386 : vector<1x256xi32>
    %388 = vector.broadcast %387 : vector<1x256xi32> to vector<16x256xi32>
    %389 = arith.cmpi eq, %236, %388 : vector<16x256xi32>
    %cst_129 = arith.constant 0.000000e+00 : f32
    %390 = vector.shape_cast %358 : vector<1x256xf32> to vector<1x256xf32>
    %391 = vector.broadcast %390 : vector<1x256xf32> to vector<16x256xf32>
    %392 = vector.broadcast %cst_129 : f32 to vector<16x256xf32>
    %393 = arith.select %389, %391, %392 : vector<16x256xi1>, vector<16x256xf32>
    %394 = arith.addf %385, %393 : vector<16x256xf32>
    %cst_130 = arith.constant dense<0.000000e+00> : vector<64x256xf32>
    %395 = tpu.matmul %3, %394, %cst_130 {dimension_numbers = #tpu.dot_dimension_numbers<[1], [0], [0], [1], [0, 0, 1, 1], [], []>} : vector<64x16xf32>, vector<16x256xf32>, vector<64x256xf32> -> vector<64x256xf32>
    %396 = tpu.concatenate %377, %377, %377, %377 in 0 : vector<16x256xf32>, vector<16x256xf32>, vector<16x256xf32>, vector<16x256xf32> -> vector<64x256xf32>
    %397 = arith.mulf %395, %396 : vector<64x256xf32>
    %cst_131 = arith.constant dense<0.000000e+00> : vector<4x256xf32>
    %398 = tpu.matmul %6, %397, %cst_131 {dimension_numbers = #tpu.dot_dimension_numbers<[1], [0], [0], [1], [0, 0, 1, 1], [], []>} : vector<4x64xf32>, vector<64x256xf32>, vector<4x256xf32> -> vector<4x256xf32>
    %399 = vector.extract_strided_slice %234 {offsets = [2, 0], sizes = [1, 256], strides = [1, 1]} : vector<9x256xf32> to vector<1x256xf32>
    %400 = vector.broadcast %399 : vector<1x256xf32> to vector<4x256xf32>
    %401 = arith.mulf %398, %400 : vector<4x256xf32>
    %402 = vector.extract_strided_slice %228 {offsets = [6, 0], sizes = [1, 256], strides = [1, 1]} : vector<27x256xf32> to vector<1x256xf32>
    %403 = vector.extract_strided_slice %228 {offsets = [7, 0], sizes = [1, 256], strides = [1, 1]} : vector<27x256xf32> to vector<1x256xf32>
    %cst_132 = arith.constant 0.000000e+00 : f32
    %404 = vector.broadcast %cst_132 : f32 to vector<1x256xf32>
    %405 = arith.addf %4, %404 : vector<1x256xf32>
    %406 = arith.addf %405, %402 : vector<1x256xf32>
    %cst_133 = arith.constant -1.000000e+00 : f32
    %407 = vector.broadcast %cst_133 : f32 to vector<1x256xf32>
    %408 = arith.addf %5, %407 : vector<1x256xf32>
    %409 = arith.addf %408, %403 : vector<1x256xf32>
    %410 = math.floor %406 : vector<1x256xf32>
    %411 = math.floor %409 : vector<1x256xf32>
    %412 = arith.subf %406, %410 : vector<1x256xf32>
    %413 = arith.subf %409, %411 : vector<1x256xf32>
    %414 = arith.fptosi %410 : vector<1x256xf32> to vector<1x256xi32>
    %415 = arith.fptosi %411 : vector<1x256xf32> to vector<1x256xi32>
    %416 = vector.broadcast %414 : vector<1x256xi32> to vector<16x256xi32>
    %417 = arith.cmpi eq, %235, %416 : vector<16x256xi32>
    %cst_134 = arith.constant 1.000000e+00 : f32
    %418 = vector.broadcast %cst_134 : f32 to vector<1x256xf32>
    %419 = arith.subf %418, %412 : vector<1x256xf32>
    %cst_135 = arith.constant 0.000000e+00 : f32
    %420 = vector.shape_cast %419 : vector<1x256xf32> to vector<1x256xf32>
    %421 = vector.broadcast %420 : vector<1x256xf32> to vector<16x256xf32>
    %422 = vector.broadcast %cst_135 : f32 to vector<16x256xf32>
    %423 = arith.select %417, %421, %422 : vector<16x256xi1>, vector<16x256xf32>
    %c1_i32_136 = arith.constant 1 : i32
    %424 = vector.broadcast %c1_i32_136 : i32 to vector<1x256xi32>
    %425 = arith.addi %414, %424 : vector<1x256xi32>
    %426 = vector.broadcast %425 : vector<1x256xi32> to vector<16x256xi32>
    %427 = arith.cmpi eq, %235, %426 : vector<16x256xi32>
    %cst_137 = arith.constant 0.000000e+00 : f32
    %428 = vector.shape_cast %412 : vector<1x256xf32> to vector<1x256xf32>
    %429 = vector.broadcast %428 : vector<1x256xf32> to vector<16x256xf32>
    %430 = vector.broadcast %cst_137 : f32 to vector<16x256xf32>
    %431 = arith.select %427, %429, %430 : vector<16x256xi1>, vector<16x256xf32>
    %432 = arith.addf %423, %431 : vector<16x256xf32>
    %433 = vector.broadcast %415 : vector<1x256xi32> to vector<16x256xi32>
    %434 = arith.cmpi eq, %236, %433 : vector<16x256xi32>
    %cst_138 = arith.constant 1.000000e+00 : f32
    %435 = vector.broadcast %cst_138 : f32 to vector<1x256xf32>
    %436 = arith.subf %435, %413 : vector<1x256xf32>
    %cst_139 = arith.constant 0.000000e+00 : f32
    %437 = vector.shape_cast %436 : vector<1x256xf32> to vector<1x256xf32>
    %438 = vector.broadcast %437 : vector<1x256xf32> to vector<16x256xf32>
    %439 = vector.broadcast %cst_139 : f32 to vector<16x256xf32>
    %440 = arith.select %434, %438, %439 : vector<16x256xi1>, vector<16x256xf32>
    %c1_i32_140 = arith.constant 1 : i32
    %441 = vector.broadcast %c1_i32_140 : i32 to vector<1x256xi32>
    %442 = arith.addi %415, %441 : vector<1x256xi32>
    %443 = vector.broadcast %442 : vector<1x256xi32> to vector<16x256xi32>
    %444 = arith.cmpi eq, %236, %443 : vector<16x256xi32>
    %cst_141 = arith.constant 0.000000e+00 : f32
    %445 = vector.shape_cast %413 : vector<1x256xf32> to vector<1x256xf32>
    %446 = vector.broadcast %445 : vector<1x256xf32> to vector<16x256xf32>
    %447 = vector.broadcast %cst_141 : f32 to vector<16x256xf32>
    %448 = arith.select %444, %446, %447 : vector<16x256xi1>, vector<16x256xf32>
    %449 = arith.addf %440, %448 : vector<16x256xf32>
    %cst_142 = arith.constant dense<0.000000e+00> : vector<64x256xf32>
    %450 = tpu.matmul %3, %449, %cst_142 {dimension_numbers = #tpu.dot_dimension_numbers<[1], [0], [0], [1], [0, 0, 1, 1], [], []>} : vector<64x16xf32>, vector<16x256xf32>, vector<64x256xf32> -> vector<64x256xf32>
    %451 = tpu.concatenate %432, %432, %432, %432 in 0 : vector<16x256xf32>, vector<16x256xf32>, vector<16x256xf32>, vector<16x256xf32> -> vector<64x256xf32>
    %452 = arith.mulf %450, %451 : vector<64x256xf32>
    %cst_143 = arith.constant dense<0.000000e+00> : vector<4x256xf32>
    %453 = tpu.matmul %6, %452, %cst_143 {dimension_numbers = #tpu.dot_dimension_numbers<[1], [0], [0], [1], [0, 0, 1, 1], [], []>} : vector<4x64xf32>, vector<64x256xf32>, vector<4x256xf32> -> vector<4x256xf32>
    %454 = vector.extract_strided_slice %234 {offsets = [3, 0], sizes = [1, 256], strides = [1, 1]} : vector<9x256xf32> to vector<1x256xf32>
    %455 = vector.broadcast %454 : vector<1x256xf32> to vector<4x256xf32>
    %456 = arith.mulf %453, %455 : vector<4x256xf32>
    %457 = vector.extract_strided_slice %228 {offsets = [8, 0], sizes = [1, 256], strides = [1, 1]} : vector<27x256xf32> to vector<1x256xf32>
    %458 = vector.extract_strided_slice %228 {offsets = [9, 0], sizes = [1, 256], strides = [1, 1]} : vector<27x256xf32> to vector<1x256xf32>
    %cst_144 = arith.constant 0.000000e+00 : f32
    %459 = vector.broadcast %cst_144 : f32 to vector<1x256xf32>
    %460 = arith.addf %4, %459 : vector<1x256xf32>
    %461 = arith.addf %460, %457 : vector<1x256xf32>
    %cst_145 = arith.constant 0.000000e+00 : f32
    %462 = vector.broadcast %cst_145 : f32 to vector<1x256xf32>
    %463 = arith.addf %5, %462 : vector<1x256xf32>
    %464 = arith.addf %463, %458 : vector<1x256xf32>
    %465 = math.floor %461 : vector<1x256xf32>
    %466 = math.floor %464 : vector<1x256xf32>
    %467 = arith.subf %461, %465 : vector<1x256xf32>
    %468 = arith.subf %464, %466 : vector<1x256xf32>
    %469 = arith.fptosi %465 : vector<1x256xf32> to vector<1x256xi32>
    %470 = arith.fptosi %466 : vector<1x256xf32> to vector<1x256xi32>
    %471 = vector.broadcast %469 : vector<1x256xi32> to vector<16x256xi32>
    %472 = arith.cmpi eq, %235, %471 : vector<16x256xi32>
    %cst_146 = arith.constant 1.000000e+00 : f32
    %473 = vector.broadcast %cst_146 : f32 to vector<1x256xf32>
    %474 = arith.subf %473, %467 : vector<1x256xf32>
    %cst_147 = arith.constant 0.000000e+00 : f32
    %475 = vector.shape_cast %474 : vector<1x256xf32> to vector<1x256xf32>
    %476 = vector.broadcast %475 : vector<1x256xf32> to vector<16x256xf32>
    %477 = vector.broadcast %cst_147 : f32 to vector<16x256xf32>
    %478 = arith.select %472, %476, %477 : vector<16x256xi1>, vector<16x256xf32>
    %c1_i32_148 = arith.constant 1 : i32
    %479 = vector.broadcast %c1_i32_148 : i32 to vector<1x256xi32>
    %480 = arith.addi %469, %479 : vector<1x256xi32>
    %481 = vector.broadcast %480 : vector<1x256xi32> to vector<16x256xi32>
    %482 = arith.cmpi eq, %235, %481 : vector<16x256xi32>
    %cst_149 = arith.constant 0.000000e+00 : f32
    %483 = vector.shape_cast %467 : vector<1x256xf32> to vector<1x256xf32>
    %484 = vector.broadcast %483 : vector<1x256xf32> to vector<16x256xf32>
    %485 = vector.broadcast %cst_149 : f32 to vector<16x256xf32>
    %486 = arith.select %482, %484, %485 : vector<16x256xi1>, vector<16x256xf32>
    %487 = arith.addf %478, %486 : vector<16x256xf32>
    %488 = vector.broadcast %470 : vector<1x256xi32> to vector<16x256xi32>
    %489 = arith.cmpi eq, %236, %488 : vector<16x256xi32>
    %cst_150 = arith.constant 1.000000e+00 : f32
    %490 = vector.broadcast %cst_150 : f32 to vector<1x256xf32>
    %491 = arith.subf %490, %468 : vector<1x256xf32>
    %cst_151 = arith.constant 0.000000e+00 : f32
    %492 = vector.shape_cast %491 : vector<1x256xf32> to vector<1x256xf32>
    %493 = vector.broadcast %492 : vector<1x256xf32> to vector<16x256xf32>
    %494 = vector.broadcast %cst_151 : f32 to vector<16x256xf32>
    %495 = arith.select %489, %493, %494 : vector<16x256xi1>, vector<16x256xf32>
    %c1_i32_152 = arith.constant 1 : i32
    %496 = vector.broadcast %c1_i32_152 : i32 to vector<1x256xi32>
    %497 = arith.addi %470, %496 : vector<1x256xi32>
    %498 = vector.broadcast %497 : vector<1x256xi32> to vector<16x256xi32>
    %499 = arith.cmpi eq, %236, %498 : vector<16x256xi32>
    %cst_153 = arith.constant 0.000000e+00 : f32
    %500 = vector.shape_cast %468 : vector<1x256xf32> to vector<1x256xf32>
    %501 = vector.broadcast %500 : vector<1x256xf32> to vector<16x256xf32>
    %502 = vector.broadcast %cst_153 : f32 to vector<16x256xf32>
    %503 = arith.select %499, %501, %502 : vector<16x256xi1>, vector<16x256xf32>
    %504 = arith.addf %495, %503 : vector<16x256xf32>
    %cst_154 = arith.constant dense<0.000000e+00> : vector<64x256xf32>
    %505 = tpu.matmul %3, %504, %cst_154 {dimension_numbers = #tpu.dot_dimension_numbers<[1], [0], [0], [1], [0, 0, 1, 1], [], []>} : vector<64x16xf32>, vector<16x256xf32>, vector<64x256xf32> -> vector<64x256xf32>
    %506 = tpu.concatenate %487, %487, %487, %487 in 0 : vector<16x256xf32>, vector<16x256xf32>, vector<16x256xf32>, vector<16x256xf32> -> vector<64x256xf32>
    %507 = arith.mulf %505, %506 : vector<64x256xf32>
    %cst_155 = arith.constant dense<0.000000e+00> : vector<4x256xf32>
    %508 = tpu.matmul %6, %507, %cst_155 {dimension_numbers = #tpu.dot_dimension_numbers<[1], [0], [0], [1], [0, 0, 1, 1], [], []>} : vector<4x64xf32>, vector<64x256xf32>, vector<4x256xf32> -> vector<4x256xf32>
    %509 = vector.extract_strided_slice %234 {offsets = [4, 0], sizes = [1, 256], strides = [1, 1]} : vector<9x256xf32> to vector<1x256xf32>
    %510 = vector.broadcast %509 : vector<1x256xf32> to vector<4x256xf32>
    %511 = arith.mulf %508, %510 : vector<4x256xf32>
    %512 = vector.extract_strided_slice %228 {offsets = [10, 0], sizes = [1, 256], strides = [1, 1]} : vector<27x256xf32> to vector<1x256xf32>
    %513 = vector.extract_strided_slice %228 {offsets = [11, 0], sizes = [1, 256], strides = [1, 1]} : vector<27x256xf32> to vector<1x256xf32>
    %cst_156 = arith.constant 0.000000e+00 : f32
    %514 = vector.broadcast %cst_156 : f32 to vector<1x256xf32>
    %515 = arith.addf %4, %514 : vector<1x256xf32>
    %516 = arith.addf %515, %512 : vector<1x256xf32>
    %cst_157 = arith.constant 1.000000e+00 : f32
    %517 = vector.broadcast %cst_157 : f32 to vector<1x256xf32>
    %518 = arith.addf %5, %517 : vector<1x256xf32>
    %519 = arith.addf %518, %513 : vector<1x256xf32>
    %520 = math.floor %516 : vector<1x256xf32>
    %521 = math.floor %519 : vector<1x256xf32>
    %522 = arith.subf %516, %520 : vector<1x256xf32>
    %523 = arith.subf %519, %521 : vector<1x256xf32>
    %524 = arith.fptosi %520 : vector<1x256xf32> to vector<1x256xi32>
    %525 = arith.fptosi %521 : vector<1x256xf32> to vector<1x256xi32>
    %526 = vector.broadcast %524 : vector<1x256xi32> to vector<16x256xi32>
    %527 = arith.cmpi eq, %235, %526 : vector<16x256xi32>
    %cst_158 = arith.constant 1.000000e+00 : f32
    %528 = vector.broadcast %cst_158 : f32 to vector<1x256xf32>
    %529 = arith.subf %528, %522 : vector<1x256xf32>
    %cst_159 = arith.constant 0.000000e+00 : f32
    %530 = vector.shape_cast %529 : vector<1x256xf32> to vector<1x256xf32>
    %531 = vector.broadcast %530 : vector<1x256xf32> to vector<16x256xf32>
    %532 = vector.broadcast %cst_159 : f32 to vector<16x256xf32>
    %533 = arith.select %527, %531, %532 : vector<16x256xi1>, vector<16x256xf32>
    %c1_i32_160 = arith.constant 1 : i32
    %534 = vector.broadcast %c1_i32_160 : i32 to vector<1x256xi32>
    %535 = arith.addi %524, %534 : vector<1x256xi32>
    %536 = vector.broadcast %535 : vector<1x256xi32> to vector<16x256xi32>
    %537 = arith.cmpi eq, %235, %536 : vector<16x256xi32>
    %cst_161 = arith.constant 0.000000e+00 : f32
    %538 = vector.shape_cast %522 : vector<1x256xf32> to vector<1x256xf32>
    %539 = vector.broadcast %538 : vector<1x256xf32> to vector<16x256xf32>
    %540 = vector.broadcast %cst_161 : f32 to vector<16x256xf32>
    %541 = arith.select %537, %539, %540 : vector<16x256xi1>, vector<16x256xf32>
    %542 = arith.addf %533, %541 : vector<16x256xf32>
    %543 = vector.broadcast %525 : vector<1x256xi32> to vector<16x256xi32>
    %544 = arith.cmpi eq, %236, %543 : vector<16x256xi32>
    %cst_162 = arith.constant 1.000000e+00 : f32
    %545 = vector.broadcast %cst_162 : f32 to vector<1x256xf32>
    %546 = arith.subf %545, %523 : vector<1x256xf32>
    %cst_163 = arith.constant 0.000000e+00 : f32
    %547 = vector.shape_cast %546 : vector<1x256xf32> to vector<1x256xf32>
    %548 = vector.broadcast %547 : vector<1x256xf32> to vector<16x256xf32>
    %549 = vector.broadcast %cst_163 : f32 to vector<16x256xf32>
    %550 = arith.select %544, %548, %549 : vector<16x256xi1>, vector<16x256xf32>
    %c1_i32_164 = arith.constant 1 : i32
    %551 = vector.broadcast %c1_i32_164 : i32 to vector<1x256xi32>
    %552 = arith.addi %525, %551 : vector<1x256xi32>
    %553 = vector.broadcast %552 : vector<1x256xi32> to vector<16x256xi32>
    %554 = arith.cmpi eq, %236, %553 : vector<16x256xi32>
    %cst_165 = arith.constant 0.000000e+00 : f32
    %555 = vector.shape_cast %523 : vector<1x256xf32> to vector<1x256xf32>
    %556 = vector.broadcast %555 : vector<1x256xf32> to vector<16x256xf32>
    %557 = vector.broadcast %cst_165 : f32 to vector<16x256xf32>
    %558 = arith.select %554, %556, %557 : vector<16x256xi1>, vector<16x256xf32>
    %559 = arith.addf %550, %558 : vector<16x256xf32>
    %cst_166 = arith.constant dense<0.000000e+00> : vector<64x256xf32>
    %560 = tpu.matmul %3, %559, %cst_166 {dimension_numbers = #tpu.dot_dimension_numbers<[1], [0], [0], [1], [0, 0, 1, 1], [], []>} : vector<64x16xf32>, vector<16x256xf32>, vector<64x256xf32> -> vector<64x256xf32>
    %561 = tpu.concatenate %542, %542, %542, %542 in 0 : vector<16x256xf32>, vector<16x256xf32>, vector<16x256xf32>, vector<16x256xf32> -> vector<64x256xf32>
    %562 = arith.mulf %560, %561 : vector<64x256xf32>
    %cst_167 = arith.constant dense<0.000000e+00> : vector<4x256xf32>
    %563 = tpu.matmul %6, %562, %cst_167 {dimension_numbers = #tpu.dot_dimension_numbers<[1], [0], [0], [1], [0, 0, 1, 1], [], []>} : vector<4x64xf32>, vector<64x256xf32>, vector<4x256xf32> -> vector<4x256xf32>
    %564 = vector.extract_strided_slice %234 {offsets = [5, 0], sizes = [1, 256], strides = [1, 1]} : vector<9x256xf32> to vector<1x256xf32>
    %565 = vector.broadcast %564 : vector<1x256xf32> to vector<4x256xf32>
    %566 = arith.mulf %563, %565 : vector<4x256xf32>
    %567 = vector.extract_strided_slice %228 {offsets = [12, 0], sizes = [1, 256], strides = [1, 1]} : vector<27x256xf32> to vector<1x256xf32>
    %568 = vector.extract_strided_slice %228 {offsets = [13, 0], sizes = [1, 256], strides = [1, 1]} : vector<27x256xf32> to vector<1x256xf32>
    %cst_168 = arith.constant 1.000000e+00 : f32
    %569 = vector.broadcast %cst_168 : f32 to vector<1x256xf32>
    %570 = arith.addf %4, %569 : vector<1x256xf32>
    %571 = arith.addf %570, %567 : vector<1x256xf32>
    %cst_169 = arith.constant -1.000000e+00 : f32
    %572 = vector.broadcast %cst_169 : f32 to vector<1x256xf32>
    %573 = arith.addf %5, %572 : vector<1x256xf32>
    %574 = arith.addf %573, %568 : vector<1x256xf32>
    %575 = math.floor %571 : vector<1x256xf32>
    %576 = math.floor %574 : vector<1x256xf32>
    %577 = arith.subf %571, %575 : vector<1x256xf32>
    %578 = arith.subf %574, %576 : vector<1x256xf32>
    %579 = arith.fptosi %575 : vector<1x256xf32> to vector<1x256xi32>
    %580 = arith.fptosi %576 : vector<1x256xf32> to vector<1x256xi32>
    %581 = vector.broadcast %579 : vector<1x256xi32> to vector<16x256xi32>
    %582 = arith.cmpi eq, %235, %581 : vector<16x256xi32>
    %cst_170 = arith.constant 1.000000e+00 : f32
    %583 = vector.broadcast %cst_170 : f32 to vector<1x256xf32>
    %584 = arith.subf %583, %577 : vector<1x256xf32>
    %cst_171 = arith.constant 0.000000e+00 : f32
    %585 = vector.shape_cast %584 : vector<1x256xf32> to vector<1x256xf32>
    %586 = vector.broadcast %585 : vector<1x256xf32> to vector<16x256xf32>
    %587 = vector.broadcast %cst_171 : f32 to vector<16x256xf32>
    %588 = arith.select %582, %586, %587 : vector<16x256xi1>, vector<16x256xf32>
    %c1_i32_172 = arith.constant 1 : i32
    %589 = vector.broadcast %c1_i32_172 : i32 to vector<1x256xi32>
    %590 = arith.addi %579, %589 : vector<1x256xi32>
    %591 = vector.broadcast %590 : vector<1x256xi32> to vector<16x256xi32>
    %592 = arith.cmpi eq, %235, %591 : vector<16x256xi32>
    %cst_173 = arith.constant 0.000000e+00 : f32
    %593 = vector.shape_cast %577 : vector<1x256xf32> to vector<1x256xf32>
    %594 = vector.broadcast %593 : vector<1x256xf32> to vector<16x256xf32>
    %595 = vector.broadcast %cst_173 : f32 to vector<16x256xf32>
    %596 = arith.select %592, %594, %595 : vector<16x256xi1>, vector<16x256xf32>
    %597 = arith.addf %588, %596 : vector<16x256xf32>
    %598 = vector.broadcast %580 : vector<1x256xi32> to vector<16x256xi32>
    %599 = arith.cmpi eq, %236, %598 : vector<16x256xi32>
    %cst_174 = arith.constant 1.000000e+00 : f32
    %600 = vector.broadcast %cst_174 : f32 to vector<1x256xf32>
    %601 = arith.subf %600, %578 : vector<1x256xf32>
    %cst_175 = arith.constant 0.000000e+00 : f32
    %602 = vector.shape_cast %601 : vector<1x256xf32> to vector<1x256xf32>
    %603 = vector.broadcast %602 : vector<1x256xf32> to vector<16x256xf32>
    %604 = vector.broadcast %cst_175 : f32 to vector<16x256xf32>
    %605 = arith.select %599, %603, %604 : vector<16x256xi1>, vector<16x256xf32>
    %c1_i32_176 = arith.constant 1 : i32
    %606 = vector.broadcast %c1_i32_176 : i32 to vector<1x256xi32>
    %607 = arith.addi %580, %606 : vector<1x256xi32>
    %608 = vector.broadcast %607 : vector<1x256xi32> to vector<16x256xi32>
    %609 = arith.cmpi eq, %236, %608 : vector<16x256xi32>
    %cst_177 = arith.constant 0.000000e+00 : f32
    %610 = vector.shape_cast %578 : vector<1x256xf32> to vector<1x256xf32>
    %611 = vector.broadcast %610 : vector<1x256xf32> to vector<16x256xf32>
    %612 = vector.broadcast %cst_177 : f32 to vector<16x256xf32>
    %613 = arith.select %609, %611, %612 : vector<16x256xi1>, vector<16x256xf32>
    %614 = arith.addf %605, %613 : vector<16x256xf32>
    %cst_178 = arith.constant dense<0.000000e+00> : vector<64x256xf32>
    %615 = tpu.matmul %3, %614, %cst_178 {dimension_numbers = #tpu.dot_dimension_numbers<[1], [0], [0], [1], [0, 0, 1, 1], [], []>} : vector<64x16xf32>, vector<16x256xf32>, vector<64x256xf32> -> vector<64x256xf32>
    %616 = tpu.concatenate %597, %597, %597, %597 in 0 : vector<16x256xf32>, vector<16x256xf32>, vector<16x256xf32>, vector<16x256xf32> -> vector<64x256xf32>
    %617 = arith.mulf %615, %616 : vector<64x256xf32>
    %cst_179 = arith.constant dense<0.000000e+00> : vector<4x256xf32>
    %618 = tpu.matmul %6, %617, %cst_179 {dimension_numbers = #tpu.dot_dimension_numbers<[1], [0], [0], [1], [0, 0, 1, 1], [], []>} : vector<4x64xf32>, vector<64x256xf32>, vector<4x256xf32> -> vector<4x256xf32>
    %619 = vector.extract_strided_slice %234 {offsets = [6, 0], sizes = [1, 256], strides = [1, 1]} : vector<9x256xf32> to vector<1x256xf32>
    %620 = vector.broadcast %619 : vector<1x256xf32> to vector<4x256xf32>
    %621 = arith.mulf %618, %620 : vector<4x256xf32>
    %622 = vector.extract_strided_slice %228 {offsets = [14, 0], sizes = [1, 256], strides = [1, 1]} : vector<27x256xf32> to vector<1x256xf32>
    %623 = vector.extract_strided_slice %228 {offsets = [15, 0], sizes = [1, 256], strides = [1, 1]} : vector<27x256xf32> to vector<1x256xf32>
    %cst_180 = arith.constant 1.000000e+00 : f32
    %624 = vector.broadcast %cst_180 : f32 to vector<1x256xf32>
    %625 = arith.addf %4, %624 : vector<1x256xf32>
    %626 = arith.addf %625, %622 : vector<1x256xf32>
    %cst_181 = arith.constant 0.000000e+00 : f32
    %627 = vector.broadcast %cst_181 : f32 to vector<1x256xf32>
    %628 = arith.addf %5, %627 : vector<1x256xf32>
    %629 = arith.addf %628, %623 : vector<1x256xf32>
    %630 = math.floor %626 : vector<1x256xf32>
    %631 = math.floor %629 : vector<1x256xf32>
    %632 = arith.subf %626, %630 : vector<1x256xf32>
    %633 = arith.subf %629, %631 : vector<1x256xf32>
    %634 = arith.fptosi %630 : vector<1x256xf32> to vector<1x256xi32>
    %635 = arith.fptosi %631 : vector<1x256xf32> to vector<1x256xi32>
    %636 = vector.broadcast %634 : vector<1x256xi32> to vector<16x256xi32>
    %637 = arith.cmpi eq, %235, %636 : vector<16x256xi32>
    %cst_182 = arith.constant 1.000000e+00 : f32
    %638 = vector.broadcast %cst_182 : f32 to vector<1x256xf32>
    %639 = arith.subf %638, %632 : vector<1x256xf32>
    %cst_183 = arith.constant 0.000000e+00 : f32
    %640 = vector.shape_cast %639 : vector<1x256xf32> to vector<1x256xf32>
    %641 = vector.broadcast %640 : vector<1x256xf32> to vector<16x256xf32>
    %642 = vector.broadcast %cst_183 : f32 to vector<16x256xf32>
    %643 = arith.select %637, %641, %642 : vector<16x256xi1>, vector<16x256xf32>
    %c1_i32_184 = arith.constant 1 : i32
    %644 = vector.broadcast %c1_i32_184 : i32 to vector<1x256xi32>
    %645 = arith.addi %634, %644 : vector<1x256xi32>
    %646 = vector.broadcast %645 : vector<1x256xi32> to vector<16x256xi32>
    %647 = arith.cmpi eq, %235, %646 : vector<16x256xi32>
    %cst_185 = arith.constant 0.000000e+00 : f32
    %648 = vector.shape_cast %632 : vector<1x256xf32> to vector<1x256xf32>
    %649 = vector.broadcast %648 : vector<1x256xf32> to vector<16x256xf32>
    %650 = vector.broadcast %cst_185 : f32 to vector<16x256xf32>
    %651 = arith.select %647, %649, %650 : vector<16x256xi1>, vector<16x256xf32>
    %652 = arith.addf %643, %651 : vector<16x256xf32>
    %653 = vector.broadcast %635 : vector<1x256xi32> to vector<16x256xi32>
    %654 = arith.cmpi eq, %236, %653 : vector<16x256xi32>
    %cst_186 = arith.constant 1.000000e+00 : f32
    %655 = vector.broadcast %cst_186 : f32 to vector<1x256xf32>
    %656 = arith.subf %655, %633 : vector<1x256xf32>
    %cst_187 = arith.constant 0.000000e+00 : f32
    %657 = vector.shape_cast %656 : vector<1x256xf32> to vector<1x256xf32>
    %658 = vector.broadcast %657 : vector<1x256xf32> to vector<16x256xf32>
    %659 = vector.broadcast %cst_187 : f32 to vector<16x256xf32>
    %660 = arith.select %654, %658, %659 : vector<16x256xi1>, vector<16x256xf32>
    %c1_i32_188 = arith.constant 1 : i32
    %661 = vector.broadcast %c1_i32_188 : i32 to vector<1x256xi32>
    %662 = arith.addi %635, %661 : vector<1x256xi32>
    %663 = vector.broadcast %662 : vector<1x256xi32> to vector<16x256xi32>
    %664 = arith.cmpi eq, %236, %663 : vector<16x256xi32>
    %cst_189 = arith.constant 0.000000e+00 : f32
    %665 = vector.shape_cast %633 : vector<1x256xf32> to vector<1x256xf32>
    %666 = vector.broadcast %665 : vector<1x256xf32> to vector<16x256xf32>
    %667 = vector.broadcast %cst_189 : f32 to vector<16x256xf32>
    %668 = arith.select %664, %666, %667 : vector<16x256xi1>, vector<16x256xf32>
    %669 = arith.addf %660, %668 : vector<16x256xf32>
    %cst_190 = arith.constant dense<0.000000e+00> : vector<64x256xf32>
    %670 = tpu.matmul %3, %669, %cst_190 {dimension_numbers = #tpu.dot_dimension_numbers<[1], [0], [0], [1], [0, 0, 1, 1], [], []>} : vector<64x16xf32>, vector<16x256xf32>, vector<64x256xf32> -> vector<64x256xf32>
    %671 = tpu.concatenate %652, %652, %652, %652 in 0 : vector<16x256xf32>, vector<16x256xf32>, vector<16x256xf32>, vector<16x256xf32> -> vector<64x256xf32>
    %672 = arith.mulf %670, %671 : vector<64x256xf32>
    %cst_191 = arith.constant dense<0.000000e+00> : vector<4x256xf32>
    %673 = tpu.matmul %6, %672, %cst_191 {dimension_numbers = #tpu.dot_dimension_numbers<[1], [0], [0], [1], [0, 0, 1, 1], [], []>} : vector<4x64xf32>, vector<64x256xf32>, vector<4x256xf32> -> vector<4x256xf32>
    %674 = vector.extract_strided_slice %234 {offsets = [7, 0], sizes = [1, 256], strides = [1, 1]} : vector<9x256xf32> to vector<1x256xf32>
    %675 = vector.broadcast %674 : vector<1x256xf32> to vector<4x256xf32>
    %676 = arith.mulf %673, %675 : vector<4x256xf32>
    %677 = vector.extract_strided_slice %228 {offsets = [16, 0], sizes = [1, 256], strides = [1, 1]} : vector<27x256xf32> to vector<1x256xf32>
    %678 = vector.extract_strided_slice %228 {offsets = [17, 0], sizes = [1, 256], strides = [1, 1]} : vector<27x256xf32> to vector<1x256xf32>
    %cst_192 = arith.constant 1.000000e+00 : f32
    %679 = vector.broadcast %cst_192 : f32 to vector<1x256xf32>
    %680 = arith.addf %4, %679 : vector<1x256xf32>
    %681 = arith.addf %680, %677 : vector<1x256xf32>
    %cst_193 = arith.constant 1.000000e+00 : f32
    %682 = vector.broadcast %cst_193 : f32 to vector<1x256xf32>
    %683 = arith.addf %5, %682 : vector<1x256xf32>
    %684 = arith.addf %683, %678 : vector<1x256xf32>
    %685 = math.floor %681 : vector<1x256xf32>
    %686 = math.floor %684 : vector<1x256xf32>
    %687 = arith.subf %681, %685 : vector<1x256xf32>
    %688 = arith.subf %684, %686 : vector<1x256xf32>
    %689 = arith.fptosi %685 : vector<1x256xf32> to vector<1x256xi32>
    %690 = arith.fptosi %686 : vector<1x256xf32> to vector<1x256xi32>
    %691 = vector.broadcast %689 : vector<1x256xi32> to vector<16x256xi32>
    %692 = arith.cmpi eq, %235, %691 : vector<16x256xi32>
    %cst_194 = arith.constant 1.000000e+00 : f32
    %693 = vector.broadcast %cst_194 : f32 to vector<1x256xf32>
    %694 = arith.subf %693, %687 : vector<1x256xf32>
    %cst_195 = arith.constant 0.000000e+00 : f32
    %695 = vector.shape_cast %694 : vector<1x256xf32> to vector<1x256xf32>
    %696 = vector.broadcast %695 : vector<1x256xf32> to vector<16x256xf32>
    %697 = vector.broadcast %cst_195 : f32 to vector<16x256xf32>
    %698 = arith.select %692, %696, %697 : vector<16x256xi1>, vector<16x256xf32>
    %c1_i32_196 = arith.constant 1 : i32
    %699 = vector.broadcast %c1_i32_196 : i32 to vector<1x256xi32>
    %700 = arith.addi %689, %699 : vector<1x256xi32>
    %701 = vector.broadcast %700 : vector<1x256xi32> to vector<16x256xi32>
    %702 = arith.cmpi eq, %235, %701 : vector<16x256xi32>
    %cst_197 = arith.constant 0.000000e+00 : f32
    %703 = vector.shape_cast %687 : vector<1x256xf32> to vector<1x256xf32>
    %704 = vector.broadcast %703 : vector<1x256xf32> to vector<16x256xf32>
    %705 = vector.broadcast %cst_197 : f32 to vector<16x256xf32>
    %706 = arith.select %702, %704, %705 : vector<16x256xi1>, vector<16x256xf32>
    %707 = arith.addf %698, %706 : vector<16x256xf32>
    %708 = vector.broadcast %690 : vector<1x256xi32> to vector<16x256xi32>
    %709 = arith.cmpi eq, %236, %708 : vector<16x256xi32>
    %cst_198 = arith.constant 1.000000e+00 : f32
    %710 = vector.broadcast %cst_198 : f32 to vector<1x256xf32>
    %711 = arith.subf %710, %688 : vector<1x256xf32>
    %cst_199 = arith.constant 0.000000e+00 : f32
    %712 = vector.shape_cast %711 : vector<1x256xf32> to vector<1x256xf32>
    %713 = vector.broadcast %712 : vector<1x256xf32> to vector<16x256xf32>
    %714 = vector.broadcast %cst_199 : f32 to vector<16x256xf32>
    %715 = arith.select %709, %713, %714 : vector<16x256xi1>, vector<16x256xf32>
    %c1_i32_200 = arith.constant 1 : i32
    %716 = vector.broadcast %c1_i32_200 : i32 to vector<1x256xi32>
    %717 = arith.addi %690, %716 : vector<1x256xi32>
    %718 = vector.broadcast %717 : vector<1x256xi32> to vector<16x256xi32>
    %719 = arith.cmpi eq, %236, %718 : vector<16x256xi32>
    %cst_201 = arith.constant 0.000000e+00 : f32
    %720 = vector.shape_cast %688 : vector<1x256xf32> to vector<1x256xf32>
    %721 = vector.broadcast %720 : vector<1x256xf32> to vector<16x256xf32>
    %722 = vector.broadcast %cst_201 : f32 to vector<16x256xf32>
    %723 = arith.select %719, %721, %722 : vector<16x256xi1>, vector<16x256xf32>
    %724 = arith.addf %715, %723 : vector<16x256xf32>
    %cst_202 = arith.constant dense<0.000000e+00> : vector<64x256xf32>
    %725 = tpu.matmul %3, %724, %cst_202 {dimension_numbers = #tpu.dot_dimension_numbers<[1], [0], [0], [1], [0, 0, 1, 1], [], []>} : vector<64x16xf32>, vector<16x256xf32>, vector<64x256xf32> -> vector<64x256xf32>
    %726 = tpu.concatenate %707, %707, %707, %707 in 0 : vector<16x256xf32>, vector<16x256xf32>, vector<16x256xf32>, vector<16x256xf32> -> vector<64x256xf32>
    %727 = arith.mulf %725, %726 : vector<64x256xf32>
    %cst_203 = arith.constant dense<0.000000e+00> : vector<4x256xf32>
    %728 = tpu.matmul %6, %727, %cst_203 {dimension_numbers = #tpu.dot_dimension_numbers<[1], [0], [0], [1], [0, 0, 1, 1], [], []>} : vector<4x64xf32>, vector<64x256xf32>, vector<4x256xf32> -> vector<4x256xf32>
    %729 = vector.extract_strided_slice %234 {offsets = [8, 0], sizes = [1, 256], strides = [1, 1]} : vector<9x256xf32> to vector<1x256xf32>
    %730 = vector.broadcast %729 : vector<1x256xf32> to vector<4x256xf32>
    %731 = arith.mulf %728, %730 : vector<4x256xf32>
    %732 = vector.extract_strided_slice %291 {offsets = [0, 0], sizes = [2, 256], strides = [1, 1]} : vector<4x256xf32> to vector<2x256xf32>
    %733 = vector.extract_strided_slice %346 {offsets = [0, 0], sizes = [2, 256], strides = [1, 1]} : vector<4x256xf32> to vector<2x256xf32>
    %734 = vector.extract_strided_slice %401 {offsets = [0, 0], sizes = [2, 256], strides = [1, 1]} : vector<4x256xf32> to vector<2x256xf32>
    %735 = vector.extract_strided_slice %456 {offsets = [0, 0], sizes = [2, 256], strides = [1, 1]} : vector<4x256xf32> to vector<2x256xf32>
    %736 = vector.extract_strided_slice %511 {offsets = [0, 0], sizes = [2, 256], strides = [1, 1]} : vector<4x256xf32> to vector<2x256xf32>
    %737 = vector.extract_strided_slice %566 {offsets = [0, 0], sizes = [2, 256], strides = [1, 1]} : vector<4x256xf32> to vector<2x256xf32>
    %738 = vector.extract_strided_slice %621 {offsets = [0, 0], sizes = [2, 256], strides = [1, 1]} : vector<4x256xf32> to vector<2x256xf32>
    %739 = vector.extract_strided_slice %676 {offsets = [0, 0], sizes = [2, 256], strides = [1, 1]} : vector<4x256xf32> to vector<2x256xf32>
    %740 = vector.extract_strided_slice %731 {offsets = [0, 0], sizes = [2, 256], strides = [1, 1]} : vector<4x256xf32> to vector<2x256xf32>
    %741 = tpu.concatenate %732, %733, %734, %735, %736, %737, %738, %739, %740 in 0 : vector<2x256xf32>, vector<2x256xf32>, vector<2x256xf32>, vector<2x256xf32>, vector<2x256xf32>, vector<2x256xf32>, vector<2x256xf32>, vector<2x256xf32>, vector<2x256xf32> -> vector<18x256xf32>
    %c0_204 = arith.constant 0 : index
    %c0_205 = arith.constant 0 : index
    %c0_206 = arith.constant 0 : index
    %742 = vector.load %arg8[%c0_204, %c0_205, %c0_206] : memref<2x2x18xf32, #tpu.memory_space<vmem>>, vector<1x2x18xf32>
    %743 = vector.shape_cast %742 : vector<1x2x18xf32> to vector<2x18xf32>
    %cst_207 = arith.constant dense<0.000000e+00> : vector<2x256xf32>
    %744 = tpu.matmul %743, %741, %cst_207 {dimension_numbers = #tpu.dot_dimension_numbers<[1], [0], [0], [1], [0, 0, 1, 1], [], []>} : vector<2x18xf32>, vector<18x256xf32>, vector<2x256xf32> -> vector<2x256xf32>
    %745 = vector.extract_strided_slice %291 {offsets = [2, 0], sizes = [2, 256], strides = [1, 1]} : vector<4x256xf32> to vector<2x256xf32>
    %746 = vector.extract_strided_slice %346 {offsets = [2, 0], sizes = [2, 256], strides = [1, 1]} : vector<4x256xf32> to vector<2x256xf32>
    %747 = vector.extract_strided_slice %401 {offsets = [2, 0], sizes = [2, 256], strides = [1, 1]} : vector<4x256xf32> to vector<2x256xf32>
    %748 = vector.extract_strided_slice %456 {offsets = [2, 0], sizes = [2, 256], strides = [1, 1]} : vector<4x256xf32> to vector<2x256xf32>
    %749 = vector.extract_strided_slice %511 {offsets = [2, 0], sizes = [2, 256], strides = [1, 1]} : vector<4x256xf32> to vector<2x256xf32>
    %750 = vector.extract_strided_slice %566 {offsets = [2, 0], sizes = [2, 256], strides = [1, 1]} : vector<4x256xf32> to vector<2x256xf32>
    %751 = vector.extract_strided_slice %621 {offsets = [2, 0], sizes = [2, 256], strides = [1, 1]} : vector<4x256xf32> to vector<2x256xf32>
    %752 = vector.extract_strided_slice %676 {offsets = [2, 0], sizes = [2, 256], strides = [1, 1]} : vector<4x256xf32> to vector<2x256xf32>
    %753 = vector.extract_strided_slice %731 {offsets = [2, 0], sizes = [2, 256], strides = [1, 1]} : vector<4x256xf32> to vector<2x256xf32>
    %754 = tpu.concatenate %745, %746, %747, %748, %749, %750, %751, %752, %753 in 0 : vector<2x256xf32>, vector<2x256xf32>, vector<2x256xf32>, vector<2x256xf32>, vector<2x256xf32>, vector<2x256xf32>, vector<2x256xf32>, vector<2x256xf32>, vector<2x256xf32> -> vector<18x256xf32>
    %c1 = arith.constant 1 : index
    %c0_208 = arith.constant 0 : index
    %c0_209 = arith.constant 0 : index
    %755 = vector.load %arg8[%c1, %c0_208, %c0_209] : memref<2x2x18xf32, #tpu.memory_space<vmem>>, vector<1x2x18xf32>
    %756 = vector.shape_cast %755 : vector<1x2x18xf32> to vector<2x18xf32>
    %cst_210 = arith.constant dense<0.000000e+00> : vector<2x256xf32>
    %757 = tpu.matmul %756, %754, %cst_210 {dimension_numbers = #tpu.dot_dimension_numbers<[1], [0], [0], [1], [0, 0, 1, 1], [], []>} : vector<2x18xf32>, vector<18x256xf32>, vector<2x256xf32> -> vector<2x256xf32>
    %758 = tpu.concatenate %744, %757 in 0 : vector<2x256xf32>, vector<2x256xf32> -> vector<4x256xf32>
    %c0_211 = arith.constant 0 : index
    %c0_212 = arith.constant 0 : index
    %c0_213 = arith.constant 0 : index
    %759 = vector.load %arg9[%c0_211, %c0_212, %c0_213] : memref<1x4x256xf32, #tpu.memory_space<vmem>>, vector<1x4x256xf32>
    %760 = vector.shape_cast %759 : vector<1x4x256xf32> to vector<4x256xf32>
    %761 = vector.shape_cast %758 : vector<4x256xf32> to vector<1x4x256xf32>
    tpu.vector_store %arg9[%c0_211, %c0_212, %c0_213], %761 {strides = array<i32>} : memref<1x4x256xf32, #tpu.memory_space<vmem>>, vector<1x4x256xf32>,
    return
  }
  func.func @transform_0(%arg0: i32) -> (i32, i32, i32) {
    %c0_i32 = arith.constant 0 : i32
    %c0_i32_0 = arith.constant 0 : i32
    %c0_i32_1 = arith.constant 0 : i32
    return %arg0, %c0_i32, %c0_i32_0 : i32, i32, i32
  }
  func.func @transform_1(%arg0: i32) -> (i32, i32, i32) {
    %c0_i32 = arith.constant 0 : i32
    %c0_i32_0 = arith.constant 0 : i32
    %c0_i32_1 = arith.constant 0 : i32
    return %arg0, %c0_i32, %c0_i32_0 : i32, i32, i32
  }
  func.func @transform_2(%arg0: i32) -> (i32, i32) {
    %c0_i32 = arith.constant 0 : i32
    %c0_i32_0 = arith.constant 0 : i32
    %c0_i32_1 = arith.constant 0 : i32
    return %c0_i32, %c0_i32_0 : i32, i32
  }
  func.func @transform_3(%arg0: i32) -> (i32, i32) {
    %c0_i32 = arith.constant 0 : i32
    %c0_i32_0 = arith.constant 0 : i32
    %c0_i32_1 = arith.constant 0 : i32
    return %c0_i32, %c0_i32_0 : i32, i32
  }
  func.func @transform_4(%arg0: i32) -> (i32, i32) {
    %c0_i32 = arith.constant 0 : i32
    %c0_i32_0 = arith.constant 0 : i32
    %c0_i32_1 = arith.constant 0 : i32
    return %c0_i32, %c0_i32_0 : i32, i32
  }
  func.func @transform_5(%arg0: i32) -> (i32, i32) {
    %c0_i32 = arith.constant 0 : i32
    %c0_i32_0 = arith.constant 0 : i32
    %c0_i32_1 = arith.constant 0 : i32
    return %c0_i32, %c0_i32_0 : i32, i32
  }
  func.func @transform_6(%arg0: i32) -> (i32, i32) {
    %c0_i32 = arith.constant 0 : i32
    %c0_i32_0 = arith.constant 0 : i32
    %c0_i32_1 = arith.constant 0 : i32
    return %c0_i32, %c0_i32_0 : i32, i32
  }
  func.func @transform_7(%arg0: i32) -> (i32, i32, i32) {
    %c0_i32 = arith.constant 0 : i32
    %c0_i32_0 = arith.constant 0 : i32
    %c0_i32_1 = arith.constant 0 : i32
    %c0_i32_2 = arith.constant 0 : i32
    return %c0_i32, %c0_i32_0, %c0_i32_1 : i32, i32, i32
  }
  func.func @transform_8(%arg0: i32) -> (i32, i32, i32) {
    %c0_i32 = arith.constant 0 : i32
    %c0_i32_0 = arith.constant 0 : i32
    %c0_i32_1 = arith.constant 0 : i32
    return %arg0, %c0_i32, %c0_i32_0 : i32, i32, i32
  }
}

</mosaic_0001>

<bundles_post_ra>
// kernel: tpu_custom_call.1
= control target key start
LH: loop header
LB: loop body
LE: loop exit
PB: predicated region body
PF: predicated region fallthrough
CT: control target
= control target key end

     0   :  { %13 = vsyncpa [#allocation3], 0  ;;  %s6413_s0 = inlined_call_operand.vmem [shape: f32[2,4,290], index: 0, kind: input, shape index: {}]   ;;  %s6414_s1 = inlined_call_operand.vmem [shape: f32[2,64,16], index: 1, kind: input, shape index: {}]   ;;  %s6415_s2 = inlined_call_operand.vmem [shape: f32[1,256], index: 2, kind: input, shape index: {}]   ;;  %s6416_s3 = inlined_call_operand.vmem [shape: f32[1,256], index: 3, kind: input, shape index: {}]   ;;  %s6417_s4 = inlined_call_operand.vmem [shape: f32[4,64], index: 4, kind: input, shape index: {}]   ;;  %s6418_s5 = inlined_call_operand.vmem [shape: f32[27,36], index: 5, kind: input, shape index: {}]   ;;  %s6419_s6 = inlined_call_operand.vmem [shape: f32[27,1], index: 6, kind: input, shape index: {}]   ;;  %s6420_s7 = inlined_call_operand.vmem [shape: f32[2,2,18], index: 7, kind: input, shape index: {}]   ;;  %s6421_s8 = inlined_call_operand.hbm [shape: f32[2,4,256], index: 8, kind: output, shape index: {}]  }
   0x1   :  { %15 = vsyncpa [#allocation3 + $0x1], 0  ;;  %s4937_s27 = smov 0   ;;  %s4939_s28 = smov 0  }
   0x2   :  { %s4941_s29 = smov 0   ;;  %s4943_s30 = smov 0  }
   0x3 LB: > { %s4958_s9 = sadd.s32 4294967295, %s4878_s30   ;;  %s4346_s10 = sadd.s32 4294967294, %s4878_s30   ;;  %s4878_s30 = sphi %s4943_s30, %s6471_s30   ;;  %s4874_s29 = sphi %s4941_s29, %s6470_s29   ;;  %s4870_s28 = sphi %s4939_s28, %s6469_s28   ;;  %s4866_s27 = sphi %s4937_s27, %s6468_s27  }
   0x4   : > { %s4962_s11 = sadd.s32 1, %s4878_s30   ;;  %s206_s12 = sadd.s32 1, %s4874_s29 }
   0x5   : > { %s203_s13 = ssub.s32 %s4878_s30, %s4962_s11  ;;  %p216_p0 = scmp.ne.s32.totalorder %s4874_s29, %s4870_s28 }
   0x6   : > { %p204_p1 = scmp.eq.s32.totalorder %s203_s13, 0  ;;  %p217_p2 = scmp.eq.s32.totalorder %s4958_s9, 1 }
   0x7   : > { %p222_p3 = scmp.ne.s32.totalorder %s4870_s28, %s4866_s27  ;;  %p223_p4 = scmp.eq.s32.totalorder %s4346_s10, 1 }
   0x8   : > { %s4973_s14 = scalar_select %p204_p1, %s4874_s29, %s206_s12  }
   0x9   : > { %p4975_p5 = por %p217_p2, %p216_p0  ;;  %p4979_p6 = por %p223_p4, %p222_p3 }
   0xa   : > { %p4349_p7 = scmp.ge.s32.totalorder %s4878_s30, 1  ;;  %p275_p8 = scmp.lt.s32.totalorder %s4878_s30, 3 }
   0xc   : > { %p276_p9 = pnand %p4349_p7, %p275_p8 }
   0xd   : > { %p314_p10 = scmp.lt.s32.totalorder (!%p276_p9), %s4958_s9, 1  ;;  %v4989_v0 = vld [vmem:[%s6415_s2] sm:$0x3] (!%p276_p9)  ;;  %v4880_v2 = vmov (!%p276_p9), 0   ;;  %v347_v4 = vlaneseq (!%p276_p9)  ;;  %s4881_s26 = smov (!%p276_p9), 127   ;;  %v4888_v22 = vmov (!%p276_p9), 0.0  }
   0xe   : > { %279 = sbr.rel (%p276_p9) target bundleno = 3150 (0xc4e), region = 52  ;;  %v4994_v1 = vld [vmem:[%s6416_s3] sm:$0x3] (!%p276_p9)  ;;  %4777 = vset.pattern.permute.xlu1 (!%p276_p9), %v4880_v2  ;;  %4778 = vset.pattern.permute.xlu0 (!%p276_p9), %v4880_v2  ;;  %v5006_v5 = vadd.f32 (!%p276_p9), -1.0, %v4989_v0  ;;  %s4882_s10 = smov (!%p276_p9), 112   ;;  %v618_v24 = vld [vmem:[%s6419_s6 + $0x10] sm:$0xff] (!%p276_p9) }
   0xf   : > { %v5002_v3 = vadd.f32 (!%p276_p9), -1.0, %v4994_v1  ;;  %v5020_v9 = vshrl.u32 (!%p276_p9), %v347_v4, 7  ;;  %s4883_s12 = smov (!%p276_p9), 126   ;;  %s4884_s13 = smov (!%p276_p9), 95   ;;  %723 = vmatprep.mubr.f32.mxu0 (!%p276_p9), %v4888_v22  ;;  %1019 = vmatprep.mubr.f32.mxu1 (!%p276_p9), %v4888_v22  ;;  %v616_v23 = vld [vmem:[%s6419_s6] sm:$0xff] (!%p276_p9)  ;;  %vm363_vm9 = vcmp.ge.f32.partialorder (!%p276_p9), %v4994_v1, 0.0 }
  0x10   : > { %vm338_vm2 = vcmp.ge.f32.partialorder (!%p276_p9), %v5006_v5, 0.0  ;;  %vm339_vm3 = vcmp.le.f32.partialorder (!%p276_p9), %v5006_v5, 15.0  ;;  %s4885_s17 = smov (!%p276_p9), 110   ;;  %s4886_s18 = smov (!%p276_p9), 96   ;;  %v619_v25 = vld [vmem:[%s6419_s6 + $0x18] sm:$0x7] (!%p276_p9) }
  0x11   : > { %vm342_vm0 = vcmp.ge.f32.partialorder (!%p276_p9), %v5002_v3, 0.0  ;;  %vm343_vm1 = vcmp.le.f32.partialorder (!%p276_p9), %v5002_v3, 15.0  ;;  %vm5029_vm5 = vmand (!%p276_p9), %vm338_vm2, %vm339_vm3  ;;  %v5035_v13 = vsub.s32 (!%p276_p9), 1, %v5020_v9  ;;  %v5043_v15 = vsub.s32 (!%p276_p9), 0, %v5020_v9  ;;  %s4887_s19 = smov (!%p276_p9), 111   ;;  %s4889_s20 = smov (!%p276_p9), 94  }
  0x12   : > { %vm5024_vm4 = vmand (!%p276_p9), %vm342_vm0, %vm343_vm1  ;;  %vm364_vm10 = vcmp.le.f32.partialorder (!%p276_p9), %v4994_v1, 15.0  ;;  %v5082_v26 = vadd.f32 (!%p276_p9), 1.0, %v4994_v1  ;;  %v5089_v28 = vadd.f32 (!%p276_p9), 1.0, %v4989_v0  ;;  %vm422_vm12 = vcmp.ge.f32.partialorder (!%p276_p9), %v4989_v0, 0.0 }
  0x13   : > { %vm345_vm6 = vmand (!%p276_p9), %vm5029_vm5, %vm5024_vm4  ;;  %vm423_vm13 = vcmp.le.f32.partialorder (!%p276_p9), %v4989_v0, 15.0 }
  0x14   : > { %v346_v14 = vsel (!%p276_p9), %vm345_vm6, 1, %v4880_v2  ;;  %vm5084_vm11 = vmand (!%p276_p9), %vm363_vm9, %vm364_vm10  ;;  %vm393_vm14 = vcmp.ge.f32.partialorder (!%p276_p9), %v5082_v26, 0.0  ;;  %vm394_vm15 = vcmp.le.f32.partialorder (!%p276_p9), %v5082_v26, 15.0  ;;  %vm501_vm1 = vcmp.ge.f32.partialorder (!%p276_p9), %v5089_v28, 0.0 }
  0x15   : > { %s4999_s21 = scalar_select %p314_p10, %s4958_s9, 1  ;;  %v354_v16 = vrot.slane %v346_v14, %v5035_v13  ;;  %v350_v18 = vrot.slane %v346_v14, %v5043_v15  ;;  %vm366_vm0 = vmand %vm5029_vm5, %vm5084_vm11  ;;  %vm502_vm2 = vcmp.le.f32.partialorder %v5089_v28, 15.0 }
  0x16   : > { %vm5101_vm3 = vmand %vm422_vm12, %vm423_vm13  ;;  %v367_v31 = vsel %vm366_vm0, 1, %v4880_v2  ;;  %vm385_vm13 = vcmask 1039360   ;;  %vm443_vm0 = vcmask 916480  }
  0x17   : > { %s4655_s22 = smul.u32 12, %s4999_s21  ;;  %vm5047_vm7 = vcmp.eq.s32.totalorder %v354_v16, 1  ;;  %vm5055_vm8 = vcmp.eq.s32.totalorder %v350_v18, 1  ;;  %vm5105_vm6 = vmand %vm393_vm14, %vm394_vm15  ;;  %v375_v34 = vrot.slane %v367_v31, %v5035_v13  ;;  %v371_v35 = vrot.slane %v367_v31, %v5043_v15  ;;  %s4457_s24 = sshll.u32 %s4999_s21, 6 }
  0x18   : > { %vm5110_vm9 = vmand %vm501_vm1, %vm502_vm2  ;;  %vm603_vm1 = vcmask 1043456   ;;  %vm547_vm2 = vcmask 777216  }
  0x19   : > { %s318_s25 = scalar_lea.vmem %s6413_s0, %s4655_s22  ;;  %vm425_vm10 = vmand %vm5101_vm3, %vm5024_vm4  ;;  %vm5130_vm15 = vcmp.eq.s32.totalorder %v375_v34, 1 }
  0x1a   : > { %v5013_v6 = vld [vmem:[%s318_s25] sm:$0xff]  ;;  %v325_v7 = vld [vmem:[%s318_s25 + $0x8] sm:$0xf]  ;;  %vm396_vm12 = vmand %vm5029_vm5, %vm5105_vm6  ;;  %v426_v36 = vsel %vm425_vm10, 1, %v4880_v2  ;;  %vm5134_vm5 = vcmp.eq.s32.totalorder %v371_v35, 1 }
  0x1b   : > { %379 = vrot.lane.b32.xlu1 %v5013_v6, %s4881_s26  ;;  %v5018_v8 = vcombine.high %v5013_v6, %v5013_v6  ;;  %v360_v21 = vsel %vm5055_vm8, %v5013_v6, 0.0  ;;  %vm529_vm14 = vmand %vm5110_vm9, %vm5084_vm11  ;;  %v397_v39 = vsel %vm396_vm12, 1, %v4880_v2  ;;  %v434_v44 = vrot.slane %v426_v36, %v5035_v13 }
  0x1c   : > { %v430_v45 = vrot.slane %v426_v36, %v5043_v15  ;;  %v530_v48 = vsel %vm529_vm14, 1, %v4880_v2  ;;  %v405_v52 = vrot.slane %v397_v39, %v5035_v13  ;;  %v401_v54 = vrot.slane %v397_v39, %v5043_v15  ;;  %vm475_vm10 = vmand %vm5101_vm3, %vm5105_vm6 }
  0x1d   : > { %v4742_v11 = vpack.i.bf16 %v325_v7, %v5018_v8  ;;  %v361_v19 = vsel %vm5047_vm7, %v5018_v8, 0.0  ;;  %v534_v59 = vrot.slane %v530_v48, %v5043_v15  ;;  %vm414_vm12 = vcmask 1031168   ;;  %vm504_vm7 = vmand %vm5110_vm9, %vm5024_vm4 }
  0x1e   : > { %vm5156_vm14 = vcmp.eq.s32.totalorder %v430_v45, 1  ;;  %v538_v12 = vrot.slane %v530_v48, %v5035_v13  ;;  %v476_v14 = vsel %vm475_vm10, 1, %v4880_v2  ;;  %vm493_vm8 = vcmask 900096   ;;  %v614_v48 = vld [vmem:[%s6418_s5 + $0x10] sm:$0xff] }
  0x1f   : > { %437 = vrot.lane.b32.xlu1 %v5013_v6, %s4882_s10  ;;  %4743 = vrot.lane.b32.xlu0 %v4742_v11, %s4881_s26  ;;  %v484_v10 = vrot.slane %v476_v14, %v5035_v13  ;;  %v505_v31 = vsel %vm504_vm7, 1, %v4880_v2  ;;  %vm522_vm10 = vcmask 785408  }
  0x20   : > { %vm5203_vm4 = vcmp.eq.s32.totalorder %v538_v12, 1 }
  0x23   : > { %408 = vrot.lane.b32.xlu1 %v5013_v6, %s4883_s12  ;;  %4748 = vrot.lane.b32.xlu0 %v4742_v11, %s4882_s10  ;;  %s5353_s10 = scalar_lea.vmem %s6414_s1, %s4457_s24 }
  0x27   : > { %4763 = vrot.lane.b32.xlu1 %v4742_v11, %s4884_s13  ;;  %4753 = vrot.lane.b32.xlu0 %v4742_v11, %s4883_s12 }
  0x2b   : > { %541 = vrot.lane.b32.xlu1 %v5013_v6, %s4884_s13  ;;  %4758 = vrot.lane.b32.xlu0 %v4742_v11, %s4885_s17 }
  0x2f   : > { %4773 = vrot.lane.b32.xlu1 %v4742_v11, %s4886_s18  ;;  %487 = vrot.lane.b32.xlu0 %v5013_v6, %s4885_s17  ;;  %s311_s17 = sand.u32 1, %s4870_s28  }
  0x30   : > { %s4261_s26 = scalar_lea.sflag [#allocation3], %s311_s17 }
  0x33   : > { %516 = vrot.lane.b32.xlu1 %v5013_v6, %s4886_s18  ;;  %4768 = vrot.lane.b32.xlu0 %v4742_v11, %s4887_s19  ;;  %s4350_s18 = sshll.u32 %s311_s17, 3 }
  0x37   : > { %462 = vrot.lane.b32.xlu0 %v5013_v6, %s4887_s19  ;;  %570 = vrot.lane.b32.xlu1 %v325_v7, %s4889_s20  ;;  %s4458_s19 = sshll.u32 %s4958_s9, 7 }
  0x38   : > { %s6371_s25 = scalar_lea.hbm %s6421_s8, %s4458_s19 }
  0x3b   : > { %568 = vrot.lane.b32.xlu0 %v5018_v8, %s4889_s20  ;;  %622 = vperm.xlu1 %4777, %v616_v23   ;;  %v480_v23 = vrot.slane %v476_v14, %v5043_v15 }
  0x3f   : > { %566 = vrot.lane.b32.xlu0 %v5013_v6, %s4889_s20  ;;  %632 = vperm.xlu1 %4777, %v618_v24   ;;  %s313_s20 = scalar_lea.vmem [#allocation2], %s4350_s18 }
  0x40   : > { %s4275_s22 = sshll.u32 %s313_s20, 4  ;;  %s6373_s22 = int_to_ptr.vmem [resolvable:$true] %s4275_s22 }
  0x41   : > { %s4816_s9 = scalar_lea.vmem %s6373_s22, 128 }
  0x42   : > { %p4817_p11 = scmp.ne.s32.totalorder %s6373_s22, %s4816_s9 }
  0x43   : > { %637 = vperm.xlu1 %4777, %v619_v25  }
  0x44   : > { %p4818_p12 = pnand %p4817_p11, %p4975_p5 }
  0x46   : > { %p4819_p13 = pneg %p4818_p12 }
  0x8d   : > { %v380_v33 = vpop.permute.xlu1 %379 }
  0x91   : > { %v438_v37 = vpop.permute.xlu1 %437  ;;  %v4744_v38 = vpop.permute.xlu0 %4743 }
  0x92   : > { %v4746_v40 = vunpack.i.h.bf16 %v4744_v38  ;;  %v4745_v41 = vunpack.i.l.bf16 %v4744_v38 }
  0x94   : > { %v386_v46 = vsel %vm385_vm13, %v380_v33, %v4745_v41  ;;  %v387_v47 = vsel %vm385_vm13, %v4745_v41, %v4746_v40  ;;  %vm5152_vm13 = vcmp.eq.s32.totalorder %v434_v44, 1  ;;  %v509_v44 = vrot.slane %v505_v31, %v5043_v15 }
  0x95   : > { %v409_v49 = vpop.permute.xlu1 %408  ;;  %v4749_v50 = vpop.permute.xlu0 %4748  ;;  %v391_v51 = vsel %vm5130_vm15, %v387_v47, 0.0  ;;  %v390_v53 = vsel %vm5134_vm5, %v386_v46, 0.0  ;;  %vm5174_vm15 = vcmp.eq.s32.totalorder %v405_v52, 1  ;;  %vm5178_vm5 = vcmp.eq.s32.totalorder %v401_v54, 1 }
  0x96   : > { %v4751_v55 = vunpack.i.h.bf16 %v4749_v50  ;;  %v4750_v56 = vunpack.i.l.bf16 %v4749_v50  ;;  %v582_v57 = vrot.slane %v391_v51, 4  ;;  %v581_v58 = vrot.slane %v390_v53, 4 }
  0x97   : > { %v513_v47 = vrot.slane %v505_v31, %v5035_v13  ;;  %v4890_v50 = vmov 1966171168  }
  0x98   : > { %v444_v62 = vsel %vm443_vm0, %v438_v37, %v4750_v56  ;;  %v445_v63 = vsel %vm443_vm0, %v4750_v56, %v4751_v55  ;;  %v605_v0 = vsel %vm603_vm1, %v361_v19, %v582_v57  ;;  %v604_v4 = vsel %vm603_vm1, %v360_v21, %v581_v58  ;;  %vm450_vm0 = vmand %vm5101_vm3, %vm5084_vm11 }
  0x99   : > { %v4764_v7 = vpop.permute.xlu1 %4763  ;;  %v4754_v11 = vpop.permute.xlu0 %4753  ;;  %v449_v18 = vsel %vm5152_vm13, %v445_v63, 0.0  ;;  %v448_v19 = vsel %vm5156_vm14, %v444_v62, 0.0  ;;  %v451_v40 = vsel %vm450_vm0, 1, %v4880_v2  ;;  %vm5213_vm11 = vcmp.eq.s32.totalorder %v534_v59, 1 }
  0x9a   : > { %v4756_v6 = vunpack.i.h.bf16 %v4754_v11  ;;  %v4755_v17 = vunpack.i.l.bf16 %v4754_v11  ;;  %v4766_v20 = vunpack.i.h.bf16 %v4764_v7  ;;  %v4765_v21 = vunpack.i.l.bf16 %v4764_v7 }
  0x9b   : > { %v588_v36 = vrot.slane %v449_v18, 4  ;;  %v587_v37 = vrot.slane %v448_v19, 4  ;;  %vm5217_vm3 = vcmp.eq.s32.totalorder %v484_v10, 1  ;;  %v459_v52 = vrot.slane %v451_v40, %v5035_v13 }
  0x9c   : > { %v416_v24 = vsel %vm414_vm12, %v4755_v17, %v4756_v6  ;;  %v415_v25 = vsel %vm414_vm12, %v409_v49, %v4755_v17  ;;  %v549_v41 = vsel %vm547_vm2, %v4765_v21, %v4766_v20  ;;  %vm554_vm12 = vmand %vm5110_vm9, %vm5105_vm6  ;;  %vm5230_vm13 = vcmp.eq.s32.totalorder %v480_v23, 1 }
  0x9d   : > { %v542_v33 = vpop.permute.xlu1 %541  ;;  %v4759_v34 = vpop.permute.xlu0 %4758  ;;  %v420_v35 = vsel %vm5174_vm15, %v416_v24, 0.0  ;;  %v419_v27 = vsel %vm5178_vm5, %v415_v25, 0.0  ;;  %v553_v53 = vsel %vm5203_vm4, %v549_v41, 0.0  ;;  %vm5234_vm14 = vcmp.eq.s32.totalorder %v509_v44, 1 }
  0x9e   : > { %v4761_v38 = vunpack.i.h.bf16 %v4759_v34  ;;  %v4760_v39 = vunpack.i.l.bf16 %v4759_v34  ;;  %v607_v42 = vsel %vm603_vm1, %v420_v35, %v588_v36  ;;  %v606_v43 = vsel %vm603_vm1, %v419_v27, %v587_v37 }
  0x9f   : > { %v4459_v45 = vpack.c.bf16 %v607_v42, %v605_v0  ;;  %v4461_v46 = vpack.c.bf16 %v606_v43, %v604_v4  ;;  %v548_v57 = vsel %vm547_vm2, %v542_v33, %v4765_v21  ;;  %vm468_vm15 = vcmask 908288  }
  0xa0   : > { %v495_v56 = vsel %vm493_vm8, %v4760_v39, %v4761_v38  ;;  %vm5239_vm5 = vcmp.eq.s32.totalorder %v513_v47, 1  ;;  %v455_v32 = vrot.slane %v451_v40, %v5043_v15  ;;  %v600_v62 = vrot.slane %v553_v53, 4  ;;  %v613_v47 = vld [vmem:[%s6418_s5 + $0x8] sm:$0xff] }
  0xa1   : > { %v4774_v49 = vpop.permute.xlu1 %4773  ;;  %v488_v51 = vpop.permute.xlu0 %487  ;;  %4460 = vmatprep.subr.bf16.mxu0 %v4459_v45  ;;  %v499_v63 = vsel %vm5217_vm3, %v495_v56, 0.0  ;;  %vm5247_vm6 = vcmp.eq.s32.totalorder %v459_v52, 1  ;;  %v555_v11 = vsel %vm554_vm12, 1, %v4880_v2  ;;  %v552_v12 = vsel %vm5213_vm11, %v548_v57, 0.0  ;;  %v612_v45 = vld [vmem:[%s6418_s5] sm:$0xff] }
  0xa2   : > { %v4776_v54 = vunpack.i.h.bf16 %v4774_v49  ;;  %v4775_v55 = vunpack.i.l.bf16 %v4774_v49  ;;  %4462 = vmatpush1.bf16.msra.mxu0 %v4461_v46  ;;  %v494_v60 = vsel %vm493_vm8, %v488_v51, %v4760_v39  ;;  %v594_v18 = vrot.slane %v499_v63, 4  ;;  %v615_v49 = vld [vmem:[%s6418_s5 + $0x18] sm:$0x7] }
  0xa3   : > { %v498_v6 = vsel %vm5230_vm13, %v494_v60, 0.0  ;;  %vm5259_vm9 = vcmp.eq.s32.totalorder %v455_v32, 1  ;;  %v563_v20 = vrot.slane %v555_v11, %v5035_v13  ;;  %v599_v21 = vrot.slane %v552_v12, 4 }
  0xa4   : > { %v524_v30 = vsel %vm522_vm10, %v4775_v55, %v4776_v54  ;;  %v593_v25 = vrot.slane %v498_v6, 4  ;;  %vm572_vm2 = vcmask 769024   ;;  %v559_v38 = vrot.slane %v555_v11, %v5043_v15 }
  0xa5   : > { %v517_v0 = vpop.permute.xlu1 %516  ;;  %v4769_v4 = vpop.permute.xlu0 %4768  ;;  %v528_v17 = vsel %vm5239_vm5, %v524_v30, 0.0  ;;  %vm565_vm7 = vcmp.eq.s32.totalorder %v563_v20, 1  ;;  %vm640_vm0 = vcmask 293888   ;;  %v779_v51 = vunpack.c.l.s4 %v4890_v50  ;;  %v5362_v50 = vld [vmem:[%s5353_s10 + $0x8] sm:$0xff] }
  0xa6   : > { %v523_v14 = vsel %vm522_vm10, %v517_v0, %v4775_v55  ;;  %v4771_v16 = vunpack.i.h.bf16 %v4769_v4  ;;  %v4770_v8 = vunpack.i.l.bf16 %v4769_v4  ;;  %v611_v34 = vsel %vm603_vm1, %v528_v17, %v600_v62 }
  0xa7   : > { %v527_v23 = vsel %vm5234_vm14, %v523_v14, 0.0  ;;  %vm564_vm8 = vcmp.eq.s32.totalorder %v559_v38, 1  ;;  %v780_v52 = vunpack.c.0.s8 %v779_v51  ;;  %vm930_vm5 = vcmask 130048   ;;  %v5368_v51 = vld [vmem:[%s5353_s10 + $0x10] sm:$0xff] }
  0xa8   : > { %v470_v2 = vsel %vm468_vm15, %v4770_v8, %v4771_v16  ;;  %v610_v29 = vsel %vm603_vm1, %v527_v23, %v599_v21 }
  0xa9   : > { %v463_v10 = vpop.permute.xlu0 %462  ;;  %v474_v24 = vsel %vm5247_vm6, %v470_v2, 0.0  ;;  %v571_v36 = vpop.permute.xlu1 %570  ;;  %v5300_v58 = vsub.s32 %v780_v52, %v5020_v9  ;;  %v5374_v52 = vld [vmem:[%s5353_s10 + $0x18] sm:$0xff] }
  0xaa   : > { %v469_v31 = vsel %vm468_vm15, %v463_v10, %v4770_v8  ;;  %v609_v33 = vsel %vm603_vm1, %v474_v24, %v594_v18  ;;  %v5332_v10 = vadd.s32 8, %v5020_v9 }
  0xab   : > { %v473_v35 = vsel %vm5259_vm9, %v469_v31, 0.0  ;;  %v4463_v27 = vpack.c.bf16 %v611_v34, %v609_v33 }
  0xac   : > { %v608_v37 = vsel %vm603_vm1, %v473_v35, %v593_v25 }
  0xad   : > { %v569_v39 = vpop.permute.xlu0 %568  ;;  %4464 = vmatprep.subr.bf16.mxu0 %v4463_v27  ;;  %v4465_v40 = vpack.c.bf16 %v610_v29, %v608_v37 }
  0xae   : > { %v574_v41 = vsel %vm572_vm2, %v569_v39, %v571_v36 }
  0xaf   : > { %v578_v42 = vsel %vm565_vm7, %v574_v41, 0.0  ;;  %4466 = vmatpush1.bf16.msra.mxu0 %v4465_v40 }
  0xb0   : > { %4354 = vmatprep.subr.msk.mxu0 %vm603_vm1, %v578_v42 }
  0xb1   : > { %v567_v43 = vpop.permute.xlu0 %566 }
  0xb2   : > { %v573_v44 = vsel %vm572_vm2, %v567_v43, %v569_v39 }
  0xb3   : > { %v577_v46 = vsel %vm564_vm8, %v573_v44, 0.0 }
  0xb4   : > { %4355 = vmatpush1.msk.msra.mxu0 %vm603_vm1, %v577_v46 }
  0xb5   : > { %4356 = vmatmul.mubr.msk.f32.vlgmr.msra.gmra.mrb[0].mxu0 %vm640_vm0, %v612_v45 }
  0xb6   : > { %729 = vmatprep.mubr.f32.mxu0 %v4888_v22 }
  0xb9   : > { %4357 = vmatmul.mubr.msk.f32.gmra.mrb[2].mxu0 %vm640_vm0, %v613_v47 }
  0xba   : > { %735 = vmatprep.mubr.f32.mxu0 %v4888_v22  ;;  %v623_v53 = vpop.permute.xlu1 %622 }
  0xbd   : > { %4358 = vmatmul.mubr.msk.f32.gmra.mrb[4].mxu0 %vm640_vm0, %v614_v48 }
  0xbe   : > { %741 = vmatprep.mubr.f32.mxu0 %v4888_v22  ;;  %v633_v12 = vpop.permute.xlu1 %632 }
  0xc1   : > { %4359 = vmatmul.mubr.msk.f32.gmra.mrb[6].mxu0 %vm640_vm0, %v615_v49  ;;  %v5356_v49 = vld [vmem:[%s5353_s10] sm:$0xff] }
  0xc2   : > { %1152 = vmatprep.mubr.f32.mxu0 %v4888_v22 }
 0x188   : > { %v725_v54 = vpop.f32.mrb[0].mxu0 }
 0x189   : > { %v5295_v55 = vadd.f32 %v725_v54, %v623_v53  ;;  %v727_v56 = vpop.f32.mrb[1].mxu0  ;;  %v5386_v54 = vld [vmem:[%s5353_s10 + $0x28] sm:$0xff] }
 0x18a   : > { %v5297_v57 = vadd.f32 %v727_v56, %v623_v53  ;;  %v5380_v53 = vld [vmem:[%s5353_s10 + $0x20] sm:$0xff]  ;;  %v5392_v56 = vld [vmem:[%s5353_s10 + $0x30] sm:$0xff] }
 0x18c   : > { %v777_v59 = vcombine.low %v5295_v55, %v5297_v57  ;;  %v1511_v60 = vcombine.high %v5295_v55, %v5297_v57  ;;  %v5306_v61 = vpop.f32.mrb[2].mxu0 }
 0x18d   : > { %v5308_v30 = vpop.f32.mrb[3].mxu0 }
 0x18e   : > { %v5311_v32 = vrot.slane %v777_v59, %v5300_v58  ;;  %v5398_v59 = vld [vmem:[%s5353_s10 + $0x38] sm:$0xff] }
 0x190   : > { %v794_v62 = vcombine.high %v5311_v32, %v5311_v32  ;;  %v737_v63 = vpop.f32.mrb[4].mxu0 }
 0x191   : > { %v739_v0 = vpop.f32.mrb[5].mxu0  ;;  %v5322_v14 = vadd.f32 %v737_v63, %v633_v12  ;;  %v5408_v63 = vrot.slane %v5311_v32, %v5300_v58 }
 0x192   : > { %v5316_v4 = vrot.slane %v794_v62, %v5300_v58  ;;  %v5324_v16 = vadd.f32 %v739_v0, %v633_v12  ;;  %v617_v62 = vld [vmem:[%s6419_s6 + $0x8] sm:$0xff] }
 0x193   : > { %627 = vperm.xlu0 %4778, %v617_v62   ;;  %v793_v0 = vadd.f32 %v5408_v63, %v5006_v5 }
 0x194   : > { %v5318_v7 = vpop.f32.mrb[6].mxu0  ;;  %v803_v8 = vadd.f32 %v5316_v4, %v5002_v3  ;;  %v3630_v6 = vcombine.low %v5322_v14, %v5324_v16 }
 0x195   : > { %v5320_v11 = vpop.f32.mrb[7].mxu0  ;;  %v804_v12 = vfloor.f32 %v793_v0 }
 0x196   : > { %v805_v17 = vfloor.f32 %v803_v8 }
 0x198   : > { %v807_v18 = vsub.f32 %v803_v8, %v805_v17  ;;  %v4658_v19 = vtrunc.f32 %v805_v17  ;;  %v4656_v8 = vtrunc.f32 %v804_v12 }
 0x19a   : > { %v4659_v2 = vcvt.f32.s32 %v4658_v19  ;;  %v882_v20 = vsub.f32 1.0, %v807_v18  ;;  %v919_v31 = vrot.slane %v807_v18, %v5035_v13  ;;  %v915_v41 = vrot.slane %v807_v18, %v5043_v15 }
 0x19b   : > { %v4657_v17 = vcvt.f32.s32 %v4656_v8  ;;  %v806_v19 = vsub.f32 %v793_v0, %v804_v12 }
 0x19c   : > { %v877_v21 = vrot.slane %v4659_v2, %v5035_v13  ;;  %v898_v23 = vadd.s32 1, %v4659_v2  ;;  %v891_v24 = vrot.slane %v882_v20, %v5035_v13  ;;  %v873_v33 = vrot.slane %v4659_v2, %v5043_v15 }
 0x19d   : > { %v887_v38 = vrot.slane %v882_v20, %v5043_v15  ;;  %v838_v18 = vadd.s32 1, %v4657_v17  ;;  %v822_v20 = vsub.f32 1.0, %v806_v19 }
 0x19e   : > { %v906_v25 = vrot.slane %v898_v23, %v5035_v13  ;;  %vm879_vm4 = vcmp.eq.s32.totalorder %v5020_v9, %v877_v21  ;;  %vm881_vm11 = vcmp.eq.s32.totalorder %v5332_v10, %v877_v21  ;;  %vm878_vm12 = vcmp.eq.s32.totalorder %v5020_v9, %v873_v33 }
 0x19f   : > { %v895_v34 = vsel %vm879_vm4, %v891_v24, 0.0  ;;  %v897_v35 = vsel %vm881_vm11, %v891_v24, 0.0  ;;  %vm880_vm13 = vcmp.eq.s32.totalorder %v5332_v10, %v873_v33  ;;  %v902_v39 = vrot.slane %v898_v23, %v5043_v15 }
 0x1a0   : > { %vm908_vm3 = vcmp.eq.s32.totalorder %v5020_v9, %v906_v25  ;;  %vm910_vm10 = vcmp.eq.s32.totalorder %v5332_v10, %v906_v25  ;;  %v894_v42 = vsel %vm878_vm12, %v887_v38, 0.0  ;;  %v896_v43 = vsel %vm880_vm13, %v887_v38, 0.0 }
 0x1a1   : > { %v923_v36 = vsel %vm908_vm3, %v919_v31, 0.0  ;;  %v925_v27 = vsel %vm910_vm10, %v919_v31, 0.0  ;;  %vm907_vm14 = vcmp.eq.s32.totalorder %v5020_v9, %v902_v39  ;;  %vm909_vm15 = vcmp.eq.s32.totalorder %v5332_v10, %v902_v39 }
 0x1a2   : > { %v927_v37 = vadd.f32 %v923_v36, %v895_v34  ;;  %v929_v29 = vadd.f32 %v925_v27, %v897_v35  ;;  %v922_v44 = vsel %vm907_vm14, %v915_v41, 0.0  ;;  %v924_v45 = vsel %vm909_vm15, %v915_v41, 0.0 }
 0x1a3   : > { %v926_v46 = vadd.f32 %v922_v44, %v894_v42  ;;  %v928_v47 = vadd.f32 %v924_v45, %v896_v43  ;;  %v842_v2 = vrot.slane %v838_v18, %v5043_v15  ;;  %v846_v21 = vrot.slane %v838_v18, %v5035_v13 }
 0x1a4   : > { %v4467_v40 = vpack.c.bf16 %v929_v29, %v927_v37  ;;  %v813_v23 = vrot.slane %v4657_v17, %v5043_v15  ;;  %v817_v24 = vrot.slane %v4657_v17, %v5035_v13  ;;  %v827_v32 = vrot.slane %v822_v20, %v5043_v15 }
 0x1a5   : > { %v4469_v48 = vpack.c.bf16 %v928_v47, %v926_v46  ;;  %vm847_vm6 = vcmp.eq.s32.totalorder %v5020_v9, %v842_v2  ;;  %v855_v25 = vrot.slane %v806_v19, %v5043_v15  ;;  %vm848_vm9 = vcmp.eq.s32.totalorder %v5020_v9, %v846_v21 }
 0x1a6   : > { %4468 = vmatprep.subr.bf16.mxu1 %v4467_v40  ;;  %v1172_v31 = vcombine.high %v5316_v4, %v5316_v4  ;;  %vm818_vm2 = vcmp.eq.s32.totalorder %v5020_v9, %v813_v23  ;;  %v831_v33 = vrot.slane %v822_v20, %v5035_v13  ;;  %v859_v34 = vrot.slane %v806_v19, %v5035_v13 }
 0x1a7   : > { %4470 = vmatpush1.bf16.msra.mxu1 %v4469_v48  ;;  %v862_v35 = vsel %vm847_vm6, %v855_v25, 0.0  ;;  %vm819_vm7 = vcmp.eq.s32.totalorder %v5020_v9, %v817_v24  ;;  %vm849_vm8 = vcmp.eq.s32.totalorder %v5332_v10, %v842_v2  ;;  %v834_v27 = vsel %vm818_vm2, %v827_v32, 0.0 }
 0x1a8   : > { %v863_v36 = vsel %vm848_vm9, %v859_v34, 0.0  ;;  %vm850_vm0 = vcmp.eq.s32.totalorder %v5332_v10, %v846_v21  ;;  %v1174_v37 = vadd.f32 %v1172_v31, %v4994_v1  ;;  %v866_v29 = vadd.f32 %v862_v35, %v834_v27 }
 0x1a9   : > { %v835_v38 = vsel %vm819_vm7, %v831_v33, 0.0  ;;  %vm820_vm4 = vcmp.eq.s32.totalorder %v5332_v10, %v813_v23  ;;  %v864_v40 = vsel %vm849_vm8, %v855_v25, 0.0  ;;  %vm821_vm11 = vcmp.eq.s32.totalorder %v5332_v10, %v817_v24 }
 0x1aa   : > { %4364 = vmatmul.mubr.msk.f32.vlgmr.msra.gmra.mrb[0].mxu1 %vm930_vm5, %v5356_v49  ;;  %v867_v39 = vadd.f32 %v863_v36, %v835_v38  ;;  %v865_v43 = vsel %vm850_vm0, %v859_v34, 0.0  ;;  %v836_v45 = vsel %vm820_vm4, %v827_v32, 0.0  ;;  %v1176_v46 = vfloor.f32 %v1174_v37 }
 0x1ab   : > { %1025 = vmatprep.mubr.f32.mxu1 %v4888_v22  ;;  %v5431_v47 = vadd.f32 %v864_v40, %v836_v45  ;;  %v837_v48 = vsel %vm821_vm11, %v831_v33, 0.0  ;;  %vm1084_vm2 = vcmask 523264  }
 0x1ac   : > { %v5433_v1 = vadd.f32 %v865_v43, %v837_v48  ;;  %v4662_v18 = vtrunc.f32 %v1176_v46  ;;  %v1178_v38 = vsub.f32 %v1174_v37, %v1176_v46 }
 0x1ae   : > { %4365 = vmatmul.mubr.msk.f32.gmra.mrb[2].mxu1 %vm930_vm5, %v5362_v50  ;;  %v4663_v24 = vcvt.f32.s32 %v4662_v18  ;;  %v1290_v37 = vrot.slane %v1178_v38, %v5035_v13 }
 0x1af   : > { %1031 = vmatprep.mubr.f32.mxu1 %v4888_v22 }
 0x1b0   : > { %v1269_v35 = vadd.s32 1, %v4663_v24 }
 0x1b2   : > { %4366 = vmatmul.mubr.msk.f32.gmra.mrb[4].mxu1 %vm930_vm5, %v5368_v51  ;;  %v1273_v46 = vrot.slane %v1269_v35, %v5043_v15 }
 0x1b3   : > { %1037 = vmatprep.mubr.f32.mxu1 %v4888_v22 }
 0x1b4   : > { %vm1278_vm14 = vcmp.eq.s32.totalorder %v5020_v9, %v1273_v46  ;;  %vm1280_vm15 = vcmp.eq.s32.totalorder %v5332_v10, %v1273_v46 }
 0x1b6   : > { %4367 = vmatmul.mubr.msk.f32.gmra.mrb[6].mxu1 %vm930_vm5, %v5374_v52 }
 0x1b7   : > { %1043 = vmatprep.mubr.f32.mxu1 %v4888_v22 }
 0x1ba   : > { %4368 = vmatmul.mubr.msk.f32.gmra.mrb[8].mxu1 %vm930_vm5, %v5380_v53 }
 0x1bb   : > { %1049 = vmatprep.mubr.f32.mxu1 %v4888_v22 }
 0x1be   : > { %4369 = vmatmul.mubr.msk.f32.gmra.mrb[10].mxu1 %vm930_vm5, %v5386_v54 }
 0x1bf   : > { %1055 = vmatprep.mubr.f32.mxu1 %v4888_v22 }
 0x1c2   : > { %4370 = vmatmul.mubr.msk.f32.gmra.mrb[12].mxu1 %vm930_vm5, %v5392_v56 }
 0x1c3   : > { %1061 = vmatprep.mubr.f32.mxu1 %v4888_v22 }
 0x1c6   : > { %4371 = vmatmul.mubr.msk.f32.gmra.mrb[14].mxu1 %vm930_vm5, %v5398_v59 }
 0x1c7   : > { %1494 = vmatprep.mubr.f32.mxu1 %v4888_v22 }
 0x27d   : > { %v1021_v4 = vpop.f32.mrb[0].mxu1 }
 0x27e   : > { %v1068_v41 = vmul.f32 %v1021_v4, %v866_v29  ;;  %v1023_v42 = vpop.f32.mrb[1].mxu1 }
 0x27f   : > { %v1069_v44 = vmul.f32 %v1023_v42, %v867_v39  ;;  %v1277_v42 = vrot.slane %v1269_v35, %v5035_v13 }
 0x281   : > { %v1027_v62 = vpop.f32.mrb[2].mxu1  ;;  %vm1279_vm3 = vcmp.eq.s32.totalorder %v5020_v9, %v1277_v42  ;;  %vm1281_vm10 = vcmp.eq.s32.totalorder %v5332_v10, %v1277_v42 }
 0x282   : > { %v1070_v0 = vmul.f32 %v1027_v62, %v5431_v47  ;;  %v1029_v12 = vpop.f32.mrb[3].mxu1  ;;  %v1248_v62 = vrot.slane %v4663_v24, %v5035_v13 }
 0x283   : > { %v1071_v8 = vmul.f32 %v1029_v12, %v5433_v1 }
 0x284   : > { %v4473_v17 = vpack.c.bf16 %v1070_v0, %v1068_v41  ;;  %vm1250_vm12 = vcmp.eq.s32.totalorder %v5020_v9, %v1248_v62  ;;  %vm1252_vm13 = vcmp.eq.s32.totalorder %v5332_v10, %v1248_v62  ;;  %v628_v62 = vpop.permute.xlu0 %627 }
 0x285   : > { %v4471_v19 = vpack.c.bf16 %v1071_v8, %v1069_v44  ;;  %v1033_v2 = vpop.f32.mrb[4].mxu1  ;;  %v1253_v44 = vsub.f32 1.0, %v1178_v38 }
 0x286   : > { %v1072_v20 = vmul.f32 %v1033_v2, %v866_v29  ;;  %v1035_v21 = vpop.f32.mrb[5].mxu1 }
 0x287   : > { %v1073_v23 = vmul.f32 %v1035_v21, %v867_v39  ;;  %4472 = vmatprep.subr.bf16.mxu0 %v4471_v19  ;;  %v1262_v18 = vrot.slane %v1253_v44, %v5035_v13  ;;  %v1244_v19 = vrot.slane %v4663_v24, %v5043_v15  ;;  %v1286_v24 = vrot.slane %v1178_v38, %v5043_v15 }
 0x288   : > { %4474 = vmatpush1.bf16.msra.mxu0 %v4473_v17 }
 0x289   : > { %v1039_v32 = vpop.f32.mrb[6].mxu1  ;;  %vm1249_vm6 = vcmp.eq.s32.totalorder %v5020_v9, %v1244_v19  ;;  %vm1251_vm9 = vcmp.eq.s32.totalorder %v5332_v10, %v1244_v19 }
 0x28a   : > { %v1074_v25 = vmul.f32 %v1039_v32, %v5431_v47  ;;  %v1041_v31 = vpop.f32.mrb[7].mxu1  ;;  %v1296_v32 = vsel %vm1281_vm10, %v1290_v37, 0.0 }
 0x28b   : > { %v1075_v33 = vmul.f32 %v1041_v31, %v5433_v1  ;;  %v1266_v31 = vsel %vm1250_vm12, %v1262_v18, 0.0 }
 0x28c   : > { %v4477_v34 = vpack.c.bf16 %v1074_v25, %v1072_v20 }
 0x28d   : > { %v4475_v36 = vpack.c.bf16 %v1075_v33, %v1073_v23  ;;  %v1045_v27 = vpop.f32.mrb[8].mxu1  ;;  %v1294_v23 = vsel %vm1279_vm3, %v1290_v37, 0.0 }
 0x28e   : > { %v1076_v4 = vmul.f32 %v1045_v27, %v866_v29  ;;  %v1047_v40 = vpop.f32.mrb[9].mxu1  ;;  %v1298_v35 = vadd.f32 %v1294_v23, %v1266_v31 }
 0x28f   : > { %v1077_v41 = vmul.f32 %v1047_v40, %v867_v39  ;;  %4476 = vmatprep.subr.bf16.mxu0 %v4475_v36  ;;  %v1295_v40 = vsel %vm1280_vm15, %v1286_v24, 0.0 }
 0x290   : > { %4478 = vmatpush1.bf16.msra.mxu0 %v4477_v34  ;;  %v1268_v34 = vsel %vm1252_vm13, %v1262_v18, 0.0  ;;  %v1169_v18 = vcombine.high %v5408_v63, %v5408_v63  ;;  %v5510_v63 = vrot.slane %v1511_v60, %v5300_v58 }
 0x291   : > { %v1051_v43 = vpop.f32.mrb[10].mxu1  ;;  %v1300_v27 = vadd.f32 %v1296_v32, %v1268_v34  ;;  %v5517_v34 = vsub.s32 2, %v5020_v9 }
 0x292   : > { %v1078_v45 = vmul.f32 %v1051_v43, %v5431_v47  ;;  %v1053_v48 = vpop.f32.mrb[11].mxu1 }
 0x293   : > { %v1079_v0 = vmul.f32 %v1053_v48, %v5433_v1  ;;  %v4487_v38 = vpack.c.bf16 %v1300_v27, %v1298_v35 }
 0x294   : > { %v4481_v12 = vpack.c.bf16 %v1078_v45, %v1076_v4  ;;  %v1293_v4 = vsel %vm1278_vm14, %v1286_v24, 0.0  ;;  %v1528_v24 = vcombine.high %v5510_v63, %v5510_v63 }
 0x295   : > { %v4479_v8 = vpack.c.bf16 %v1079_v0, %v1077_v41  ;;  %v1057_v17 = vpop.f32.mrb[12].mxu1  ;;  %v5491_v0 = vadd.f32 %v5306_v61, %v628_v62  ;;  %v1171_v61 = vadd.f32 %v1169_v18, %v5006_v5 }
 0x296   : > { %v1080_v2 = vmul.f32 %v1057_v17, %v866_v29  ;;  %v1059_v20 = vpop.f32.mrb[13].mxu1  ;;  %v1258_v29 = vrot.slane %v1253_v44, %v5043_v15  ;;  %v4361_v17 = vmul.f32 -1.442695, %v5324_v16  ;;  %v5527_v57 = vrot.slane %v1528_v24, %v5300_v58 }
 0x297   : > { %v1081_v21 = vmul.f32 %v1059_v20, %v867_v39  ;;  %4480 = vmatprep.subr.bf16.mxu0 %v4479_v8  ;;  %v4360_v8 = vmul.f32 -1.442695, %v5322_v14 }
 0x298   : > { %4482 = vmatpush1.bf16.msra.mxu0 %v4481_v12  ;;  %v1265_v43 = vsel %vm1249_vm6, %v1258_v29, 0.0  ;;  %v1267_v45 = vsel %vm1251_vm9, %v1258_v29, 0.0  ;;  %v5494_v12 = vadd.f32 %v5308_v30, %v628_v62  ;;  %v1175_v30 = vfloor.f32 %v1171_v61 }
 0x299   : > { %v1063_v25 = vpop.f32.mrb[14].mxu1  ;;  %v1297_v48 = vadd.f32 %v1293_v4, %v1265_v43  ;;  %v1299_v44 = vadd.f32 %v1295_v40, %v1267_v45  ;;  %4780 = vpow2.f32 %v4360_v8 }
 0x29a   : > { %v1082_v39 = vmul.f32 %v1063_v25, %v5431_v47  ;;  %v1065_v33 = vpop.f32.mrb[15].mxu1  ;;  %v5462_v47 = vld [vmem:[%s6417_s4] sm:$0xf]  ;;  %v2218_v37 = vcombine.low %v5491_v0, %v5494_v12  ;;  %v2923_v46 = vcombine.high %v5491_v0, %v5494_v12  ;;  %4782 = vpow2.f32 %v4361_v17 }
 0x29b   : > { %v1083_v36 = vmul.f32 %v1065_v33, %v5433_v1  ;;  %v4489_v1 = vpack.c.bf16 %v1299_v44, %v1297_v48  ;;  %v4660_v20 = vtrunc.f32 %v1175_v30  ;;  %v1177_v31 = vsub.f32 %v1171_v61, %v1175_v30 }
 0x29c   : > { %v4485_v41 = vpack.c.bf16 %v1082_v39, %v1080_v2  ;;  %v1537_v17 = vadd.f32 %v5527_v57, %v5082_v26 }
 0x29d   : > { %v4483_v42 = vpack.c.bf16 %v1083_v36, %v1081_v21  ;;  %v4661_v32 = vcvt.f32.s32 %v4660_v20  ;;  %v1193_v39 = vsub.f32 1.0, %v1177_v31  ;;  %v1226_v4 = vrot.slane %v1177_v31, %v5043_v15 }
 0x29f   : > { %4484 = vmatprep.subr.bf16.mxu0 %v4483_v42  ;;  %v1209_v25 = vadd.s32 1, %v4661_v32  ;;  %v1184_v35 = vrot.slane %v4661_v32, %v5043_v15  ;;  %v1188_v27 = vrot.slane %v4661_v32, %v5035_v13  ;;  %v1198_v60 = vrot.slane %v1193_v39, %v5043_v15 }
 0x2a0   : > { %4486 = vmatpush1.bf16.msra.mxu0 %v4485_v41  ;;  %v1202_v41 = vrot.slane %v1193_v39, %v5035_v13  ;;  %v1230_v42 = vrot.slane %v1177_v31, %v5035_v13  ;;  %v1539_v31 = vfloor.f32 %v1537_v17 }
 0x2a1   : > { %4488 = vmatprep.subr.bf16.mxu0 %v4487_v38  ;;  %v1213_v29 = vrot.slane %v1209_v25, %v5043_v15  ;;  %v1217_v33 = vrot.slane %v1209_v25, %v5035_v13  ;;  %vm1189_vm0 = vcmp.eq.s32.totalorder %v5020_v9, %v1184_v35  ;;  %vm1190_vm4 = vcmp.eq.s32.totalorder %v5020_v9, %v1188_v27 }
 0x2a2   : > { %v1205_v8 = vsel %vm1189_vm0, %v1198_v60, 0.0  ;;  %v1206_v61 = vsel %vm1190_vm4, %v1202_v41, 0.0  ;;  %vm1191_vm10 = vcmp.eq.s32.totalorder %v5332_v10, %v1184_v35  ;;  %vm1192_vm12 = vcmp.eq.s32.totalorder %v5332_v10, %v1188_v27 }
 0x2a3   : > { %4372 = vmatmul.mubr.msk.f32.vlgmr.msra.gmra.mrb[8].mxu0 %vm1084_vm2, %v5462_v47  ;;  %v4781_v19 = vpop.eup %4780  ;;  %vm1218_vm7 = vcmp.eq.s32.totalorder %v5020_v9, %v1213_v29  ;;  %vm1219_vm8 = vcmp.eq.s32.totalorder %v5020_v9, %v1217_v33  ;;  %vm1220_vm11 = vcmp.eq.s32.totalorder %v5332_v10, %v1213_v29  ;;  %vm1221_vm3 = vcmp.eq.s32.totalorder %v5332_v10, %v1217_v33 }
 0x2a4   : > { %4490 = vmatpush1.bf16.msra.mxu0 %v4489_v1  ;;  %1365 = vmatprep.mubr.f32.mxu0 %v4888_v22  ;;  %v4783_v2 = vpop.eup %4782  ;;  %v760_v21 = vadd.f32 1.0, %v4781_v19  ;;  %v1233_v48 = vsel %vm1218_vm7, %v1226_v4, 0.0  ;;  %v1234_v1 = vsel %vm1219_vm8, %v1230_v42, 0.0  ;;  %v1207_v25 = vsel %vm1191_vm10, %v1198_v60, 0.0 }
 0x2a5   : > { %v761_v23 = vadd.f32 1.0, %v4783_v2  ;;  %v1237_v18 = vadd.f32 %v1233_v48, %v1205_v8  ;;  %v1238_v19 = vadd.f32 %v1234_v1, %v1206_v61  ;;  %v1235_v2 = vsel %vm1220_vm11, %v1226_v4, 0.0 }
 0x2a6   : > { %4784 = vrcp.f32 %v760_v21  ;;  %v5550_v29 = vadd.f32 %v1235_v2, %v1207_v25  ;;  %v1208_v24 = vsel %vm1192_vm12, %v1202_v41, 0.0  ;;  %v4666_v4 = vtrunc.f32 %v1539_v31 }
 0x2a7   : > { %4373 = vmatmul.mubr.msk.f32.vlgmr.msra.gmra.mrb[10].mxu0 %vm930_vm5, %v5356_v49  ;;  %4786 = vrcp.f32 %v761_v23  ;;  %v1236_v23 = vsel %vm1221_vm3, %v1230_v42, 0.0  ;;  %vm4029_vm10 = vcmask 1041408  }
 0x2a8   : > { %1371 = vmatprep.mubr.f32.mxu0 %v4888_v22  ;;  %v5552_v33 = vadd.f32 %v1236_v23, %v1208_v24  ;;  %v4667_v60 = vcvt.f32.s32 %v4666_v4  ;;  %v1541_v23 = vsub.f32 %v1537_v17, %v1539_v31 }
 0x2aa   : > { %v1653_v17 = vrot.slane %v1541_v23, %v5035_v13 }
 0x2ab   : > { %4374 = vmatmul.mubr.msk.f32.gmra.mrb[12].mxu0 %vm930_vm5, %v5362_v50 }
 0x2ac   : > { %1377 = vmatprep.mubr.f32.mxu0 %v4888_v22 }
 0x2af   : > { %4375 = vmatmul.mubr.msk.f32.gmra.mrb[14].mxu0 %vm930_vm5, %v5368_v51 }
 0x2b0   : > { %1383 = vmatprep.mubr.f32.mxu0 %v4888_v22  ;;  %v5520_v36 = vpop.eup %4784 }
 0x2b1   : > { %v5523_v55 = vpop.eup %4786  ;;  %v1162_v40 = vrot.slane %v5520_v36, %v5517_v34 }
 0x2b2   : > { %v1166_v45 = vrot.slane %v5523_v55, %v5517_v34 }
 0x2b3   : > { %4376 = vmatmul.mubr.msk.f32.gmra.mrb[16].mxu0 %vm930_vm5, %v5374_v52 }
 0x2b4   : > { %1389 = vmatprep.mubr.f32.mxu0 %v4888_v22 }
 0x2b7   : > { %4377 = vmatmul.mubr.msk.f32.gmra.mrb[18].mxu0 %vm930_vm5, %v5380_v53 }
 0x2b8   : > { %1395 = vmatprep.mubr.f32.mxu0 %v4888_v22 }
 0x2bb   : > { %4378 = vmatmul.mubr.msk.f32.gmra.mrb[20].mxu0 %vm930_vm5, %v5386_v54 }
 0x2bc   : > { %1401 = vmatprep.mubr.f32.mxu0 %v4888_v22 }
 0x2bf   : > { %4379 = vmatmul.mubr.msk.f32.gmra.mrb[22].mxu0 %vm930_vm5, %v5392_v56 }
 0x2c0   : > { %1407 = vmatprep.mubr.f32.mxu0 %v4888_v22 }
 0x2c3   : > { %4380 = vmatmul.mubr.msk.f32.gmra.mrb[24].mxu0 %vm930_vm5, %v5398_v59 }
 0x2c4   : > { %1857 = vmatprep.mubr.f32.mxu0 %v4888_v22 }
 0x376   : > { %v1154_v43 = vpop.f32.mrb[8].mxu0 }
 0x377   : > { %v5540_v44 = vmul.f32 %v1162_v40, %v1154_v43  ;;  %v1156_v38 = vpop.f32.mrb[9].mxu0 }
 0x378   : > { %v5543_v62 = vmul.f32 %v1166_v45, %v1156_v38 }
 0x37a   : > { %v1367_v30 = vpop.f32.mrb[10].mxu0 }
 0x37b   : > { %v1414_v20 = vmul.f32 %v1367_v30, %v1237_v18  ;;  %v1369_v21 = vpop.f32.mrb[11].mxu0 }
 0x37c   : > { %v1415_v32 = vmul.f32 %v1369_v21, %v1238_v19  ;;  %v1632_v21 = vadd.s32 1, %v4667_v60 }
 0x37e   : > { %v1373_v39 = vpop.f32.mrb[12].mxu0  ;;  %v1636_v31 = vrot.slane %v1632_v21, %v5043_v15 }
 0x37f   : > { %v1416_v40 = vmul.f32 %v1373_v39, %v5550_v29  ;;  %v1375_v35 = vpop.f32.mrb[13].mxu0 }
 0x380   : > { %v1417_v43 = vmul.f32 %v1375_v35, %v5552_v33  ;;  %vm1641_vm9 = vcmp.eq.s32.totalorder %v5020_v9, %v1636_v31  ;;  %vm1643_vm7 = vcmp.eq.s32.totalorder %v5332_v10, %v1636_v31 }
 0x381   : > { %v4493_v45 = vpack.c.bf16 %v1416_v40, %v1414_v20  ;;  %v1640_v40 = vrot.slane %v1632_v21, %v5035_v13 }
 0x382   : > { %v4491_v27 = vpack.c.bf16 %v1417_v43, %v1415_v32  ;;  %v1379_v48 = vpop.f32.mrb[14].mxu0  ;;  %v1616_v43 = vsub.f32 1.0, %v1541_v23 }
 0x383   : > { %v1418_v38 = vmul.f32 %v1379_v48, %v1237_v18  ;;  %v1381_v42 = vpop.f32.mrb[15].mxu0  ;;  %vm1642_vm13 = vcmp.eq.s32.totalorder %v5020_v9, %v1640_v40  ;;  %vm1644_vm14 = vcmp.eq.s32.totalorder %v5332_v10, %v1640_v40 }
 0x384   : > { %v1419_v1 = vmul.f32 %v1381_v42, %v1238_v19  ;;  %4492 = vmatprep.subr.bf16.mxu1 %v4491_v27  ;;  %v1611_v27 = vrot.slane %v4667_v60, %v5035_v13 }
 0x385   : > { %4494 = vmatpush1.bf16.msra.mxu1 %v4493_v45 }
 0x386   : > { %v1385_v8 = vpop.f32.mrb[16].mxu0  ;;  %vm1613_vm15 = vcmp.eq.s32.totalorder %v5020_v9, %v1611_v27  ;;  %vm1615_vm6 = vcmp.eq.s32.totalorder %v5332_v10, %v1611_v27 }
 0x387   : > { %v1420_v41 = vmul.f32 %v1385_v8, %v5550_v29  ;;  %v1387_v61 = vpop.f32.mrb[17].mxu0  ;;  %v1625_v8 = vrot.slane %v1616_v43, %v5035_v13 }
 0x388   : > { %v1421_v30 = vmul.f32 %v1387_v61, %v5552_v33 }
 0x389   : > { %v4497_v2 = vpack.c.bf16 %v1420_v41, %v1418_v38  ;;  %v1607_v41 = vrot.slane %v4667_v60, %v5043_v15  ;;  %v1649_v60 = vrot.slane %v1541_v23, %v5043_v15 }
 0x38a   : > { %v4495_v25 = vpack.c.bf16 %v1421_v30, %v1419_v1  ;;  %v1391_v24 = vpop.f32.mrb[18].mxu0 }
 0x38b   : > { %v1422_v20 = vmul.f32 %v1391_v24, %v1237_v18  ;;  %v1393_v32 = vpop.f32.mrb[19].mxu0  ;;  %v1659_v24 = vsel %vm1644_vm14, %v1653_v17, 0.0  ;;  %vm1612_vm8 = vcmp.eq.s32.totalorder %v5020_v9, %v1607_v41  ;;  %vm1614_vm0 = vcmp.eq.s32.totalorder %v5332_v10, %v1607_v41 }
 0x38c   : > { %v1423_v39 = vmul.f32 %v1393_v32, %v1238_v19  ;;  %4496 = vmatprep.subr.bf16.mxu1 %v4495_v25  ;;  %v1657_v25 = vsel %vm1642_vm13, %v1653_v17, 0.0  ;;  %v1658_v27 = vsel %vm1643_vm7, %v1649_v60, 0.0 }
 0x38d   : > { %4498 = vmatpush1.bf16.msra.mxu1 %v4497_v2 }
 0x38e   : > { %v1397_v35 = vpop.f32.mrb[20].mxu0 }
 0x38f   : > { %v1424_v4 = vmul.f32 %v1397_v35, %v5550_v29  ;;  %v1399_v45 = vpop.f32.mrb[21].mxu0 }
 0x390   : > { %v1425_v48 = vmul.f32 %v1399_v45, %v5552_v33  ;;  %v1656_v45 = vsel %vm1641_vm9, %v1649_v60, 0.0 }
 0x391   : > { %v4501_v38 = vpack.c.bf16 %v1424_v4, %v1422_v20  ;;  %v1629_v20 = vsel %vm1613_vm15, %v1625_v8, 0.0 }
 0x392   : > { %v4499_v42 = vpack.c.bf16 %v1425_v48, %v1423_v39  ;;  %v1403_v1 = vpop.f32.mrb[22].mxu0  ;;  %v1631_v39 = vsel %vm1615_vm6, %v1625_v8, 0.0  ;;  %v1661_v40 = vadd.f32 %v1657_v25, %v1629_v20  ;;  %v1877_v20 = vcombine.high %v5527_v57, %v5527_v57 }
 0x393   : > { %v1426_v61 = vmul.f32 %v1403_v1, %v1237_v18  ;;  %v1405_v30 = vpop.f32.mrb[23].mxu0  ;;  %v1621_v18 = vrot.slane %v1616_v43, %v5043_v15  ;;  %v1663_v4 = vadd.f32 %v1659_v24, %v1631_v39 }
 0x394   : > { %v1427_v2 = vmul.f32 %v1405_v30, %v1238_v19  ;;  %4500 = vmatprep.subr.bf16.mxu1 %v4499_v42 }
 0x395   : > { %4502 = vmatpush1.bf16.msra.mxu1 %v4501_v38  ;;  %v1628_v17 = vsel %vm1612_vm8, %v1621_v18, 0.0  ;;  %v1630_v31 = vsel %vm1614_vm0, %v1621_v18, 0.0  ;;  %v4507_v23 = vpack.c.bf16 %v1663_v4, %v1661_v40  ;;  %v1503_v18 = vsub.s32 3, %v5020_v9 }
 0x396   : > { %v1409_v21 = vpop.f32.mrb[24].mxu0  ;;  %v1660_v42 = vadd.f32 %v1656_v45, %v1628_v17  ;;  %v1662_v43 = vadd.f32 %v1658_v27, %v1630_v31 }
 0x397   : > { %v1428_v19 = vmul.f32 %v1409_v21, %v5550_v29  ;;  %v1411_v32 = vpop.f32.mrb[25].mxu0  ;;  %v1508_v57 = vrot.slane %v5523_v55, %v1503_v18 }
 0x398   : > { %v1429_v35 = vmul.f32 %v1411_v32, %v5552_v33  ;;  %v4509_v29 = vpack.c.bf16 %v1662_v43, %v1660_v42  ;;  %v5607_v33 = vrot.slane %v5510_v63, %v5300_v58  ;;  %v1504_v32 = vrot.slane %v5520_v36, %v1503_v18 }
 0x399   : > { %v4505_v48 = vpack.c.bf16 %v1428_v19, %v1426_v61  ;;  %v5622_v19 = vadd.f32 %v1877_v20, %v5002_v3  ;;  %v4128_v42 = vrot.slane %v5543_v62, 2 }
 0x39a   : > { %v4503_v38 = vpack.c.bf16 %v1429_v35, %v1427_v2  ;;  %v1527_v1 = vadd.f32 %v5607_v33, %v5006_v5 }
 0x39c   : > { %4504 = vmatprep.subr.bf16.mxu1 %v4503_v38  ;;  %v1538_v8 = vfloor.f32 %v1527_v1 }
 0x39d   : > { %4506 = vmatpush1.bf16.msra.mxu1 %v4505_v48  ;;  %v4127_v48 = vrot.slane %v5540_v44, 2 }
 0x39e   : > { %4508 = vmatprep.subr.bf16.mxu1 %v4507_v23  ;;  %v4664_v41 = vtrunc.f32 %v1538_v8  ;;  %v1540_v30 = vsub.f32 %v1527_v1, %v1538_v8 }
 0x3a0   : > { %4381 = vmatmul.mubr.msk.f32.vlgmr.msra.gmra.mrb[16].mxu1 %vm1084_vm2, %v5462_v47  ;;  %v4665_v61 = vcvt.f32.s32 %v4664_v41  ;;  %v1556_v25 = vsub.f32 1.0, %v1540_v30  ;;  %v1589_v39 = vrot.slane %v1540_v30, %v5043_v15  ;;  %v1593_v4 = vrot.slane %v1540_v30, %v5035_v13 }
 0x3a1   : > { %4510 = vmatpush1.bf16.msra.mxu1 %v4509_v29  ;;  %1728 = vmatprep.mubr.f32.mxu1 %v4888_v22 }
 0x3a2   : > { %v1572_v2 = vadd.s32 1, %v4665_v61  ;;  %v1547_v24 = vrot.slane %v4665_v61, %v5043_v15  ;;  %v1561_v60 = vrot.slane %v1556_v25, %v5043_v15  ;;  %v1551_v5 = vrot.slane %v4665_v61, %v5035_v13 }
 0x3a3   : > { %v1565_v35 = vrot.slane %v1556_v25, %v5035_v13 }
 0x3a4   : > { %4382 = vmatmul.mubr.msk.f32.vlgmr.msra.gmra.mrb[18].mxu1 %vm930_vm5, %v5356_v49  ;;  %v1576_v21 = vrot.slane %v1572_v2, %v5043_v15  ;;  %v1580_v63 = vrot.slane %v1572_v2, %v5035_v13  ;;  %vm1552_vm4 = vcmp.eq.s32.totalorder %v5020_v9, %v1547_v24  ;;  %vm1553_vm12 = vcmp.eq.s32.totalorder %v5020_v9, %v1551_v5 }
 0x3a5   : > { %1734 = vmatprep.mubr.f32.mxu1 %v4888_v22  ;;  %v1568_v40 = vsel %vm1552_vm4, %v1561_v60, 0.0  ;;  %vm1554_vm13 = vcmp.eq.s32.totalorder %v5332_v10, %v1547_v24  ;;  %vm1555_vm15 = vcmp.eq.s32.totalorder %v5332_v10, %v1551_v5  ;;  %v1569_v8 = vsel %vm1553_vm12, %v1565_v35, 0.0 }
 0x3a6   : > { %vm1581_vm11 = vcmp.eq.s32.totalorder %v5020_v9, %v1576_v21  ;;  %vm1582_vm3 = vcmp.eq.s32.totalorder %v5020_v9, %v1580_v63  ;;  %vm1583_vm14 = vcmp.eq.s32.totalorder %v5332_v10, %v1576_v21  ;;  %vm1584_vm6 = vcmp.eq.s32.totalorder %v5332_v10, %v1580_v63 }
 0x3a7   : > { %v1596_v27 = vsel %vm1581_vm11, %v1589_v39, 0.0  ;;  %v1597_v31 = vsel %vm1582_vm3, %v1593_v4, 0.0  ;;  %v1598_v25 = vsel %vm1583_vm14, %v1589_v39, 0.0  ;;  %v1599_v63 = vsel %vm1584_vm6, %v1593_v4, 0.0 }
 0x3a8   : > { %4383 = vmatmul.mubr.msk.f32.gmra.mrb[20].mxu1 %vm930_vm5, %v5362_v50  ;;  %v1600_v1 = vadd.f32 %v1596_v27, %v1568_v40  ;;  %v1601_v2 = vadd.f32 %v1597_v31, %v1569_v8  ;;  %v1570_v40 = vsel %vm1554_vm13, %v1561_v60, 0.0  ;;  %v1571_v39 = vsel %vm1555_vm15, %v1565_v35, 0.0 }
 0x3a9   : > { %1740 = vmatprep.mubr.f32.mxu1 %v4888_v22  ;;  %v5654_v27 = vadd.f32 %v1598_v25, %v1570_v40 }
 0x3ac   : > { %4384 = vmatmul.mubr.msk.f32.gmra.mrb[22].mxu1 %vm930_vm5, %v5368_v51 }
 0x3ad   : > { %1746 = vmatprep.mubr.f32.mxu1 %v4888_v22 }
 0x3b0   : > { %4385 = vmatmul.mubr.msk.f32.gmra.mrb[24].mxu1 %vm930_vm5, %v5374_v52 }
 0x3b1   : > { %1752 = vmatprep.mubr.f32.mxu1 %v4888_v22 }
 0x3b4   : > { %4386 = vmatmul.mubr.msk.f32.gmra.mrb[26].mxu1 %vm930_vm5, %v5380_v53 }
 0x3b5   : > { %1758 = vmatprep.mubr.f32.mxu1 %v4888_v22 }
 0x3b8   : > { %4387 = vmatmul.mubr.msk.f32.gmra.mrb[28].mxu1 %vm930_vm5, %v5386_v54 }
 0x3b9   : > { %1764 = vmatprep.mubr.f32.mxu1 %v4888_v22 }
 0x3bc   : > { %4388 = vmatmul.mubr.msk.f32.gmra.mrb[30].mxu1 %vm930_vm5, %v5392_v56 }
 0x3bd   : > { %1770 = vmatprep.mubr.f32.mxu1 %v4888_v22 }
 0x3c0   : > { %4389 = vmatmul.mubr.msk.f32.gmra.mrb[32].mxu1 %vm930_vm5, %v5398_v59 }
 0x3c1   : > { %2199 = vmatprep.mubr.f32.mxu1 %v4888_v22 }
 0x473   : > { %v1496_v45 = vpop.f32.mrb[16].mxu1 }
 0x474   : > { %v1509_v38 = vmul.f32 %v1504_v32, %v1496_v45  ;;  %v1498_v17 = vpop.f32.mrb[17].mxu1  ;;  %v1881_v45 = vfloor.f32 %v5622_v19 }
 0x475   : > { %v1510_v43 = vmul.f32 %v1508_v57, %v1498_v17 }
 0x476   : > { %v3995_v23 = vrot.slane %v1509_v38, 6  ;;  %v5638_v29 = vsel %vm4029_vm10, %v4127_v48, %v1509_v38  ;;  %v5658_v48 = vadd.f32 %v1599_v63, %v1571_v39  ;;  %v4670_v31 = vtrunc.f32 %v1881_v45 }
 0x477   : > { %v3996_v41 = vrot.slane %v1510_v43, 6  ;;  %v5641_v61 = vsel %vm4029_vm10, %v4128_v42, %v1510_v43  ;;  %v1730_v30 = vpop.f32.mrb[18].mxu1 }
 0x478   : > { %v5645_v21 = vsel %vm4029_vm10, %v5540_v44, %v3995_v23  ;;  %v1777_v20 = vmul.f32 %v1730_v30, %v1600_v1  ;;  %v1732_v18 = vpop.f32.mrb[19].mxu1  ;;  %v4671_v8 = vcvt.f32.s32 %v4670_v31 }
 0x479   : > { %v5649_v32 = vsel %vm4029_vm10, %v5543_v62, %v3996_v41  ;;  %v1778_v57 = vmul.f32 %v1732_v18, %v1601_v2 }
 0x47a   : > { %v1974_v18 = vadd.s32 1, %v4671_v8 }
 0x47b   : > { %v1736_v44 = vpop.f32.mrb[20].mxu1 }
 0x47c   : > { %v1779_v4 = vmul.f32 %v1736_v44, %v5654_v27  ;;  %v1738_v38 = vpop.f32.mrb[21].mxu1 }
 0x47d   : > { %v1780_v62 = vmul.f32 %v1738_v38, %v5658_v48 }
 0x47e   : > { %v4513_v17 = vpack.c.bf16 %v1779_v4, %v1777_v20  ;;  %v1883_v20 = vsub.f32 %v5622_v19, %v1881_v45  ;;  %v1982_v4 = vrot.slane %v1974_v18, %v5035_v13  ;;  %v1978_v45 = vrot.slane %v1974_v18, %v5043_v15 }
 0x47f   : > { %v4511_v42 = vpack.c.bf16 %v1780_v62, %v1778_v57  ;;  %v1742_v24 = vpop.f32.mrb[22].mxu1 }
 0x480   : > { %v1781_v60 = vmul.f32 %v1742_v24, %v1600_v1  ;;  %v1744_v43 = vpop.f32.mrb[23].mxu1  ;;  %v1958_v62 = vsub.f32 1.0, %v1883_v20  ;;  %vm1984_vm9 = vcmp.eq.s32.totalorder %v5020_v9, %v1982_v4  ;;  %v1995_v19 = vrot.slane %v1883_v20, %v5035_v13 }
 0x481   : > { %v1782_v23 = vmul.f32 %v1744_v43, %v1601_v2  ;;  %4512 = vmatprep.subr.bf16.mxu0 %v4511_v42  ;;  %v1953_v42 = vrot.slane %v4671_v8, %v5035_v13  ;;  %vm1986_vm7 = vcmp.eq.s32.totalorder %v5332_v10, %v1982_v4  ;;  %vm1983_vm4 = vcmp.eq.s32.totalorder %v5020_v9, %v1978_v45 }
 0x482   : > { %4514 = vmatpush1.bf16.msra.mxu0 %v4513_v17  ;;  %vm1985_vm11 = vcmp.eq.s32.totalorder %v5332_v10, %v1978_v45 }
 0x483   : > { %v1748_v5 = vpop.f32.mrb[24].mxu1  ;;  %vm1955_vm8 = vcmp.eq.s32.totalorder %v5020_v9, %v1953_v42  ;;  %vm1957_vm0 = vcmp.eq.s32.totalorder %v5332_v10, %v1953_v42 }
 0x484   : > { %v1783_v35 = vmul.f32 %v1748_v5, %v5654_v27  ;;  %v1750_v41 = vpop.f32.mrb[25].mxu1  ;;  %v1967_v5 = vrot.slane %v1958_v62, %v5035_v13 }
 0x485   : > { %v1784_v30 = vmul.f32 %v1750_v41, %v5658_v48 }
 0x486   : > { %v4517_v25 = vpack.c.bf16 %v1783_v35, %v1781_v60  ;;  %v1949_v35 = vrot.slane %v4671_v8, %v5043_v15  ;;  %v1991_v8 = vrot.slane %v1883_v20, %v5043_v15 }
 0x487   : > { %v4515_v63 = vpack.c.bf16 %v1784_v30, %v1782_v23  ;;  %v1754_v40 = vpop.f32.mrb[26].mxu1 }
 0x488   : > { %v1785_v57 = vmul.f32 %v1754_v40, %v1600_v1  ;;  %v1756_v39 = vpop.f32.mrb[27].mxu1  ;;  %v2001_v40 = vsel %vm1986_vm7, %v1995_v19, 0.0  ;;  %vm1954_vm3 = vcmp.eq.s32.totalorder %v5020_v9, %v1949_v35  ;;  %vm1956_vm12 = vcmp.eq.s32.totalorder %v5332_v10, %v1949_v35 }
 0x489   : > { %v1786_v44 = vmul.f32 %v1756_v39, %v1601_v2  ;;  %4516 = vmatprep.subr.bf16.mxu0 %v4515_v63  ;;  %v1999_v63 = vsel %vm1984_vm9, %v1995_v19, 0.0  ;;  %v2000_v42 = vsel %vm1985_vm11, %v1991_v8, 0.0 }
 0x48a   : > { %4518 = vmatpush1.bf16.msra.mxu0 %v4517_v25 }
 0x48b   : > { %v1760_v38 = vpop.f32.mrb[28].mxu1 }
 0x48c   : > { %v1787_v17 = vmul.f32 %v1760_v38, %v5654_v27  ;;  %v1762_v31 = vpop.f32.mrb[29].mxu1 }
 0x48d   : > { %v1788_v24 = vmul.f32 %v1762_v31, %v5658_v48  ;;  %v1998_v31 = vsel %vm1983_vm4, %v1991_v8, 0.0 }
 0x48e   : > { %v4521_v60 = vpack.c.bf16 %v1787_v17, %v1785_v57  ;;  %v1971_v57 = vsel %vm1955_vm8, %v1967_v5, 0.0 }
 0x48f   : > { %v4519_v43 = vpack.c.bf16 %v1788_v24, %v1786_v44  ;;  %v1766_v23 = vpop.f32.mrb[30].mxu1  ;;  %v1973_v44 = vsel %vm1957_vm0, %v1967_v5, 0.0  ;;  %v2003_v4 = vadd.f32 %v1999_v63, %v1971_v57 }
 0x490   : > { %v1789_v41 = vmul.f32 %v1766_v23, %v1600_v1  ;;  %v1768_v30 = vpop.f32.mrb[31].mxu1  ;;  %v1963_v1 = vrot.slane %v1958_v62, %v5043_v15  ;;  %v2005_v17 = vadd.f32 %v2001_v40, %v1973_v44 }
 0x491   : > { %v1790_v25 = vmul.f32 %v1768_v30, %v1601_v2  ;;  %4520 = vmatprep.subr.bf16.mxu0 %v4519_v43  ;;  %v1866_v30 = vsub.s32 4, %v5020_v9 }
 0x492   : > { %4522 = vmatpush1.bf16.msra.mxu0 %v4521_v60  ;;  %v1970_v19 = vsel %vm1954_vm3, %v1963_v1, 0.0  ;;  %v1972_v45 = vsel %vm1956_vm12, %v1963_v1, 0.0  ;;  %v4527_v20 = vpack.c.bf16 %v2005_v17, %v2003_v4 }
 0x493   : > { %v1772_v18 = vpop.f32.mrb[32].mxu1  ;;  %v2002_v43 = vadd.f32 %v1998_v31, %v1970_v19  ;;  %v2004_v62 = vadd.f32 %v2000_v42, %v1972_v45  ;;  %v1867_v1 = vrot.slane %v5520_v36, %v1866_v30 }
 0x494   : > { %v1791_v2 = vmul.f32 %v1772_v18, %v5654_v27  ;;  %v1774_v39 = vpop.f32.mrb[33].mxu1 }
 0x495   : > { %v1792_v38 = vmul.f32 %v1774_v39, %v5658_v48  ;;  %v4529_v27 = vpack.c.bf16 %v2004_v62, %v2002_v43  ;;  %v1871_v39 = vrot.slane %v5523_v55, %v1866_v30 }
 0x496   : > { %v4525_v24 = vpack.c.bf16 %v1791_v2, %v1789_v41 }
 0x497   : > { %v4523_v60 = vpack.c.bf16 %v1792_v38, %v1790_v25 }
 0x499   : > { %4524 = vmatprep.subr.bf16.mxu0 %v4523_v60  ;;  %v5754_v60 = vld [vmem:[%s6416_s3] sm:$0x3] }
 0x49a   : > { %4526 = vmatpush1.bf16.msra.mxu0 %v4525_v24 }
 0x49b   : > { %4528 = vmatprep.subr.bf16.mxu0 %v4527_v20 }
 0x49d   : > { %4390 = vmatmul.mubr.msk.f32.vlgmr.msra.gmra.mrb[26].mxu0 %vm1084_vm2, %v5462_v47 }
 0x49e   : > { %4530 = vmatpush1.bf16.msra.mxu0 %v4529_v27  ;;  %2070 = vmatprep.mubr.f32.mxu0 %v4888_v22 }
 0x4a1   : > { %4391 = vmatmul.mubr.msk.f32.vlgmr.msra.gmra.mrb[28].mxu0 %vm930_vm5, %v5356_v49  ;;  %v1874_v49 = vcombine.high %v5607_v33, %v5607_v33 }
 0x4a2   : > { %2076 = vmatprep.mubr.f32.mxu0 %v4888_v22 }
 0x4a5   : > { %4392 = vmatmul.mubr.msk.f32.gmra.mrb[30].mxu0 %vm930_vm5, %v5362_v50  ;;  %v5717_v50 = vld [vmem:[%s6415_s2] sm:$0x3] }
 0x4a6   : > { %2082 = vmatprep.mubr.f32.mxu0 %v4888_v22 }
 0x4a9   : > { %4393 = vmatmul.mubr.msk.f32.gmra.mrb[32].mxu0 %vm930_vm5, %v5368_v51  ;;  %v1876_v51 = vadd.f32 %v5717_v50, %v1874_v49 }
 0x4aa   : > { %2088 = vmatprep.mubr.f32.mxu0 %v4888_v22 }
 0x4ad   : > { %4394 = vmatmul.mubr.msk.f32.gmra.mrb[34].mxu0 %vm930_vm5, %v5374_v52  ;;  %v1880_v52 = vfloor.f32 %v1876_v51 }
 0x4ae   : > { %2094 = vmatprep.mubr.f32.mxu0 %v4888_v22 }
 0x4af   : > { %v1882_v48 = vsub.f32 %v1876_v51, %v1880_v52 }
 0x4b1   : > { %4395 = vmatmul.mubr.msk.f32.gmra.mrb[36].mxu0 %vm930_vm5, %v5380_v53  ;;  %v4668_v53 = vtrunc.f32 %v1880_v52  ;;  %v1898_v23 = vsub.f32 1.0, %v1882_v48  ;;  %v1935_v8 = vrot.slane %v1882_v48, %v5035_v13 }
 0x4b2   : > { %2100 = vmatprep.mubr.f32.mxu0 %v4888_v22 }
 0x4b3   : > { %v1903_v63 = vrot.slane %v1898_v23, %v5043_v15  ;;  %v1907_v18 = vrot.slane %v1898_v23, %v5035_v13 }
 0x4b5   : > { %4396 = vmatmul.mubr.msk.f32.gmra.mrb[38].mxu0 %vm930_vm5, %v5386_v54  ;;  %v4669_v54 = vcvt.f32.s32 %v4668_v53 }
 0x4b6   : > { %2106 = vmatprep.mubr.f32.mxu0 %v4888_v22 }
 0x4b7   : > { %v1889_v5 = vrot.slane %v4669_v54, %v5043_v15  ;;  %v1893_v25 = vrot.slane %v4669_v54, %v5035_v13 }
 0x4b9   : > { %4397 = vmatmul.mubr.msk.f32.gmra.mrb[40].mxu0 %vm930_vm5, %v5392_v56  ;;  %v1914_v56 = vadd.s32 1, %v4669_v54  ;;  %vm1894_vm14 = vcmp.eq.s32.totalorder %v5020_v9, %v1889_v5  ;;  %vm1895_vm6 = vcmp.eq.s32.totalorder %v5020_v9, %v1893_v25  ;;  %vm1896_vm7 = vcmp.eq.s32.totalorder %v5332_v10, %v1889_v5 }
 0x4ba   : > { %2112 = vmatprep.mubr.f32.mxu0 %v4888_v22  ;;  %v1910_v44 = vsel %vm1894_vm14, %v1903_v63, 0.0  ;;  %v1911_v24 = vsel %vm1895_vm6, %v1907_v18, 0.0  ;;  %vm1897_vm0 = vcmp.eq.s32.totalorder %v5332_v10, %v1893_v25 }
 0x4bb   : > { %v1918_v33 = vrot.slane %v1914_v56, %v5043_v15  ;;  %v1922_v35 = vrot.slane %v1914_v56, %v5035_v13  ;;  %v1913_v30 = vsel %vm1897_vm0, %v1907_v18, 0.0 }
 0x4bd   : > { %4398 = vmatmul.mubr.msk.f32.gmra.mrb[42].mxu0 %vm930_vm5, %v5398_v59  ;;  %v5724_v59 = vrot.slane %v2218_v37, %v5300_v58  ;;  %vm1923_vm13 = vcmp.eq.s32.totalorder %v5020_v9, %v1918_v33  ;;  %v1931_v37 = vrot.slane %v1882_v48, %v5043_v15  ;;  %vm1924_vm15 = vcmp.eq.s32.totalorder %v5020_v9, %v1922_v35 }
 0x4be   : > { %2564 = vmatprep.mubr.f32.mxu0 %v4888_v22  ;;  %v1939_v31 = vsel %vm1924_vm15, %v1935_v8, 0.0  ;;  %vm1925_vm9 = vcmp.eq.s32.totalorder %v5332_v10, %v1918_v33  ;;  %vm1926_vm8 = vcmp.eq.s32.totalorder %v5332_v10, %v1922_v35 }
 0x4bf   : > { %v2235_v41 = vcombine.high %v5724_v59, %v5724_v59  ;;  %v1938_v40 = vsel %vm1923_vm13, %v1931_v37, 0.0  ;;  %v5759_v49 = vadd.f32 %v1939_v31, %v1911_v24  ;;  %v1940_v51 = vsel %vm1925_vm9, %v1931_v37, 0.0 }
 0x4c0   : > { %v5746_v17 = vadd.f32 %v1938_v40, %v1910_v44  ;;  %v1941_v48 = vsel %vm1926_vm8, %v1935_v8, 0.0 }
 0x4c1   : > { %v5740_v57 = vrot.slane %v2235_v41, %v5300_v58  ;;  %v5785_v40 = vadd.f32 %v1941_v48, %v1913_v30 }
 0x4c3   : > { %v2244_v19 = vadd.f32 %v5754_v60, %v5740_v57 }
 0x4c5   : > { %v2246_v41 = vfloor.f32 %v2244_v19 }
 0x4c7   : > { %v4674_v8 = vtrunc.f32 %v2246_v41 }
 0x4c9   : > { %v4675_v25 = vcvt.f32.s32 %v4674_v8 }
 0x4cb   : > { %v2318_v48 = vrot.slane %v4675_v25, %v5035_v13 }
 0x4cd   : > { %vm2320_vm4 = vcmp.eq.s32.totalorder %v5020_v9, %v2318_v48  ;;  %vm2322_vm11 = vcmp.eq.s32.totalorder %v5332_v10, %v2318_v48 }
 0x570   : > { %v1859_v2 = vpop.f32.mrb[26].mxu0 }
 0x571   : > { %v1872_v4 = vmul.f32 %v1867_v1, %v1859_v2  ;;  %v1861_v38 = vpop.f32.mrb[27].mxu0 }
 0x572   : > { %v1873_v42 = vmul.f32 %v1871_v39, %v1861_v38  ;;  %v2248_v38 = vsub.f32 %v2244_v19, %v2246_v41 }
 0x573   : > { %v4001_v45 = vrot.slane %v1872_v4, 4  ;;  %v4131_v43 = vrot.slane %v1872_v4, 6 }
 0x574   : > { %v4002_v62 = vrot.slane %v1873_v42, 4  ;;  %v4132_v20 = vrot.slane %v1873_v42, 6  ;;  %v2072_v27 = vpop.f32.mrb[28].mxu0 }
 0x575   : > { %v5763_v52 = vsel %vm603_vm1, %v5645_v21, %v4001_v45  ;;  %v5767_v53 = vsel %vm603_vm1, %v5638_v29, %v4131_v43  ;;  %v2119_v54 = vmul.f32 %v2072_v27, %v5746_v17  ;;  %v2074_v56 = vpop.f32.mrb[29].mxu0  ;;  %v1912_v21 = vsel %vm1896_vm7, %v1903_v63, 0.0 }
 0x576   : > { %v5772_v33 = vsel %vm603_vm1, %v5649_v32, %v4002_v62  ;;  %v5776_v23 = vsel %vm603_vm1, %v5641_v61, %v4132_v20  ;;  %v2120_v35 = vmul.f32 %v2074_v56, %v5759_v49  ;;  %v5781_v29 = vadd.f32 %v1940_v51, %v1912_v21 }
 0x577   : > { %v2339_v43 = vadd.s32 1, %v4675_v25 }
 0x578   : > { %v2078_v37 = vpop.f32.mrb[30].mxu0 }
 0x579   : > { %v2121_v32 = vmul.f32 %v2078_v37, %v5781_v29  ;;  %v2080_v1 = vpop.f32.mrb[31].mxu0  ;;  %v2347_v19 = vrot.slane %v2339_v43, %v5035_v13  ;;  %v2314_v37 = vrot.slane %v4675_v25, %v5043_v15  ;;  %v2343_v8 = vrot.slane %v2339_v43, %v5043_v15 }
 0x57a   : > { %v2122_v61 = vmul.f32 %v2080_v1, %v5785_v40  ;;  %v2360_v1 = vrot.slane %v2248_v38, %v5035_v13 }
 0x57b   : > { %v4533_v2 = vpack.c.bf16 %v2121_v32, %v2119_v54  ;;  %v2323_v54 = vsub.f32 1.0, %v2248_v38  ;;  %vm2349_vm3 = vcmp.eq.s32.totalorder %v5020_v9, %v2347_v19  ;;  %vm2351_vm12 = vcmp.eq.s32.totalorder %v5332_v10, %v2347_v19 }
 0x57c   : > { %v4531_v39 = vpack.c.bf16 %v2122_v61, %v2120_v35  ;;  %v2084_v44 = vpop.f32.mrb[32].mxu0  ;;  %vm2319_vm13 = vcmp.eq.s32.totalorder %v5020_v9, %v2314_v37  ;;  %vm2321_vm14 = vcmp.eq.s32.totalorder %v5332_v10, %v2314_v37  ;;  %vm2348_vm15 = vcmp.eq.s32.totalorder %v5020_v9, %v2343_v8  ;;  %v5845_v37 = vld [vmem:[%s5353_s10 + $0x20] sm:$0xff] }
 0x57d   : > { %v2123_v5 = vmul.f32 %v2084_v44, %v5746_v17  ;;  %v2086_v63 = vpop.f32.mrb[33].mxu0  ;;  %v2332_v30 = vrot.slane %v2323_v54, %v5035_v13  ;;  %v2328_v44 = vrot.slane %v2323_v54, %v5043_v15  ;;  %vm2350_vm6 = vcmp.eq.s32.totalorder %v5332_v10, %v2343_v8 }
 0x57e   : > { %v2124_v4 = vmul.f32 %v2086_v63, %v5759_v49  ;;  %4532 = vmatprep.subr.bf16.mxu1 %v4531_v39  ;;  %v5870_v8 = vrot.slane %v5724_v59, %v5300_v58  ;;  %v2208_v59 = vsub.s32 5, %v5020_v9 }
 0x57f   : > { %4534 = vmatpush1.bf16.msra.mxu1 %v4533_v2  ;;  %v2338_v25 = vsel %vm2322_vm11, %v2332_v30, 0.0 }
 0x580   : > { %v2090_v18 = vpop.f32.mrb[34].mxu0 }
 0x581   : > { %v2125_v31 = vmul.f32 %v2090_v18, %v5781_v29  ;;  %v2092_v42 = vpop.f32.mrb[35].mxu0  ;;  %v2356_v18 = vrot.slane %v2248_v38, %v5043_v15 }
 0x582   : > { %v2126_v24 = vmul.f32 %v2092_v42, %v5785_v40  ;;  %v2364_v42 = vsel %vm2349_vm3, %v2360_v1, 0.0 }
 0x583   : > { %v4537_v45 = vpack.c.bf16 %v2125_v31, %v2123_v5  ;;  %v2365_v54 = vsel %vm2350_vm6, %v2356_v18, 0.0 }
 0x584   : > { %v4535_v62 = vpack.c.bf16 %v2126_v24, %v2124_v4  ;;  %v2096_v20 = vpop.f32.mrb[36].mxu0  ;;  %v2336_v4 = vsel %vm2320_vm4, %v2332_v30, 0.0  ;;  %v2366_v24 = vsel %vm2351_vm12, %v2360_v1, 0.0  ;;  %v5839_v30 = vld [vmem:[%s5353_s10 + $0x18] sm:$0xff]  ;;  %v5857_v1 = vld [vmem:[%s5353_s10 + $0x30] sm:$0xff]  ;;  %vm4034_vm12 = vcmask 1045504  }
 0x585   : > { %v2127_v27 = vmul.f32 %v2096_v20, %v5746_v17  ;;  %v2098_v51 = vpop.f32.mrb[37].mxu0  ;;  %v2370_v38 = vadd.f32 %v2366_v24, %v2338_v25  ;;  %v2335_v20 = vsel %vm2319_vm13, %v2328_v44, 0.0 }
 0x586   : > { %v2128_v56 = vmul.f32 %v2098_v51, %v5759_v49  ;;  %4536 = vmatprep.subr.bf16.mxu1 %v4535_v62  ;;  %v2368_v62 = vadd.f32 %v2364_v42, %v2336_v4  ;;  %v2363_v51 = vsel %vm2348_vm15, %v2356_v18, 0.0 }
 0x587   : > { %4538 = vmatpush1.bf16.msra.mxu1 %v4537_v45  ;;  %v2367_v19 = vadd.f32 %v2363_v51, %v2335_v20  ;;  %v2209_v20 = vrot.slane %v5520_v36, %v2208_v59 }
 0x588   : > { %v2102_v35 = vpop.f32.mrb[38].mxu0 }
 0x589   : > { %v2129_v21 = vmul.f32 %v2102_v35, %v5781_v29  ;;  %v2104_v41 = vpop.f32.mrb[39].mxu0 }
 0x58a   : > { %v2130_v32 = vmul.f32 %v2104_v41, %v5785_v40  ;;  %v5827_v41 = vld [vmem:[%s5353_s10 + $0x8] sm:$0xff] }
 0x58b   : > { %v4541_v61 = vpack.c.bf16 %v2129_v21, %v2127_v27  ;;  %v2337_v27 = vsel %vm2321_vm14, %v2328_v44, 0.0  ;;  %v4547_v21 = vpack.c.bf16 %v2370_v38, %v2368_v62 }
 0x58c   : > { %v4539_v2 = vpack.c.bf16 %v2130_v32, %v2128_v56  ;;  %v2108_v39 = vpop.f32.mrb[40].mxu0  ;;  %v2369_v35 = vadd.f32 %v2365_v54, %v2337_v27  ;;  %v5851_v32 = vld [vmem:[%s5353_s10 + $0x28] sm:$0xff] }
 0x58d   : > { %v2131_v5 = vmul.f32 %v2108_v39, %v5746_v17  ;;  %v2110_v63 = vpop.f32.mrb[41].mxu0 }
 0x58e   : > { %v2132_v31 = vmul.f32 %v2110_v63, %v5759_v49  ;;  %4540 = vmatprep.subr.bf16.mxu1 %v4539_v2  ;;  %v2234_v2 = vadd.f32 %v5717_v50, %v5870_v8 }
 0x58f   : > { %4542 = vmatpush1.bf16.msra.mxu1 %v4541_v61  ;;  %v5863_v61 = vld [vmem:[%s5353_s10 + $0x38] sm:$0xff] }
 0x590   : > { %v2114_v17 = vpop.f32.mrb[42].mxu0  ;;  %v2245_v39 = vfloor.f32 %v2234_v2 }
 0x591   : > { %v2133_v45 = vmul.f32 %v2114_v17, %v5781_v29  ;;  %v2116_v43 = vpop.f32.mrb[43].mxu0  ;;  %v4549_v29 = vpack.c.bf16 %v2369_v35, %v2367_v19 }
 0x592   : > { %v2134_v49 = vmul.f32 %v2116_v43, %v5785_v40  ;;  %v5821_v40 = vld [vmem:[%s5353_s10] sm:$0xff]  ;;  %v4672_v44 = vtrunc.f32 %v2245_v39  ;;  %v2247_v63 = vsub.f32 %v2234_v2, %v2245_v39  ;;  %v2584_v43 = vcombine.high %v5740_v57, %v5740_v57 }
 0x593   : > { %v4545_v56 = vpack.c.bf16 %v2133_v45, %v2131_v5  ;;  %v2213_v57 = vrot.slane %v5523_v55, %v2208_v59 }
 0x594   : > { %v4543_v48 = vpack.c.bf16 %v2134_v49, %v2132_v31  ;;  %v4673_v5 = vcvt.f32.s32 %v4672_v44  ;;  %v2263_v25 = vsub.f32 1.0, %v2247_v63  ;;  %v2296_v45 = vrot.slane %v2247_v63, %v5043_v15 }
 0x595   : > { %v2300_v38 = vrot.slane %v2247_v63, %v5035_v13  ;;  %v2586_v51 = vadd.f32 %v2584_v43, %v5082_v26 }
 0x596   : > { %4544 = vmatprep.subr.bf16.mxu1 %v4543_v48  ;;  %v2279_v4 = vadd.s32 1, %v4673_v5  ;;  %v2254_v18 = vrot.slane %v4673_v5, %v5043_v15  ;;  %v2258_v42 = vrot.slane %v4673_v5, %v5035_v13  ;;  %v2268_v17 = vrot.slane %v2263_v25, %v5043_v15 }
 0x597   : > { %4546 = vmatpush1.bf16.msra.mxu1 %v4545_v56  ;;  %v2272_v62 = vrot.slane %v2263_v25, %v5035_v13 }
 0x598   : > { %4548 = vmatprep.subr.bf16.mxu1 %v4547_v21  ;;  %v2283_v31 = vrot.slane %v2279_v4, %v5043_v15  ;;  %v2287_v24 = vrot.slane %v2279_v4, %v5035_v13  ;;  %vm2259_vm9 = vcmp.eq.s32.totalorder %v5020_v9, %v2254_v18  ;;  %vm2260_vm8 = vcmp.eq.s32.totalorder %v5020_v9, %v2258_v42 }
 0x599   : > { %v2275_v49 = vsel %vm2259_vm9, %v2268_v17, 0.0  ;;  %vm2261_vm4 = vcmp.eq.s32.totalorder %v5332_v10, %v2254_v18  ;;  %v2276_v19 = vsel %vm2260_vm8, %v2272_v62, 0.0  ;;  %vm2262_vm3 = vcmp.eq.s32.totalorder %v5332_v10, %v2258_v42 }
 0x59a   : > { %4399 = vmatmul.mubr.msk.f32.vlgmr.msra.gmra.mrb[34].mxu1 %vm1084_vm2, %v5462_v47  ;;  %v5833_v47 = vld [vmem:[%s5353_s10 + $0x10] sm:$0xff]  ;;  %vm2288_vm7 = vcmp.eq.s32.totalorder %v5020_v9, %v2283_v31  ;;  %vm2289_vm0 = vcmp.eq.s32.totalorder %v5020_v9, %v2287_v24  ;;  %vm2290_vm11 = vcmp.eq.s32.totalorder %v5332_v10, %v2283_v31  ;;  %vm2291_vm13 = vcmp.eq.s32.totalorder %v5332_v10, %v2287_v24 }
 0x59b   : > { %4550 = vmatpush1.bf16.msra.mxu1 %v4549_v29  ;;  %2435 = vmatprep.mubr.f32.mxu1 %v4888_v22  ;;  %v2303_v27 = vsel %vm2288_vm7, %v2296_v45, 0.0  ;;  %v2304_v35 = vsel %vm2289_vm0, %v2300_v38, 0.0  ;;  %v2277_v44 = vsel %vm2261_vm4, %v2268_v17, 0.0  ;;  %v2305_v5 = vsel %vm2290_vm11, %v2296_v45, 0.0 }
 0x59c   : > { %v5895_v29 = vadd.f32 %v2303_v27, %v2275_v49  ;;  %v5898_v18 = vadd.f32 %v2304_v35, %v2276_v19  ;;  %v2278_v31 = vsel %vm2262_vm3, %v2272_v62, 0.0  ;;  %v5918_v49 = vadd.f32 %v2305_v5, %v2277_v44 }
 0x59e   : > { %4400 = vmatmul.mubr.msk.f32.vlgmr.msra.gmra.mrb[36].mxu1 %vm930_vm5, %v5821_v40 }
 0x59f   : > { %2441 = vmatprep.mubr.f32.mxu1 %v4888_v22 }
 0x5a2   : > { %4401 = vmatmul.mubr.msk.f32.gmra.mrb[38].mxu1 %vm930_vm5, %v5827_v41 }
 0x5a3   : > { %2447 = vmatprep.mubr.f32.mxu1 %v4888_v22 }
 0x5a6   : > { %4402 = vmatmul.mubr.msk.f32.gmra.mrb[40].mxu1 %vm930_vm5, %v5833_v47 }
 0x5a7   : > { %2453 = vmatprep.mubr.f32.mxu1 %v4888_v22 }
 0x5aa   : > { %4403 = vmatmul.mubr.msk.f32.gmra.mrb[42].mxu1 %vm930_vm5, %v5839_v30 }
 0x5ab   : > { %2459 = vmatprep.mubr.f32.mxu1 %v4888_v22 }
 0x5ae   : > { %4404 = vmatmul.mubr.msk.f32.gmra.mrb[44].mxu1 %vm930_vm5, %v5845_v37 }
 0x5af   : > { %2465 = vmatprep.mubr.f32.mxu1 %v4888_v22 }
 0x5b2   : > { %4405 = vmatmul.mubr.msk.f32.gmra.mrb[46].mxu1 %vm930_vm5, %v5851_v32 }
 0x5b3   : > { %2471 = vmatprep.mubr.f32.mxu1 %v4888_v22 }
 0x5b6   : > { %4406 = vmatmul.mubr.msk.f32.gmra.mrb[48].mxu1 %vm930_vm5, %v5857_v1 }
 0x5b7   : > { %2477 = vmatprep.mubr.f32.mxu1 %v4888_v22 }
 0x5ba   : > { %4407 = vmatmul.mubr.msk.f32.gmra.mrb[50].mxu1 %vm930_vm5, %v5863_v61 }
 0x5bb   : > { %2906 = vmatprep.mubr.f32.mxu1 %v4888_v22 }
 0x66d   : > { %v2201_v54 = vpop.f32.mrb[34].mxu1 }
 0x66e   : > { %v2214_v56 = vmul.f32 %v2209_v20, %v2201_v54  ;;  %v2203_v48 = vpop.f32.mrb[35].mxu1  ;;  %v2306_v20 = vsel %vm2291_vm13, %v2300_v38, 0.0 }
 0x66f   : > { %v2215_v21 = vmul.f32 %v2213_v57, %v2203_v48 }
 0x670   : > { %v4007_v2 = vrot.slane %v2214_v56, 2  ;;  %v4135_v39 = vrot.slane %v2214_v56, 4 }
 0x671   : > { %v4008_v63 = vrot.slane %v2215_v21, 2  ;;  %v4136_v4 = vrot.slane %v2215_v21, 4  ;;  %v2437_v25 = vpop.f32.mrb[36].mxu1 }
 0x672   : > { %v5902_v59 = vsel %vm4034_vm12, %v5763_v52, %v4007_v2  ;;  %v5906_v42 = vsel %vm4034_vm12, %v5767_v53, %v4135_v39  ;;  %v2484_v24 = vmul.f32 %v2437_v25, %v5895_v29  ;;  %v2439_v43 = vpop.f32.mrb[37].mxu1  ;;  %v2588_v52 = vfloor.f32 %v2586_v51 }
 0x673   : > { %v2485_v17 = vmul.f32 %v2439_v43, %v5898_v18  ;;  %v5912_v45 = vsel %vm4034_vm12, %v5776_v23, %v4136_v4  ;;  %v5916_v62 = vsel %vm4034_vm12, %v5772_v33, %v4008_v63  ;;  %v5920_v53 = vadd.f32 %v2306_v20, %v2278_v31 }
 0x674   : > { %v4678_v48 = vtrunc.f32 %v2588_v52  ;;  %v2590_v4 = vsub.f32 %v2586_v51, %v2588_v52 }
 0x675   : > { %v2443_v27 = vpop.f32.mrb[38].mxu1 }
 0x676   : > { %v2486_v54 = vmul.f32 %v2443_v27, %v5918_v49  ;;  %v2445_v57 = vpop.f32.mrb[39].mxu1  ;;  %v4679_v2 = vcvt.f32.s32 %v4678_v48 }
 0x677   : > { %v2487_v38 = vmul.f32 %v2445_v57, %v5920_v53 }
 0x678   : > { %v4553_v56 = vpack.c.bf16 %v2486_v54, %v2484_v24  ;;  %v2681_v31 = vadd.s32 1, %v4679_v2  ;;  %v2665_v54 = vsub.f32 1.0, %v2590_v4  ;;  %v2660_v57 = vrot.slane %v4679_v2, %v5035_v13 }
 0x679   : > { %v4551_v19 = vpack.c.bf16 %v2487_v38, %v2485_v17  ;;  %v2449_v23 = vpop.f32.mrb[40].mxu1  ;;  %v2656_v52 = vrot.slane %v4679_v2, %v5043_v15 }
 0x67a   : > { %v2488_v35 = vmul.f32 %v2449_v23, %v5895_v29  ;;  %v2451_v21 = vpop.f32.mrb[41].mxu1  ;;  %v2689_v38 = vrot.slane %v2681_v31, %v5035_v13  ;;  %v2674_v23 = vrot.slane %v2665_v54, %v5035_v13  ;;  %vm2662_vm14 = vcmp.eq.s32.totalorder %v5020_v9, %v2660_v57 }
 0x67b   : > { %v2489_v33 = vmul.f32 %v2451_v21, %v5898_v18  ;;  %4552 = vmatprep.subr.bf16.mxu0 %v4551_v19  ;;  %vm2664_vm6 = vcmp.eq.s32.totalorder %v5332_v10, %v2660_v57  ;;  %vm2661_vm7 = vcmp.eq.s32.totalorder %v5020_v9, %v2656_v52  ;;  %vm2663_vm8 = vcmp.eq.s32.totalorder %v5332_v10, %v2656_v52  ;;  %v5957_v52 = vld [vmem:[%s6417_s4] sm:$0xf] }
 0x67c   : > { %4554 = vmatpush1.bf16.msra.mxu0 %v4553_v56  ;;  %vm2691_vm15 = vcmp.eq.s32.totalorder %v5020_v9, %v2689_v38  ;;  %vm2693_vm9 = vcmp.eq.s32.totalorder %v5332_v10, %v2689_v38 }
 0x67d   : > { %v2455_v39 = vpop.f32.mrb[42].mxu1 }
 0x67e   : > { %v2490_v44 = vmul.f32 %v2455_v39, %v5918_v49  ;;  %v2457_v5 = vpop.f32.mrb[43].mxu1 }
 0x67f   : > { %v2491_v63 = vmul.f32 %v2457_v5, %v5920_v53 }
 0x680   : > { %v4557_v25 = vpack.c.bf16 %v2490_v44, %v2488_v35  ;;  %v2702_v35 = vrot.slane %v2590_v4, %v5035_v13 }
 0x681   : > { %v4555_v24 = vpack.c.bf16 %v2491_v63, %v2489_v33  ;;  %v2461_v43 = vpop.f32.mrb[44].mxu1  ;;  %v2685_v33 = vrot.slane %v2681_v31, %v5043_v15  ;;  %v2670_v63 = vrot.slane %v2665_v54, %v5043_v15 }
 0x682   : > { %v2492_v20 = vmul.f32 %v2461_v43, %v5895_v29  ;;  %v2463_v17 = vpop.f32.mrb[45].mxu1  ;;  %v2678_v43 = vsel %vm2662_vm14, %v2674_v23, 0.0  ;;  %v2706_v31 = vsel %vm2691_vm15, %v2702_v35, 0.0 }
 0x683   : > { %v2493_v27 = vmul.f32 %v2463_v17, %v5898_v18  ;;  %4556 = vmatprep.subr.bf16.mxu0 %v4555_v24  ;;  %v2708_v17 = vsel %vm2693_vm9, %v2702_v35, 0.0  ;;  %vm2690_vm0 = vcmp.eq.s32.totalorder %v5020_v9, %v2685_v33  ;;  %vm2692_vm4 = vcmp.eq.s32.totalorder %v5332_v10, %v2685_v33 }
 0x684   : > { %4558 = vmatpush1.bf16.msra.mxu0 %v4557_v25  ;;  %v2698_v25 = vrot.slane %v2590_v4, %v5043_v15  ;;  %v2710_v57 = vadd.f32 %v2706_v31, %v2678_v43  ;;  %v2679_v4 = vsel %vm2663_vm8, %v2670_v63, 0.0 }
 0x685   : > { %v2467_v56 = vpop.f32.mrb[46].mxu1 }
 0x686   : > { %v2494_v48 = vmul.f32 %v2467_v56, %v5918_v49  ;;  %v2469_v51 = vpop.f32.mrb[47].mxu1 }
 0x687   : > { %v2495_v19 = vmul.f32 %v2469_v51, %v5920_v53  ;;  %v2707_v51 = vsel %vm2692_vm4, %v2698_v25, 0.0 }
 0x688   : > { %v4561_v21 = vpack.c.bf16 %v2494_v48, %v2492_v20  ;;  %v2680_v20 = vsel %vm2664_vm6, %v2674_v23, 0.0  ;;  %v2705_v48 = vsel %vm2690_vm0, %v2698_v25, 0.0 }
 0x689   : > { %v4559_v39 = vpack.c.bf16 %v2495_v19, %v2493_v27  ;;  %v2473_v44 = vpop.f32.mrb[48].mxu1  ;;  %v2712_v56 = vadd.f32 %v2708_v17, %v2680_v20 }
 0x68a   : > { %v2496_v2 = vmul.f32 %v2473_v44, %v5895_v29  ;;  %v2475_v5 = vpop.f32.mrb[49].mxu1 }
 0x68b   : > { %v2497_v24 = vmul.f32 %v2475_v5, %v5898_v18  ;;  %4560 = vmatprep.subr.bf16.mxu0 %v4559_v39  ;;  %v2677_v18 = vsel %vm2661_vm7, %v2670_v63, 0.0  ;;  %v4567_v33 = vpack.c.bf16 %v2712_v56, %v2710_v57 }
 0x68c   : > { %4562 = vmatpush1.bf16.msra.mxu0 %v4561_v21  ;;  %v2709_v35 = vadd.f32 %v2705_v48, %v2677_v18  ;;  %v2711_v21 = vadd.f32 %v2707_v51, %v2679_v4 }
 0x68d   : > { %v2479_v29 = vpop.f32.mrb[50].mxu1 }
 0x68e   : > { %v2498_v27 = vmul.f32 %v2479_v29, %v5918_v49  ;;  %v2481_v54 = vpop.f32.mrb[51].mxu1  ;;  %v4569_v49 = vpack.c.bf16 %v2711_v21, %v2709_v35  ;;  %v2573_v29 = vsub.s32 6, %v5020_v9 }
 0x68f   : > { %v2499_v38 = vmul.f32 %v2481_v54, %v5920_v53  ;;  %v2581_v53 = vcombine.high %v5870_v8, %v5870_v8 }
 0x690   : > { %v4565_v19 = vpack.c.bf16 %v2498_v27, %v2496_v2  ;;  %v2574_v57 = vrot.slane %v5520_v36, %v2573_v29  ;;  %v2578_v4 = vrot.slane %v5523_v55, %v2573_v29 }
 0x691   : > { %v4563_v23 = vpack.c.bf16 %v2499_v38, %v2497_v24  ;;  %v2583_v39 = vadd.f32 %v5717_v50, %v2581_v53  ;;  %v5993_v24 = vrot.slane %v2923_v46, %v5300_v58 }
 0x693   : > { %4564 = vmatprep.subr.bf16.mxu0 %v4563_v23  ;;  %v2587_v44 = vfloor.f32 %v2583_v39  ;;  %v2940_v17 = vcombine.high %v5993_v24, %v5993_v24 }
 0x694   : > { %4566 = vmatpush1.bf16.msra.mxu0 %v4565_v19 }
 0x695   : > { %4568 = vmatprep.subr.bf16.mxu0 %v4567_v33  ;;  %v4676_v2 = vtrunc.f32 %v2587_v44  ;;  %v2589_v63 = vsub.f32 %v2583_v39, %v2587_v44  ;;  %v6011_v54 = vrot.slane %v2940_v17, %v5300_v58 }
 0x697   : > { %4408 = vmatmul.mubr.msk.f32.vlgmr.msra.gmra.mrb[44].mxu0 %vm1084_vm2, %v5957_v52  ;;  %v4677_v5 = vcvt.f32.s32 %v4676_v2  ;;  %v2605_v43 = vsub.f32 1.0, %v2589_v63  ;;  %v2638_v0 = vrot.slane %v2589_v63, %v5043_v15  ;;  %v2642_v46 = vrot.slane %v2589_v63, %v5035_v13 }
 0x698   : > { %4570 = vmatpush1.bf16.msra.mxu0 %v4569_v49  ;;  %2777 = vmatprep.mubr.f32.mxu0 %v4888_v22  ;;  %v2949_v21 = vadd.f32 %v6011_v54, %v5002_v3 }
 0x699   : > { %v2621_v25 = vadd.s32 1, %v4677_v5  ;;  %v2596_v31 = vrot.slane %v4677_v5, %v5043_v15  ;;  %v2600_v8 = vrot.slane %v4677_v5, %v5035_v13  ;;  %v2610_v27 = vrot.slane %v2605_v43, %v5043_v15 }
 0x69a   : > { %v2614_v12 = vrot.slane %v2605_v43, %v5035_v13 }
 0x69b   : > { %4409 = vmatmul.mubr.msk.f32.vlgmr.msra.gmra.mrb[46].mxu0 %vm930_vm5, %v5821_v40  ;;  %v2625_v20 = vrot.slane %v2621_v25, %v5043_v15  ;;  %v2629_v50 = vrot.slane %v2621_v25, %v5035_v13  ;;  %vm2601_vm11 = vcmp.eq.s32.totalorder %v5020_v9, %v2596_v31  ;;  %vm2602_vm13 = vcmp.eq.s32.totalorder %v5020_v9, %v2600_v8 }
 0x69c   : > { %2783 = vmatprep.mubr.f32.mxu0 %v4888_v22  ;;  %v2617_v38 = vsel %vm2601_vm11, %v2610_v27, 0.0  ;;  %v2618_v48 = vsel %vm2602_vm13, %v2614_v12, 0.0  ;;  %vm2603_vm15 = vcmp.eq.s32.totalorder %v5332_v10, %v2596_v31  ;;  %vm2604_vm9 = vcmp.eq.s32.totalorder %v5332_v10, %v2600_v8 }
 0x69d   : > { %vm2630_vm3 = vcmp.eq.s32.totalorder %v5020_v9, %v2625_v20  ;;  %vm2631_vm14 = vcmp.eq.s32.totalorder %v5020_v9, %v2629_v50  ;;  %vm2632_vm6 = vcmp.eq.s32.totalorder %v5332_v10, %v2625_v20  ;;  %vm2633_vm7 = vcmp.eq.s32.totalorder %v5332_v10, %v2629_v50 }
 0x69e   : > { %v2645_v56 = vsel %vm2630_vm3, %v2638_v0, 0.0  ;;  %v2646_v23 = vsel %vm2631_vm14, %v2642_v46, 0.0  ;;  %v2619_v39 = vsel %vm2603_vm15, %v2610_v27, 0.0  ;;  %v2647_v44 = vsel %vm2632_vm6, %v2638_v0, 0.0 }
 0x69f   : > { %4410 = vmatmul.mubr.msk.f32.gmra.mrb[48].mxu0 %vm930_vm5, %v5827_v41  ;;  %v2649_v33 = vadd.f32 %v2645_v56, %v2617_v38  ;;  %v2650_v53 = vadd.f32 %v2646_v23, %v2618_v48  ;;  %v2620_v63 = vsel %vm2604_vm9, %v2614_v12, 0.0  ;;  %v2648_v25 = vsel %vm2633_vm7, %v2642_v46, 0.0 }
 0x6a0   : > { %2789 = vmatprep.mubr.f32.mxu0 %v4888_v22  ;;  %v2951_v31 = vfloor.f32 %v2949_v21  ;;  %v6025_v20 = vadd.f32 %v2647_v44, %v2619_v39  ;;  %v6027_v8 = vadd.f32 %v2648_v25, %v2620_v63 }
 0x6a2   : > { %v2953_v23 = vsub.f32 %v2949_v21, %v2951_v31 }
 0x6a3   : > { %4411 = vmatmul.mubr.msk.f32.gmra.mrb[50].mxu0 %vm930_vm5, %v5833_v47 }
 0x6a4   : > { %2795 = vmatprep.mubr.f32.mxu0 %v4888_v22 }
 0x6a7   : > { %4412 = vmatmul.mubr.msk.f32.gmra.mrb[52].mxu0 %vm930_vm5, %v5839_v30 }
 0x6a8   : > { %2801 = vmatprep.mubr.f32.mxu0 %v4888_v22 }
 0x6ab   : > { %4413 = vmatmul.mubr.msk.f32.gmra.mrb[54].mxu0 %vm930_vm5, %v5845_v37 }
 0x6ac   : > { %2807 = vmatprep.mubr.f32.mxu0 %v4888_v22 }
 0x6af   : > { %4414 = vmatmul.mubr.msk.f32.gmra.mrb[56].mxu0 %vm930_vm5, %v5851_v32 }
 0x6b0   : > { %2813 = vmatprep.mubr.f32.mxu0 %v4888_v22 }
 0x6b3   : > { %4415 = vmatmul.mubr.msk.f32.gmra.mrb[58].mxu0 %vm930_vm5, %v5857_v1 }
 0x6b4   : > { %2819 = vmatprep.mubr.f32.mxu0 %v4888_v22 }
 0x6b7   : > { %4416 = vmatmul.mubr.msk.f32.gmra.mrb[60].mxu0 %vm930_vm5, %v5863_v61 }
 0x6b8   : > { %3269 = vmatprep.mubr.f32.mxu0 %v4888_v22 }
 0x76a   : > { %v2566_v18 = vpop.f32.mrb[44].mxu0 }
 0x76b   : > { %v6015_v51 = vmul.f32 %v2574_v57, %v2566_v18  ;;  %v2568_v19 = vpop.f32.mrb[45].mxu0  ;;  %v4682_v57 = vtrunc.f32 %v2951_v31 }
 0x76c   : > { %v6019_v35 = vmul.f32 %v2578_v4, %v2568_v19 }
 0x76d   : > { %v4683_v46 = vcvt.f32.s32 %v4682_v57 }
 0x76e   : > { %v2779_v49 = vpop.f32.mrb[46].mxu0 }
 0x76f   : > { %v2826_v2 = vmul.f32 %v2779_v49, %v2649_v33  ;;  %v2781_v5 = vpop.f32.mrb[47].mxu0  ;;  %v3044_v44 = vadd.s32 1, %v4683_v46  ;;  %v3019_v31 = vrot.slane %v4683_v46, %v5043_v15 }
 0x770   : > { %v2827_v43 = vmul.f32 %v2781_v5, %v2650_v53 }
 0x771   : > { %vm3024_vm3 = vcmp.eq.s32.totalorder %v5020_v9, %v3019_v31  ;;  %vm3026_vm13 = vcmp.eq.s32.totalorder %v5332_v10, %v3019_v31 }
 0x772   : > { %v2785_v17 = vpop.f32.mrb[48].mxu0 }
 0x773   : > { %v2828_v50 = vmul.f32 %v2785_v17, %v6025_v20  ;;  %v2787_v29 = vpop.f32.mrb[49].mxu0  ;;  %v3028_v17 = vsub.f32 1.0, %v2953_v23 }
 0x774   : > { %v2829_v3 = vmul.f32 %v2787_v29, %v6027_v8  ;;  %v3052_v29 = vrot.slane %v3044_v44, %v5035_v13 }
 0x775   : > { %v4573_v18 = vpack.c.bf16 %v2828_v50, %v2826_v2  ;;  %v3023_v50 = vrot.slane %v4683_v46, %v5035_v13 }
 0x776   : > { %v4571_v27 = vpack.c.bf16 %v2829_v3, %v2827_v43  ;;  %v2791_v0 = vpop.f32.mrb[50].mxu0  ;;  %vm3054_vm0 = vcmp.eq.s32.totalorder %v5020_v9, %v3052_v29  ;;  %vm3056_vm11 = vcmp.eq.s32.totalorder %v5332_v10, %v3052_v29 }
 0x777   : > { %v2830_v4 = vmul.f32 %v2791_v0, %v2649_v33  ;;  %v2793_v38 = vpop.f32.mrb[51].mxu0  ;;  %v3065_v0 = vrot.slane %v2953_v23, %v5035_v13  ;;  %vm3025_vm8 = vcmp.eq.s32.totalorder %v5020_v9, %v3023_v50  ;;  %vm3027_vm4 = vcmp.eq.s32.totalorder %v5332_v10, %v3023_v50 }
 0x778   : > { %v2831_v12 = vmul.f32 %v2793_v38, %v2650_v53  ;;  %4572 = vmatprep.subr.bf16.mxu1 %v4571_v27  ;;  %v3037_v27 = vrot.slane %v3028_v17, %v5035_v13  ;;  %v3048_v38 = vrot.slane %v3044_v44, %v5043_v15 }
 0x779   : > { %4574 = vmatpush1.bf16.msra.mxu1 %v4573_v18 }
 0x77a   : > { %v2797_v56 = vpop.f32.mrb[52].mxu0  ;;  %v3043_v44 = vsel %vm3027_vm4, %v3037_v27, 0.0  ;;  %vm3053_vm14 = vcmp.eq.s32.totalorder %v5020_v9, %v3048_v38  ;;  %vm3055_vm15 = vcmp.eq.s32.totalorder %v5332_v10, %v3048_v38 }
 0x77b   : > { %v2832_v48 = vmul.f32 %v2797_v56, %v6025_v20  ;;  %v2799_v19 = vpop.f32.mrb[53].mxu0 }
 0x77c   : > { %v2833_v49 = vmul.f32 %v2799_v19, %v6027_v8  ;;  %v3033_v19 = vrot.slane %v3028_v17, %v5043_v15 }
 0x77d   : > { %v4577_v39 = vpack.c.bf16 %v2832_v48, %v2830_v4 }
 0x77e   : > { %v4575_v5 = vpack.c.bf16 %v2833_v49, %v2831_v12  ;;  %v2803_v63 = vpop.f32.mrb[54].mxu0  ;;  %v3061_v49 = vrot.slane %v2953_v23, %v5043_v15  ;;  %v3042_v23 = vsel %vm3026_vm13, %v3033_v19, 0.0 }
 0x77f   : > { %v2834_v2 = vmul.f32 %v2803_v63, %v2649_v33  ;;  %v2805_v25 = vpop.f32.mrb[55].mxu0  ;;  %v3069_v63 = vsel %vm3054_vm0, %v3065_v0, 0.0 }
 0x780   : > { %v2835_v43 = vmul.f32 %v2805_v25, %v2650_v53  ;;  %4576 = vmatprep.subr.bf16.mxu1 %v4575_v5  ;;  %v3041_v5 = vsel %vm3025_vm8, %v3037_v27, 0.0 }
 0x781   : > { %4578 = vmatpush1.bf16.msra.mxu1 %v4577_v39  ;;  %v3073_v17 = vadd.f32 %v3069_v63, %v3041_v5 }
 0x782   : > { %v2809_v3 = vpop.f32.mrb[56].mxu0 }
 0x783   : > { %v2836_v57 = vmul.f32 %v2809_v3, %v6025_v20  ;;  %v2811_v21 = vpop.f32.mrb[57].mxu0  ;;  %v3068_v3 = vsel %vm3053_vm14, %v3061_v49, 0.0 }
 0x784   : > { %v2837_v18 = vmul.f32 %v2811_v21, %v6027_v8 }
 0x785   : > { %v4581_v4 = vpack.c.bf16 %v2836_v57, %v2834_v2  ;;  %v3071_v2 = vsel %vm3056_vm11, %v3065_v0, 0.0  ;;  %v3070_v57 = vsel %vm3055_vm15, %v3061_v49, 0.0 }
 0x786   : > { %v4579_v12 = vpack.c.bf16 %v2837_v18, %v2835_v43  ;;  %v2815_v56 = vpop.f32.mrb[58].mxu0  ;;  %v3075_v29 = vadd.f32 %v3071_v2, %v3043_v44  ;;  %v3074_v0 = vadd.f32 %v3070_v57, %v3042_v23  ;;  %v2915_v44 = vsub.s32 7, %v5020_v9 }
 0x787   : > { %v2838_v46 = vmul.f32 %v2815_v56, %v2649_v33  ;;  %v2817_v48 = vpop.f32.mrb[59].mxu0 }
 0x788   : > { %v2839_v39 = vmul.f32 %v2817_v48, %v2650_v53  ;;  %4580 = vmatprep.subr.bf16.mxu1 %v4579_v12  ;;  %v3040_v53 = vsel %vm3024_vm3, %v3033_v19, 0.0 }
 0x789   : > { %4582 = vmatpush1.bf16.msra.mxu1 %v4581_v4  ;;  %v3072_v27 = vadd.f32 %v3068_v3, %v3040_v53  ;;  %v4587_v4 = vpack.c.bf16 %v3075_v29, %v3073_v17  ;;  %v2916_v17 = vrot.slane %v5520_v36, %v2915_v44  ;;  %v2920_v53 = vrot.slane %v5523_v55, %v2915_v44 }
 0x78a   : > { %v2821_v33 = vpop.f32.mrb[60].mxu0  ;;  %v4141_v3 = vrot.slane %v6015_v51, 2 }
 0x78b   : > { %v2840_v25 = vmul.f32 %v2821_v33, %v6025_v20  ;;  %v2823_v43 = vpop.f32.mrb[61].mxu0  ;;  %v4589_v20 = vpack.c.bf16 %v3074_v0, %v3072_v27  ;;  %v4142_v0 = vrot.slane %v6019_v35, 2 }
 0x78c   : > { %v2841_v50 = vmul.f32 %v2823_v43, %v6027_v8  ;;  %v6084_v8 = vrot.slane %v5993_v24, %v5300_v58  ;;  %v3289_v24 = vcombine.high %v6011_v54, %v6011_v54 }
 0x78d   : > { %v4585_v21 = vpack.c.bf16 %v2840_v25, %v2838_v46 }
 0x78e   : > { %v4583_v18 = vpack.c.bf16 %v2841_v50, %v2839_v39  ;;  %v2939_v31 = vadd.f32 %v6084_v8, %v5089_v28  ;;  %v3291_v54 = vadd.f32 %v5754_v60, %v3289_v24 }
 0x790   : > { %4584 = vmatprep.subr.bf16.mxu1 %v4583_v18  ;;  %v2950_v38 = vfloor.f32 %v2939_v31 }
 0x791   : > { %4586 = vmatpush1.bf16.msra.mxu1 %v4585_v21 }
 0x792   : > { %4588 = vmatprep.subr.bf16.mxu1 %v4587_v4  ;;  %v4680_v12 = vtrunc.f32 %v2950_v38  ;;  %v2952_v46 = vsub.f32 %v2939_v31, %v2950_v38 }
 0x794   : > { %4417 = vmatmul.mubr.msk.f32.vlgmr.msra.gmra.mrb[52].mxu1 %vm1084_vm2, %v5957_v52  ;;  %v4681_v56 = vcvt.f32.s32 %v4680_v12  ;;  %v2968_v19 = vsub.f32 1.0, %v2952_v46  ;;  %v3001_v33 = vrot.slane %v2952_v46, %v5043_v15  ;;  %v3005_v43 = vrot.slane %v2952_v46, %v5035_v13 }
 0x795   : > { %4590 = vmatpush1.bf16.msra.mxu1 %v4589_v20  ;;  %3140 = vmatprep.mubr.f32.mxu1 %v4888_v22 }
 0x796   : > { %v2984_v48 = vadd.s32 1, %v4681_v56  ;;  %v2959_v49 = vrot.slane %v4681_v56, %v5043_v15  ;;  %v2963_v5 = vrot.slane %v4681_v56, %v5035_v13  ;;  %v2973_v2 = vrot.slane %v2968_v19, %v5043_v15 }
 0x797   : > { %v2977_v25 = vrot.slane %v2968_v19, %v5035_v13 }
 0x798   : > { %4418 = vmatmul.mubr.msk.f32.vlgmr.msra.gmra.mrb[54].mxu1 %vm930_vm5, %v5821_v40  ;;  %v2988_v39 = vrot.slane %v2984_v48, %v5043_v15  ;;  %v2992_v63 = vrot.slane %v2984_v48, %v5035_v13  ;;  %vm2964_vm6 = vcmp.eq.s32.totalorder %v5020_v9, %v2959_v49  ;;  %vm2965_vm7 = vcmp.eq.s32.totalorder %v5020_v9, %v2963_v5 }
 0x799   : > { %3146 = vmatprep.mubr.f32.mxu1 %v4888_v22  ;;  %v2980_v50 = vsel %vm2964_vm6, %v2973_v2, 0.0  ;;  %vm2966_vm0 = vcmp.eq.s32.totalorder %v5332_v10, %v2959_v49  ;;  %v2981_v18 = vsel %vm2965_vm7, %v2977_v25, 0.0  ;;  %vm2967_vm11 = vcmp.eq.s32.totalorder %v5332_v10, %v2963_v5 }
 0x79a   : > { %vm2993_vm9 = vcmp.eq.s32.totalorder %v5020_v9, %v2988_v39  ;;  %vm2994_vm8 = vcmp.eq.s32.totalorder %v5020_v9, %v2992_v63  ;;  %vm2995_vm4 = vcmp.eq.s32.totalorder %v5332_v10, %v2988_v39  ;;  %vm2996_vm3 = vcmp.eq.s32.totalorder %v5332_v10, %v2992_v63 }
 0x79b   : > { %v3008_v29 = vsel %vm2993_vm9, %v3001_v33, 0.0  ;;  %v3009_v27 = vsel %vm2994_vm8, %v3005_v43, 0.0  ;;  %v2982_v20 = vsel %vm2966_vm0, %v2973_v2, 0.0  ;;  %v3010_v46 = vsel %vm2995_vm4, %v3001_v33, 0.0 }
 0x79c   : > { %4419 = vmatmul.mubr.msk.f32.gmra.mrb[56].mxu1 %vm930_vm5, %v5827_v41  ;;  %v6115_v4 = vadd.f32 %v3008_v29, %v2980_v50  ;;  %v6120_v56 = vadd.f32 %v3009_v27, %v2981_v18  ;;  %v2983_v5 = vsel %vm2967_vm11, %v2977_v25, 0.0  ;;  %v3011_v63 = vsel %vm2996_vm3, %v3005_v43, 0.0 }
 0x79d   : > { %3152 = vmatprep.mubr.f32.mxu1 %v4888_v22  ;;  %v3293_v2 = vfloor.f32 %v3291_v54  ;;  %v6136_v33 = vadd.f32 %v3011_v63, %v2983_v5 }
 0x79f   : > { %v4686_v25 = vtrunc.f32 %v3293_v2 }
 0x7a0   : > { %4420 = vmatmul.mubr.msk.f32.gmra.mrb[58].mxu1 %vm930_vm5, %v5833_v47 }
 0x7a1   : > { %3158 = vmatprep.mubr.f32.mxu1 %v4888_v22 }
 0x7a4   : > { %4421 = vmatmul.mubr.msk.f32.gmra.mrb[60].mxu1 %vm930_vm5, %v5839_v30 }
 0x7a5   : > { %3164 = vmatprep.mubr.f32.mxu1 %v4888_v22 }
 0x7a8   : > { %4422 = vmatmul.mubr.msk.f32.gmra.mrb[62].mxu1 %vm930_vm5, %v5845_v37 }
 0x7a9   : > { %3170 = vmatprep.mubr.f32.mxu1 %v4888_v22 }
 0x7ac   : > { %4423 = vmatmul.mubr.msk.f32.gmra.mrb[64].mxu1 %vm930_vm5, %v5851_v32 }
 0x7ad   : > { %3176 = vmatprep.mubr.f32.mxu1 %v4888_v22 }
 0x7b0   : > { %4424 = vmatmul.mubr.msk.f32.gmra.mrb[66].mxu1 %vm930_vm5, %v5857_v1 }
 0x7b1   : > { %3182 = vmatprep.mubr.f32.mxu1 %v4888_v22 }
 0x7b4   : > { %4425 = vmatmul.mubr.msk.f32.gmra.mrb[68].mxu1 %vm930_vm5, %v5863_v61 }
 0x7b5   : > { %3611 = vmatprep.mubr.f32.mxu1 %v4888_v22 }
 0x867   : > { %v2908_v23 = vpop.f32.mrb[52].mxu1 }
 0x868   : > { %v2921_v57 = vmul.f32 %v2916_v17, %v2908_v23  ;;  %v2910_v21 = vpop.f32.mrb[53].mxu1  ;;  %v6134_v17 = vadd.f32 %v3010_v46, %v2982_v20 }
 0x869   : > { %v2922_v60 = vmul.f32 %v2920_v53, %v2910_v21  ;;  %v4687_v21 = vcvt.f32.s32 %v4686_v25 }
 0x86a   : > { %v4013_v36 = vrot.slane %v2921_v57, 6  ;;  %v6113_v55 = vsel %vm4029_vm10, %v4141_v3, %v2921_v57 }
 0x86b   : > { %v4014_v31 = vrot.slane %v2922_v60, 6  ;;  %v6118_v38 = vsel %vm4029_vm10, %v4142_v0, %v2922_v60  ;;  %v3142_v12 = vpop.f32.mrb[54].mxu1 }
 0x86c   : > { %v6126_v48 = vsel %vm4029_vm10, %v6015_v51, %v4013_v36  ;;  %v3189_v19 = vmul.f32 %v3142_v12, %v6115_v4  ;;  %v3144_v49 = vpop.f32.mrb[55].mxu1  ;;  %v3295_v36 = vsub.f32 %v3291_v54, %v3293_v2  ;;  %v3361_v2 = vrot.slane %v4687_v21, %v5043_v15 }
 0x86d   : > { %v6131_v24 = vsel %vm4029_vm10, %v6019_v35, %v4014_v31  ;;  %v3190_v44 = vmul.f32 %v3144_v49, %v6120_v56  ;;  %v3386_v31 = vadd.s32 1, %v4687_v21 }
 0x86e   : > { %v3370_v63 = vsub.f32 1.0, %v3295_v36  ;;  %v3407_v25 = vrot.slane %v3295_v36, %v5035_v13  ;;  %vm3366_vm9 = vcmp.eq.s32.totalorder %v5020_v9, %v3361_v2  ;;  %vm3368_vm7 = vcmp.eq.s32.totalorder %v5332_v10, %v3361_v2 }
 0x86f   : > { %v3148_v39 = vpop.f32.mrb[56].mxu1 }
 0x870   : > { %v3191_v51 = vmul.f32 %v3148_v39, %v6134_v17  ;;  %v3150_v53 = vpop.f32.mrb[57].mxu1  ;;  %v3394_v39 = vrot.slane %v3386_v31, %v5035_v13 }
 0x871   : > { %v3192_v23 = vmul.f32 %v3150_v53, %v6136_v33 }
 0x872   : > { %v4593_v50 = vpack.c.bf16 %v3191_v51, %v3189_v19  ;;  %vm3396_vm14 = vcmp.eq.s32.totalorder %v5020_v9, %v3394_v39  ;;  %vm3398_vm6 = vcmp.eq.s32.totalorder %v5332_v10, %v3394_v39 }
 0x873   : > { %v4591_v43 = vpack.c.bf16 %v3192_v23, %v3190_v44  ;;  %v3154_v29 = vpop.f32.mrb[58].mxu1  ;;  %v3365_v44 = vrot.slane %v4687_v21, %v5035_v13 }
 0x874   : > { %v3193_v35 = vmul.f32 %v3154_v29, %v6115_v4  ;;  %v3156_v3 = vpop.f32.mrb[59].mxu1  ;;  %v3390_v29 = vrot.slane %v3386_v31, %v5043_v15 }
 0x875   : > { %v3194_v57 = vmul.f32 %v3156_v3, %v6120_v56  ;;  %4592 = vmatprep.subr.bf16.mxu0 %v4591_v43  ;;  %vm3367_vm13 = vcmp.eq.s32.totalorder %v5020_v9, %v3365_v44  ;;  %vm3369_vm15 = vcmp.eq.s32.totalorder %v5332_v10, %v3365_v44 }
 0x876   : > { %4594 = vmatpush1.bf16.msra.mxu0 %v4593_v50  ;;  %v3379_v50 = vrot.slane %v3370_v63, %v5035_v13  ;;  %vm3395_vm8 = vcmp.eq.s32.totalorder %v5020_v9, %v3390_v29  ;;  %vm3397_vm0 = vcmp.eq.s32.totalorder %v5332_v10, %v3390_v29 }
 0x877   : > { %v3160_v18 = vpop.f32.mrb[60].mxu1 }
 0x878   : > { %v3195_v27 = vmul.f32 %v3160_v18, %v6134_v17  ;;  %v3162_v0 = vpop.f32.mrb[61].mxu1  ;;  %v3375_v18 = vrot.slane %v3370_v63, %v5043_v15  ;;  %v3385_v31 = vsel %vm3369_vm15, %v3379_v50, 0.0 }
 0x879   : > { %v3196_v60 = vmul.f32 %v3162_v0, %v6136_v33 }
 0x87a   : > { %v4597_v20 = vpack.c.bf16 %v3195_v27, %v3193_v35  ;;  %v3403_v27 = vrot.slane %v3295_v36, %v5043_v15  ;;  %v3384_v36 = vsel %vm3368_vm7, %v3375_v18, 0.0 }
 0x87b   : > { %v4595_v12 = vpack.c.bf16 %v3196_v60, %v3194_v57  ;;  %v3166_v46 = vpop.f32.mrb[62].mxu1  ;;  %v3383_v60 = vsel %vm3367_vm13, %v3379_v50, 0.0 }
 0x87c   : > { %v3197_v19 = vmul.f32 %v3166_v46, %v6115_v4  ;;  %v3168_v49 = vpop.f32.mrb[63].mxu1  ;;  %v3410_v44 = vsel %vm3395_vm8, %v3403_v27, 0.0  ;;  %v3412_v39 = vsel %vm3397_vm0, %v3403_v27, 0.0 }
 0x87d   : > { %v3198_v5 = vmul.f32 %v3168_v49, %v6120_v56  ;;  %4596 = vmatprep.subr.bf16.mxu0 %v4595_v12  ;;  %v3413_v12 = vsel %vm3398_vm6, %v3407_v25, 0.0 }
 0x87e   : > { %4598 = vmatpush1.bf16.msra.mxu0 %v4597_v20  ;;  %v3411_v20 = vsel %vm3396_vm14, %v3407_v25, 0.0  ;;  %v3417_v63 = vadd.f32 %v3413_v12, %v3385_v31 }
 0x87f   : > { %v3172_v51 = vpop.f32.mrb[64].mxu1  ;;  %v3415_v49 = vadd.f32 %v3411_v20, %v3383_v60 }
 0x880   : > { %v3199_v53 = vmul.f32 %v3172_v51, %v6134_v17  ;;  %v3174_v54 = vpop.f32.mrb[65].mxu1 }
 0x881   : > { %v3200_v23 = vmul.f32 %v3174_v54, %v6136_v33  ;;  %v4607_v50 = vpack.c.bf16 %v3417_v63, %v3415_v49 }
 0x882   : > { %v4601_v43 = vpack.c.bf16 %v3199_v53, %v3197_v19 }
 0x883   : > { %v4599_v35 = vpack.c.bf16 %v3200_v23, %v3198_v5  ;;  %v3178_v3 = vpop.f32.mrb[66].mxu1  ;;  %v3416_v23 = vadd.f32 %v3412_v39, %v3384_v36 }
 0x884   : > { %v3201_v57 = vmul.f32 %v3178_v3, %v6115_v4  ;;  %v3180_v21 = vpop.f32.mrb[67].mxu1 }
 0x885   : > { %v3202_v0 = vmul.f32 %v3180_v21, %v6120_v56  ;;  %4600 = vmatprep.subr.bf16.mxu0 %v4599_v35  ;;  %v3382_v56 = vsel %vm3366_vm9, %v3375_v18, 0.0 }
 0x886   : > { %4602 = vmatpush1.bf16.msra.mxu0 %v4601_v43  ;;  %v3414_v54 = vadd.f32 %v3410_v44, %v3382_v56 }
 0x887   : > { %v3184_v4 = vpop.f32.mrb[68].mxu1 }
 0x888   : > { %v3203_v46 = vmul.f32 %v3184_v4, %v6134_v17  ;;  %v3186_v19 = vpop.f32.mrb[69].mxu1  ;;  %v4609_v17 = vpack.c.bf16 %v3416_v23, %v3414_v54 }
 0x889   : > { %v3204_v5 = vmul.f32 %v3186_v19, %v6136_v33 }
 0x88a   : > { %v4605_v51 = vpack.c.bf16 %v3203_v46, %v3201_v57 }
 0x88b   : > { %v4603_v53 = vpack.c.bf16 %v3204_v5, %v3202_v0 }
 0x88d   : > { %4604 = vmatprep.subr.bf16.mxu0 %v4603_v53 }
 0x88e   : > { %4606 = vmatpush1.bf16.msra.mxu0 %v4605_v51 }
 0x88f   : > { %4608 = vmatprep.subr.bf16.mxu0 %v4607_v50 }
 0x891   : > { %4426 = vmatmul.mubr.msk.f32.vlgmr.msra.gmra.mrb[62].mxu0 %vm1084_vm2, %v5957_v52 }
 0x892   : > { %4610 = vmatpush1.bf16.msra.mxu0 %v4609_v17  ;;  %3482 = vmatprep.mubr.f32.mxu0 %v4888_v22 }
 0x895   : > { %4427 = vmatmul.mubr.msk.f32.vlgmr.msra.gmra.mrb[64].mxu0 %vm930_vm5, %v5821_v40  ;;  %v638_v40 = vpop.permute.xlu1 %637 }
 0x896   : > { %3488 = vmatprep.mubr.f32.mxu0 %v4888_v22 }
 0x899   : > { %4428 = vmatmul.mubr.msk.f32.gmra.mrb[66].mxu0 %vm930_vm5, %v5827_v41  ;;  %v744_v41 = vadd.f32 %v5318_v7, %v638_v40 }
 0x89a   : > { %3494 = vmatprep.mubr.f32.mxu0 %v4888_v22 }
 0x89d   : > { %4429 = vmatmul.mubr.msk.f32.gmra.mrb[68].mxu0 %vm930_vm5, %v5833_v47  ;;  %v746_v47 = vadd.f32 %v5320_v11, %v638_v40 }
 0x89e   : > { %3500 = vmatprep.mubr.f32.mxu0 %v4888_v22 }
 0x8a1   : > { %4430 = vmatmul.mubr.msk.f32.gmra.mrb[70].mxu0 %vm930_vm5, %v5839_v30  ;;  %v4362_v30 = vmul.f32 -1.442695, %v744_v41 }
 0x8a2   : > { %3506 = vmatprep.mubr.f32.mxu0 %v4888_v22 }
 0x8a3   : > { %4788 = vpow2.f32 %v4362_v30 }
 0x8a5   : > { %4431 = vmatmul.mubr.msk.f32.gmra.mrb[72].mxu0 %vm930_vm5, %v5845_v37  ;;  %v4363_v37 = vmul.f32 -1.442695, %v746_v47 }
 0x8a6   : > { %3512 = vmatprep.mubr.f32.mxu0 %v4888_v22 }
 0x8a7   : > { %4790 = vpow2.f32 %v4363_v37 }
 0x8a9   : > { %4432 = vmatmul.mubr.msk.f32.gmra.mrb[74].mxu0 %vm930_vm5, %v5851_v32  ;;  %v3286_v32 = vcombine.high %v6084_v8, %v6084_v8  ;;  %v6206_v8 = vrot.slane %v3630_v6, %v5300_v58 }
 0x8aa   : > { %3518 = vmatprep.mubr.f32.mxu0 %v4888_v22 }
 0x8ab   : > { %v3647_v18 = vcombine.high %v6206_v8, %v6206_v8 }
 0x8ad   : > { %4433 = vmatmul.mubr.msk.f32.gmra.mrb[76].mxu0 %vm930_vm5, %v5857_v1  ;;  %v3288_v1 = vadd.f32 %v3286_v32, %v5089_v28  ;;  %v4789_v2 = vpop.eup %4788  ;;  %v3654_v12 = vrot.slane %v3647_v18, %v5300_v58 }
 0x8ae   : > { %3524 = vmatprep.mubr.f32.mxu0 %v4888_v22  ;;  %v762_v43 = vadd.f32 1.0, %v4789_v2 }
 0x8af   : > { %v3292_v33 = vfloor.f32 %v3288_v1  ;;  %v3656_v39 = vadd.f32 %v3654_v12, %v5082_v26 }
 0x8b0   : > { %4792 = vrcp.f32 %v762_v43 }
 0x8b1   : > { %4434 = vmatmul.mubr.msk.f32.gmra.mrb[78].mxu0 %vm930_vm5, %v5863_v61  ;;  %v4791_v25 = vpop.eup %4790  ;;  %v4684_v61 = vtrunc.f32 %v3292_v33  ;;  %v3294_v7 = vsub.f32 %v3288_v1, %v3292_v33 }
 0x8b2   : > { %3976 = vmatprep.mubr.f32.mxu0 %v4888_v22  ;;  %v763_v29 = vadd.f32 1.0, %v4791_v25 }
 0x8b3   : > { %v4685_v35 = vcvt.f32.s32 %v4684_v61  ;;  %v3310_v3 = vsub.f32 1.0, %v3294_v7  ;;  %v3343_v20 = vrot.slane %v3294_v7, %v5043_v15  ;;  %v3347_v6 = vrot.slane %v3294_v7, %v5035_v13 }
 0x8b4   : > { %4794 = vrcp.f32 %v763_v29  ;;  %v3658_v29 = vfloor.f32 %v3656_v39 }
 0x8b5   : > { %v3326_v11 = vadd.s32 1, %v4685_v35  ;;  %v3301_v57 = vrot.slane %v4685_v35, %v5043_v15  ;;  %v3305_v27 = vrot.slane %v4685_v35, %v5035_v13  ;;  %v3315_v60 = vrot.slane %v3310_v3, %v5043_v15 }
 0x8b6   : > { %v3319_v16 = vrot.slane %v3310_v3, %v5035_v13 }
 0x8b7   : > { %v3330_v21 = vrot.slane %v3326_v11, %v5043_v15  ;;  %v3334_v0 = vrot.slane %v3326_v11, %v5035_v13  ;;  %vm3306_vm4 = vcmp.eq.s32.totalorder %v5020_v9, %v3301_v57  ;;  %vm3307_vm3 = vcmp.eq.s32.totalorder %v5020_v9, %v3305_v27 }
 0x8b8   : > { %v3322_v46 = vsel %vm3306_vm4, %v3315_v60, 0.0  ;;  %vm3308_vm14 = vcmp.eq.s32.totalorder %v5332_v10, %v3301_v57  ;;  %v3323_v63 = vsel %vm3307_vm3, %v3319_v16, 0.0  ;;  %vm3309_vm6 = vcmp.eq.s32.totalorder %v5332_v10, %v3305_v27 }
 0x8b9   : > { %vm3335_vm11 = vcmp.eq.s32.totalorder %v5020_v9, %v3330_v21  ;;  %vm3336_vm13 = vcmp.eq.s32.totalorder %v5020_v9, %v3334_v0  ;;  %vm3337_vm15 = vcmp.eq.s32.totalorder %v5332_v10, %v3330_v21  ;;  %vm3338_vm9 = vcmp.eq.s32.totalorder %v5332_v10, %v3334_v0 }
 0x8ba   : > { %v6216_v31 = vpop.eup %4792  ;;  %v3350_v19 = vsel %vm3335_vm11, %v3343_v20, 0.0  ;;  %v3351_v44 = vsel %vm3336_vm13, %v3347_v6, 0.0  ;;  %v3324_v50 = vsel %vm3308_vm14, %v3315_v60, 0.0  ;;  %v3352_v17 = vsel %vm3337_vm15, %v3343_v20, 0.0 }
 0x8bb   : > { %v3279_v4 = vrot.slane %v6216_v31, %v5043_v15  ;;  %v6235_v53 = vadd.f32 %v3350_v19, %v3322_v46  ;;  %v3355_v30 = vadd.f32 %v3351_v44, %v3323_v63  ;;  %v3325_v37 = vsel %vm3309_vm6, %v3319_v16, 0.0 }
 0x8bc   : > { %v3353_v2 = vsel %vm3338_vm9, %v3347_v6, 0.0  ;;  %v4690_v57 = vtrunc.f32 %v3658_v29  ;;  %v3660_v19 = vsub.f32 %v3656_v39, %v3658_v29 }
 0x8bd   : > { %v6255_v7 = vadd.f32 %v3353_v2, %v3325_v37 }
 0x8be   : > { %v6220_v14 = vpop.eup %4794  ;;  %v3772_v39 = vrot.slane %v3660_v19, %v5035_v13 }
 0x8bf   : > { %v3283_v56 = vrot.slane %v6220_v14, %v5043_v15 }
 0x964   : > { %v3271_v49 = vpop.f32.mrb[62].mxu0 }
 0x965   : > { %v3284_v36 = vmul.f32 %v3279_v4, %v3271_v49  ;;  %v3273_v5 = vpop.f32.mrb[63].mxu0 }
 0x966   : > { %v3285_v51 = vmul.f32 %v3283_v56, %v3273_v5 }
 0x967   : > { %v4019_v54 = vrot.slane %v3284_v36, 4  ;;  %v4145_v23 = vrot.slane %v3284_v36, 6 }
 0x968   : > { %v4020_v40 = vrot.slane %v3285_v51, 4  ;;  %v4146_v41 = vrot.slane %v3285_v51, 6  ;;  %v3484_v47 = vpop.f32.mrb[64].mxu0 }
 0x969   : > { %v6240_v32 = vsel %vm603_vm1, %v6126_v48, %v4019_v54  ;;  %v6244_v26 = vsel %vm603_vm1, %v6113_v55, %v4145_v23  ;;  %v3531_v1 = vmul.f32 %v3484_v47, %v6235_v53  ;;  %v3486_v33 = vpop.f32.mrb[65].mxu0  ;;  %v3356_v48 = vadd.f32 %v3352_v17, %v3324_v50 }
 0x96a   : > { %v6249_v25 = vsel %vm603_vm1, %v6131_v24, %v4020_v40  ;;  %v6253_v61 = vsel %vm603_vm1, %v6118_v38, %v4146_v41  ;;  %v3532_v43 = vmul.f32 %v3486_v33, %v3355_v30  ;;  %v4691_v38 = vcvt.f32.s32 %v4690_v57 }
 0x96b   : > { %v3735_v54 = vsub.f32 1.0, %v3660_v19 }
 0x96c   : > { %v3490_v35 = vpop.f32.mrb[66].mxu0  ;;  %v3751_v46 = vadd.s32 1, %v4691_v38  ;;  %v3730_v17 = vrot.slane %v4691_v38, %v5035_v13  ;;  %v3726_v2 = vrot.slane %v4691_v38, %v5043_v15 }
 0x96d   : > { %v3533_v55 = vmul.f32 %v3490_v35, %v3356_v48  ;;  %v3492_v11 = vpop.f32.mrb[67].mxu0  ;;  %v3744_v33 = vrot.slane %v3735_v54, %v5035_v13 }
 0x96e   : > { %v3534_v3 = vmul.f32 %v3492_v11, %v6255_v7  ;;  %v3759_v44 = vrot.slane %v3751_v46, %v5035_v13  ;;  %v3755_v47 = vrot.slane %v3751_v46, %v5043_v15  ;;  %vm3732_vm8 = vcmp.eq.s32.totalorder %v5020_v9, %v3730_v17 }
 0x96f   : > { %v4613_v21 = vpack.c.bf16 %v3533_v55, %v3531_v1  ;;  %vm3734_vm0 = vcmp.eq.s32.totalorder %v5332_v10, %v3730_v17  ;;  %v3748_v57 = vsel %vm3732_vm8, %v3744_v33, 0.0  ;;  %vm3731_vm3 = vcmp.eq.s32.totalorder %v5020_v9, %v3726_v2 }
 0x970   : > { %v4611_v18 = vpack.c.bf16 %v3534_v3, %v3532_v43  ;;  %v3496_v27 = vpop.f32.mrb[68].mxu0  ;;  %vm3761_vm1 = vcmp.eq.s32.totalorder %v5020_v9, %v3759_v44  ;;  %vm3763_vm7 = vcmp.eq.s32.totalorder %v5332_v10, %v3759_v44  ;;  %vm3760_vm4 = vcmp.eq.s32.totalorder %v5020_v9, %v3755_v47  ;;  %v4813_v44 = vld [vmem:[%s5353_s10 + $0x30] sm:$0xff] }
 0x971   : > { %v3535_v24 = vmul.f32 %v3496_v27, %v6235_v53  ;;  %v3498_v0 = vpop.f32.mrb[69].mxu0  ;;  %v3776_v55 = vsel %vm3761_vm1, %v3772_v39, 0.0  ;;  %v3778_v11 = vsel %vm3763_vm7, %v3772_v39, 0.0  ;;  %vm3762_vm11 = vcmp.eq.s32.totalorder %v5332_v10, %v3755_v47 }
 0x972   : > { %v3536_v60 = vmul.f32 %v3498_v0, %v3355_v30  ;;  %4612 = vmatprep.subr.bf16.mxu1 %v4611_v18  ;;  %v3750_v27 = vsel %vm3734_vm0, %v3744_v33, 0.0  ;;  %vm3733_vm13 = vcmp.eq.s32.totalorder %v5332_v10, %v3726_v2 }
 0x973   : > { %4614 = vmatpush1.bf16.msra.mxu1 %v4613_v21  ;;  %v3768_v21 = vrot.slane %v3660_v19, %v5043_v15 }
 0x974   : > { %v3502_v20 = vpop.f32.mrb[70].mxu0 }
 0x975   : > { %v3537_v16 = vmul.f32 %v3502_v20, %v3356_v48  ;;  %v3504_v6 = vpop.f32.mrb[71].mxu0  ;;  %v3775_v38 = vsel %vm3760_vm4, %v3768_v21, 0.0  ;;  %v3777_v20 = vsel %vm3762_vm11, %v3768_v21, 0.0 }
 0x976   : > { %v3538_v12 = vmul.f32 %v3504_v6, %v6255_v7 }
 0x977   : > { %v4617_v4 = vpack.c.bf16 %v3537_v16, %v3535_v24  ;;  %v3780_v24 = vadd.f32 %v3776_v55, %v3748_v57 }
 0x978   : > { %v4615_v49 = vpack.c.bf16 %v3538_v12, %v3536_v60  ;;  %v3508_v56 = vpop.f32.mrb[72].mxu0  ;;  %v3782_v60 = vadd.f32 %v3778_v11, %v3750_v27 }
 0x979   : > { %v3539_v36 = vmul.f32 %v3508_v56, %v6235_v53  ;;  %v3510_v5 = vpop.f32.mrb[73].mxu0  ;;  %v4808_v56 = vld [vmem:[%s5353_s10 + $0x8] sm:$0xff] }
 0x97a   : > { %v3540_v63 = vmul.f32 %v3510_v5, %v3355_v30  ;;  %4616 = vmatprep.subr.bf16.mxu1 %v4615_v49  ;;  %v4811_v5 = vld [vmem:[%s5353_s10 + $0x20] sm:$0xff] }
 0x97b   : > { %4618 = vmatpush1.bf16.msra.mxu1 %v4617_v4 }
 0x97c   : > { %v3514_v51 = vpop.f32.mrb[74].mxu0 }
 0x97d   : > { %v3541_v23 = vmul.f32 %v3514_v51, %v3356_v48  ;;  %v3516_v50 = vpop.f32.mrb[75].mxu0  ;;  %v4814_v51 = vld [vmem:[%s5353_s10 + $0x38] sm:$0xff] }
 0x97e   : > { %v3542_v40 = vmul.f32 %v3516_v50, %v6255_v7 }
 0x97f   : > { %v4621_v41 = vpack.c.bf16 %v3541_v23, %v3539_v36  ;;  %v4809_v36 = vld [vmem:[%s5353_s10 + $0x10] sm:$0xff] }
 0x980   : > { %v4619_v37 = vpack.c.bf16 %v3542_v40, %v3540_v63  ;;  %v3520_v1 = vpop.f32.mrb[76].mxu0  ;;  %v4812_v63 = vld [vmem:[%s5353_s10 + $0x28] sm:$0xff] }
 0x981   : > { %v3543_v43 = vmul.f32 %v3520_v1, %v6235_v53  ;;  %v3522_v29 = vpop.f32.mrb[77].mxu0  ;;  %v3740_v53 = vrot.slane %v3735_v54, %v5043_v15  ;;  %v3644_v54 = vrot.slane %v6206_v8, %v5300_v58  ;;  %v3621_v8 = vrot.slane %v6216_v31, %v5035_v13 }
 0x982   : > { %v3544_v35 = vmul.f32 %v3522_v29, %v3355_v30  ;;  %4620 = vmatprep.subr.bf16.mxu1 %v4619_v37 }
 0x983   : > { %4622 = vmatpush1.bf16.msra.mxu1 %v4621_v41  ;;  %v3747_v12 = vsel %vm3731_vm3, %v3740_v53, 0.0  ;;  %v3749_v4 = vsel %vm3733_vm13, %v3740_v53, 0.0  ;;  %v3646_v23 = vadd.f32 %v3644_v54, %v5089_v28 }
 0x984   : > { %v3526_v3 = vpop.f32.mrb[78].mxu0  ;;  %v3779_v46 = vadd.f32 %v3775_v38, %v3747_v12  ;;  %v3781_v19 = vadd.f32 %v3777_v20, %v3749_v4 }
 0x985   : > { %v3545_v18 = vmul.f32 %v3526_v3, %v3356_v48  ;;  %v3528_v30 = vpop.f32.mrb[79].mxu0  ;;  %v4627_v48 = vpack.c.bf16 %v3782_v60, %v3780_v24  ;;  %v3657_v50 = vfloor.f32 %v3646_v23 }
 0x986   : > { %v3546_v0 = vmul.f32 %v3528_v30, %v6255_v7  ;;  %v4629_v49 = vpack.c.bf16 %v3781_v19, %v3779_v46  ;;  %v4807_v7 = vld [vmem:[%s5353_s10] sm:$0xff] }
 0x987   : > { %v4625_v16 = vpack.c.bf16 %v3545_v18, %v3543_v43  ;;  %v4688_v17 = vtrunc.f32 %v3657_v50  ;;  %v3659_v39 = vsub.f32 %v3646_v23, %v3657_v50 }
 0x988   : > { %v4623_v6 = vpack.c.bf16 %v3546_v0, %v3544_v35 }
 0x989   : > { %v4689_v40 = vcvt.f32.s32 %v4688_v17  ;;  %v3675_v37 = vsub.f32 1.0, %v3659_v39  ;;  %v3708_v28 = vrot.slane %v3659_v39, %v5043_v15  ;;  %v3712_v35 = vrot.slane %v3659_v39, %v5035_v13 }
 0x98a   : > { %4624 = vmatprep.subr.bf16.mxu1 %v4623_v6 }
 0x98b   : > { %4626 = vmatpush1.bf16.msra.mxu1 %v4625_v16  ;;  %v3691_v41 = vadd.s32 1, %v4689_v40  ;;  %v3666_v1 = vrot.slane %v4689_v40, %v5043_v15  ;;  %v3670_v2 = vrot.slane %v4689_v40, %v5035_v13  ;;  %v3680_v58 = vrot.slane %v3675_v37, %v5043_v15 }
 0x98c   : > { %4628 = vmatprep.subr.bf16.mxu1 %v4627_v48  ;;  %v3684_v29 = vrot.slane %v3675_v37, %v5035_v13 }
 0x98d   : > { %v3695_v47 = vrot.slane %v3691_v41, %v5043_v15  ;;  %v3699_v33 = vrot.slane %v3691_v41, %v5035_v13  ;;  %vm3671_vm14 = vcmp.eq.s32.totalorder %v5020_v9, %v3666_v1  ;;  %vm3673_vm9 = vcmp.eq.s32.totalorder %v5332_v10, %v3666_v1 }
 0x98e   : > { %4435 = vmatmul.mubr.msk.f32.vlgmr.msra.gmra.mrb[70].mxu1 %vm1084_vm2, %v5957_v52  ;;  %v4810_v52 = vld [vmem:[%s5353_s10 + $0x18] sm:$0xff]  ;;  %v3625_v15 = vrot.slane %v6220_v14, %v5035_v13  ;;  %vm3672_vm1 = vcmp.eq.s32.totalorder %v5020_v9, %v3670_v2  ;;  %v3687_v57 = vsel %vm3671_vm14, %v3680_v58, 0.0  ;;  %v3689_v27 = vsel %vm3673_vm9, %v3680_v58, 0.0  ;;  %s4891_s10 = smov [#allocation2]  }
 0x98f   : > { %4630 = vmatpush1.bf16.msra.mxu1 %v4629_v49  ;;  %3847 = vmatprep.mubr.f32.mxu1 %v4888_v22  ;;  %vm3701_vm15 = vcmp.eq.s32.totalorder %v5020_v9, %v3699_v33  ;;  %vm3702_vm6 = vcmp.eq.s32.totalorder %v5332_v10, %v3695_v47  ;;  %vm3703_vm7 = vcmp.eq.s32.totalorder %v5332_v10, %v3699_v33  ;;  %v3688_v60 = vsel %vm3672_vm1, %v3684_v29, 0.0  ;;  %s4820_s21 = sshll.u32 %s4891_s10, 4  ;;  %s4821_s21 = int_to_ptr.vmem [resolvable:$false] %s4820_s21 }
 0x990   : > { %v3716_v53 = vsel %vm3701_vm15, %v3712_v35, 0.0  ;;  %v3717_v21 = vsel %vm3702_vm6, %v3708_v28, 0.0  ;;  %vm3674_vm8 = vcmp.eq.s32.totalorder %v5332_v10, %v3670_v2  ;;  %v3718_v19 = vsel %vm3703_vm7, %v3712_v35, 0.0  ;;  %s4822_s12 = scalar_lea.vmem %s4821_s21, 256  ;;  %p4823_p0 = scmp.lt.s32.totalorder %s6373_s22, %s4821_s21 }
 0x991   : > { %v3720_v16 = vadd.f32 %v3716_v53, %v3688_v60  ;;  %p4824_p1 = scmp.lt.s32.totalorder %s4822_s12, %s4816_s9 }
 0x992   : > { %4436 = vmatmul.mubr.msk.f32.vlgmr.msra.gmra.mrb[72].mxu1 %vm930_vm5, %v4807_v7 }
 0x993   : > { %3853 = vmatprep.mubr.f32.mxu1 %v4888_v22  ;;  %p4825_p2 = por %p4824_p1, %p4823_p0 }
 0x995   : > { %p4826_p3 = pnand %p4825_p2, %p4819_p13 }
 0x996   : > { %4437 = vmatmul.mubr.msk.f32.gmra.mrb[74].mxu1 %vm930_vm5, %v4808_v56  ;;  %v3690_v56 = vsel %vm3674_vm8, %v3684_v29, 0.0 }
 0x997   : > { %3859 = vmatprep.mubr.f32.mxu1 %v4888_v22 }
 0x99a   : > { %4438 = vmatmul.mubr.msk.f32.gmra.mrb[76].mxu1 %vm930_vm5, %v4809_v36 }
 0x99b   : > { %3865 = vmatprep.mubr.f32.mxu1 %v4888_v22 }
 0x99e   : > { %4439 = vmatmul.mubr.msk.f32.gmra.mrb[78].mxu1 %vm930_vm5, %v4810_v52 }
 0x99f   : > { %3871 = vmatprep.mubr.f32.mxu1 %v4888_v22 }
 0x9a2   : > { %4440 = vmatmul.mubr.msk.f32.gmra.mrb[80].mxu1 %vm930_vm5, %v4811_v5  ;;  %v3722_v5 = vadd.f32 %v3718_v19, %v3690_v56 }
 0x9a3   : > { %3877 = vmatprep.mubr.f32.mxu1 %v4888_v22 }
 0x9a6   : > { %4441 = vmatmul.mubr.msk.f32.gmra.mrb[82].mxu1 %vm930_vm5, %v4812_v63 }
 0x9a7   : > { %3883 = vmatprep.mubr.f32.mxu1 %v4888_v22 }
 0x9aa   : > { %4442 = vmatmul.mubr.msk.f32.gmra.mrb[84].mxu1 %vm930_vm5, %v4813_v44 }
 0x9ab   : > { %3889 = vmatprep.mubr.f32.mxu1 %v4888_v22 }
 0x9ae   : > { %4443 = vmatmul.mubr.msk.f32.gmra.mrb[86].mxu1 %vm930_vm5, %v4814_v51  ;;  %vm3700_vm5 = vcmp.eq.s32.totalorder %v5020_v9, %v3695_v47  ;;  %v3721_v9 = vadd.f32 %v3717_v21, %v3689_v27  ;;  %v4815_v27 = vld [vmem:[%s6417_s4] sm:$0xf] }
 0x9af   : > { %4240 = vmatprep.mubr.f32.mxu1 %v4888_v22  ;;  %v3715_v43 = vsel %vm3700_vm5, %v3708_v28, 0.0 }
 0x9b0   : > { %v3719_v30 = vadd.f32 %v3715_v43, %v3687_v57 }
 0xa61   : > { %v3613_v55 = vpop.f32.mrb[70].mxu1 }
 0xa62   : > { %v3626_v11 = vmul.f32 %v3621_v8, %v3613_v55  ;;  %v3615_v3 = vpop.f32.mrb[71].mxu1 }
 0xa63   : > { %v3627_v18 = vmul.f32 %v3625_v15, %v3615_v3 }
 0xa64   : > { %v4025_v24 = vrot.slane %v3626_v11, 2  ;;  %v4149_v0 = vrot.slane %v3626_v11, 4 }
 0xa65   : > { %v4026_v38 = vrot.slane %v3627_v18, 2  ;;  %v4150_v20 = vrot.slane %v3627_v18, 4  ;;  %v3849_v13 = vpop.f32.mrb[72].mxu1 }
 0xa66   : > { %v6332_v6 = vsel %vm4034_vm12, %v6240_v32, %v4025_v24  ;;  %v4165_v12 = vsel %vm4034_vm12, %v6244_v26, %v4149_v0  ;;  %v3896_v4 = vmul.f32 %v3849_v13, %v3719_v30  ;;  %v3851_v46 = vpop.f32.mrb[73].mxu1  ;;  %v3990_v0 = vrot.slane %v6220_v14, %v5517_v34  ;;  %v4043_v13 = vld [vmem:[%s6420_s7] sm:$0x3] }
 0xa67   : > { %v3897_v48 = vmul.f32 %v3851_v46, %v3720_v16  ;;  %v4166_v49 = vsel %vm4034_vm12, %v6253_v61, %v4150_v20  ;;  %v4653_v10 = vpack.c.bf16 %v4165_v12, %v5906_v42  ;;  %v4042_v7 = vsel %vm4034_vm12, %v6249_v25, %v4026_v38 }
 0xa68   : > { %v4651_v36 = vpack.c.bf16 %v4166_v49, %v5912_v45  ;;  %v4647_v32 = vpack.c.bf16 %v4042_v7, %v5916_v62  ;;  %v4649_v26 = vpack.c.bf16 %v6332_v6, %v5902_v59  ;;  %vm4044_vm12 = vcmask 146432  }
 0xa69   : > { %v3855_v52 = vpop.f32.mrb[74].mxu1 }
 0xa6a   : > { %v3898_v63 = vmul.f32 %v3855_v52, %v3721_v9  ;;  %v3857_v44 = vpop.f32.mrb[75].mxu1  ;;  %4652 = vmatprep.subr.bf16.mxu1 %v4651_v36 }
 0xa6b   : > { %v3899_v51 = vmul.f32 %v3857_v44, %v3722_v5  ;;  %4654 = vmatpush1.bf16.msra.mxu1 %v4653_v10 }
 0xa6c   : > { %v4633_v61 = vpack.c.bf16 %v3898_v63, %v3896_v4 }
 0xa6d   : > { %v4631_v42 = vpack.c.bf16 %v3899_v51, %v3897_v48  ;;  %v3861_v54 = vpop.f32.mrb[76].mxu1 }
 0xa6e   : > { %v3900_v23 = vmul.f32 %v3861_v54, %v3719_v30  ;;  %v3863_v25 = vpop.f32.mrb[77].mxu1 }
 0xa6f   : > { %v3901_v50 = vmul.f32 %v3863_v25, %v3720_v16  ;;  %4632 = vmatprep.subr.bf16.mxu0 %v4631_v42 }
 0xa70   : > { %4634 = vmatpush1.bf16.msra.mxu0 %v4633_v61 }
 0xa71   : > { %v3867_v45 = vpop.f32.mrb[78].mxu1 }
 0xa72   : > { %v3902_v62 = vmul.f32 %v3867_v45, %v3721_v9  ;;  %v3869_v17 = vpop.f32.mrb[79].mxu1 }
 0xa73   : > { %v3903_v40 = vmul.f32 %v3869_v17, %v3722_v5 }
 0xa74   : > { %v4637_v59 = vpack.c.bf16 %v3902_v62, %v3900_v23 }
 0xa75   : > { %v4635_v41 = vpack.c.bf16 %v3903_v40, %v3901_v50  ;;  %v3873_v39 = vpop.f32.mrb[80].mxu1 }
 0xa76   : > { %v3904_v47 = vmul.f32 %v3873_v39, %v3719_v30  ;;  %v3875_v37 = vpop.f32.mrb[81].mxu1 }
 0xa77   : > { %v3905_v1 = vmul.f32 %v3875_v37, %v3720_v16  ;;  %4636 = vmatprep.subr.bf16.mxu0 %v4635_v41 }
 0xa78   : > { %4638 = vmatpush1.bf16.msra.mxu0 %v4637_v59 }
 0xa79   : > { %v3879_v33 = vpop.f32.mrb[82].mxu1 }
 0xa7a   : > { %v3906_v2 = vmul.f32 %v3879_v33, %v3721_v9  ;;  %v3881_v58 = vpop.f32.mrb[83].mxu1 }
 0xa7b   : > { %v3907_v28 = vmul.f32 %v3881_v58, %v3722_v5 }
 0xa7c   : > { %v4641_v8 = vpack.c.bf16 %v3906_v2, %v3904_v47 }
 0xa7d   : > { %v4639_v43 = vpack.c.bf16 %v3907_v28, %v3905_v1  ;;  %v3885_v29 = vpop.f32.mrb[84].mxu1 }
 0xa7e   : > { %v3908_v35 = vmul.f32 %v3885_v29, %v3719_v30  ;;  %v3887_v55 = vpop.f32.mrb[85].mxu1  ;;  %v3986_v30 = vrot.slane %v6216_v31, %v5517_v34  ;;  %v4448_v31 = vld [vmem:[%s6420_s7 + $0x2] sm:$0x3] }
 0xa7f   : > { %v3909_v15 = vmul.f32 %v3887_v55, %v3720_v16  ;;  %4640 = vmatprep.subr.bf16.mxu0 %v4639_v43 }
 0xa80   : > { %4642 = vmatpush1.bf16.msra.mxu0 %v4641_v8 }
 0xa81   : > { %v3891_v11 = vpop.f32.mrb[86].mxu1 }
 0xa82   : > { %v3910_v3 = vmul.f32 %v3891_v11, %v3721_v9  ;;  %v3893_v57 = vpop.f32.mrb[87].mxu1 }
 0xa83   : > { %v3911_v53 = vmul.f32 %v3893_v57, %v3722_v5 }
 0xa84   : > { %v4645_v21 = vpack.c.bf16 %v3910_v3, %v3908_v35 }
 0xa85   : > { %v4643_v18 = vpack.c.bf16 %v3911_v53, %v3909_v15 }
 0xa87   : > { %4644 = vmatprep.subr.bf16.mxu0 %v4643_v18 }
 0xa88   : > { %4646 = vmatpush1.bf16.msra.mxu0 %v4645_v21 }
 0xa89   : > { %4648 = vmatprep.subr.bf16.mxu0 %v4647_v32 }
 0xa8b   : > { %4444 = vmatmul.mubr.msk.f32.vlgmr.msra.gmra.mrb[80].mxu0 %vm1084_vm2, %v4815_v27 }
 0xa8c   : > { %4650 = vmatpush1.bf16.msra.mxu0 %v4649_v26  ;;  %4118 = vmatprep.mubr.f32.mxu0 %v4888_v22 }
 0xb5e   : > { %v3978_v24 = vpop.f32.mrb[80].mxu0 }
 0xb5f   : > { %v3991_v60 = vmul.f32 %v3986_v30, %v3978_v24  ;;  %v3980_v38 = vpop.f32.mrb[81].mxu0 }
 0xb60   : > { %v3992_v20 = vmul.f32 %v3990_v0, %v3980_v38 }
 0xb61   : > { %v4153_v22 = vrot.slane %v3991_v60, 2 }
 0xb62   : > { %v4154_v16 = vrot.slane %v3992_v20, 2  ;;  %4445 = vmatprep.subr.msk.mxu0 %vm4029_vm10, %v3992_v20 }
 0xb63   : > { %4446 = vmatpush1.msk.msra.mxu0 %vm4029_vm10, %v3991_v60 }
 0xb64   : > { %4449 = vmatprep.subr.msk.mxu1 %vm4029_vm10, %v4154_v16  ;;  %4447 = vmatmul.mubr.msk.f32.vlgmr.msra.gmra.mrb[82].mxu0 %vm4044_vm12, %v4043_v13 }
 0xb65   : > { %4450 = vmatpush1.msk.msra.mxu1 %vm4029_vm10, %v4153_v22 }
 0xb66   : > { %4451 = vmatmul.mubr.msk.f32.vlgmr.msra.gmra.mrb[88].mxu1 %vm4044_vm12, %v4448_v31 }
 0xc37   : > { %v4120_v34 = vpop.f32.mrb[82].mxu0 }
 0xc38   : > { %v4122_v14 = vpop.f32.mrb[83].mxu0 }
 0xc39   : > { %v4242_v9 = vpop.f32.mrb[88].mxu1 }
 0xc3a   : > { %v4249_v6 = vrot.slane %v4242_v9, 6  ;;  %v4244_v12 = vpop.f32.mrb[89].mxu1 }
 0xc3b   : > { %v4250_v4 = vrot.slane %v4244_v12, 6 }
 0xc3c   : > { %v4253_v46 = vsel %vm4029_vm10, %v4120_v34, %v4249_v6 }
 0xc3d   : > { %v4254_v19 = vsel %vm4029_vm10, %v4122_v14, %v4250_v4 }
 0xc3e   : > { %v4257_v48 = vcombine.low %v4253_v46, %v4254_v19 }
 0xc40   : > { %4259 = vst [vmem:[%s313_s20] sm:$0xff] %v4257_v48 }
 0xc41   : > { %4829 = shalt.err (!%p4826_p3)
}
 0xc42   : > { %s4830_s13 = scalar_lea.hbm %s6371_s25, 128  ;;  %s4834_s19 = scalar_lea.hbm %s6421_s8, 256 }
 0xc43   : > { %p4831_p4 = scmp.ne.s32.totalorder %s6371_s25, %s4830_s13  ;;  %p4835_p9 = scmp.lt.u32.totalorder %s6371_s25, %s6421_s8 }
 0xc44   : > { %p4836_p10 = scmp.lt.u32.totalorder %s4834_s19, %s4830_s13  ;;  %p4838_p12 = scmp.lt.u32.totalorder %s4830_s13, %s6371_s25 }
 0xc45   : > { %p4832_p7 = pnand %p4831_p4, %p4975_p5 }
 0xc46   : > { %p4837_p11 = por %p4836_p10, %p4835_p9 }
 0xc47   : > { %p4833_p8 = pneg %p4832_p7 }
 0xc48   : > { %p4839_p13 = por %p4838_p12, %p4837_p11 }
 0xc4a   : > { %p4840_p0 = pnand %p4839_p13, %p4833_p8 }
 0xc4c   : > { %4843 = shalt.err (!%p4840_p0)
}
 0xc4d   : > { %4692 = dma.vmem_to_hbm [thread:$0]  (%p4975_p5), %s6373_s22, 128, %s6371_s25, %s4261_s26  }
 0xc4e PF: > { %p4698_p1 = scmp.ge.s32.totalorder %s4878_s30, 2  ;;  %s4287_s24 = sand.u32 1, %s4866_s27  }
 0xc4f   : > { %s4288_s9 = scalar_lea.sflag [#allocation3], %s4287_s24 }
 0xc50   : > { %p4695_p2 = pnand %p4698_p1, %p4979_p6 }
 0xc52   : > { %4861 = dma.done.wait (!%p4695_p2), %s4288_s9, 128  }
 0xc53   : > { %4863 = vsyncadd (!%p4695_p2), %s4288_s9, 4294967168  ;;  %p18_p3 = scmp.ge.s32.totalorder %s4962_s11, 4   ;;  %s6468_s27 = smov %s4870_s28 }
 0xc54   : > { %s6469_s28 = smov %s4874_s29  ;;  %s6470_s29 = smov %s4973_s14 }
 0xc55   : > { %s6471_s30 = smov %s4962_s11  ;;  %20 = sbr.rel (!%p18_p3) target bundleno = 3 (0x3), region = 91 }
 0xc5c   :  { %4293 = vsyncpa [#allocation3], 1 }
 0xc5d   :  { %4295 = vsyncpa [#allocation3 + $0x1], 1 }

</bundles_post_ra>
